<compile_context>
chip_gen: v7x
topology: tpu7x:2x2x1
jax: 0.10.0
libtpu: 0.0.40
codegen_flags: <defaults>
</compile_context>

<pallas_src>
import functools

import jax
import jax.numpy as jnp
from jax.experimental import pallas as pl
from jax.experimental.pallas import tpu as pltpu

TEMP = 0.2
EPS = 1e-12        # torch.nn.functional.normalize default eps
_LANES = 128       # TPU vreg lane width


def _encoder_kernel(ob_ref, w0_ref, b0_ref, w1_ref, b1_ref, w2_ref, b2_ref,
                    q_ref):
  """encoder_q: Linear->tanh->Linear->tanh->Linear, L2-normalize rows, /temp."""
  h = jnp.tanh(
      jnp.dot(ob_ref[...], w0_ref[...], preferred_element_type=jnp.float32)
      + b0_ref[...])
  h = jnp.tanh(
      jnp.dot(h, w1_ref[...], preferred_element_type=jnp.float32)
      + b1_ref[...])
  q = (jnp.dot(h, w2_ref[...], preferred_element_type=jnp.float32)
       + b2_ref[...])
  # F.normalize(q, dim=1); fold 1/temp into q so the stream kernel never scales.
  norm = jnp.sqrt(jnp.sum(q * q, axis=1, keepdims=True))
  q_ref[...] = (q / jnp.maximum(norm, EPS)) * (1.0 / TEMP)


def _lane_local_sum_exp(logits, shift=None, n_chains=8):
  """sum_k exp(logits[:, k] - shift) accumulated into a lane-resident (rows, 128).

  Walks vreg-aligned 128-lane chunks of `logits` (slices never cross an (8,128)
  tile boundary, so they are free) and accumulates with plain VPU adds split
  over `n_chains` independent chains for ILP.  No cross-lane XLU work, no
  relayout; the single lane reduction happens once in the wrapper.
  """
  cols = logits.shape[1]
  assert cols % _LANES == 0
  n_chunks = cols // _LANES
  chains = min(n_chains, n_chunks)
  parts = [None] * chains
  for j in range(n_chunks):
    chunk = logits[:, j * _LANES:(j + 1) * _LANES]
    if shift is not None:
      chunk = chunk - shift
    e = jnp.exp(chunk)
    i = j % chains
    parts[i] = e if parts[i] is None else parts[i] + e
  while len(parts) > 1:                     # pairwise combine of the chains
    nxt = [parts[i] + parts[i + 1] for i in range(0, len(parts) - 1, 2)]
    if len(parts) % 2:
      nxt.append(parts[-1])
    parts = nxt
  return parts[0]


def _queue_lse_kernel(q_ref, queue_ref, l_ref, m_ref, l_sc, m_sc, *,
                      assume_unit_norm):
  k = pl.program_id(1)

  @pl.when(k == 0)
  def _():
    l_sc[...] = jnp.zeros_like(l_sc)
    if assume_unit_norm:
      m_sc[...] = jnp.zeros_like(m_sc)            # no shift is ever applied
    else:
      m_sc[...] = jnp.full_like(m_sc, -1e30)      # running max ("-inf")

  # logits tile: [N, TK] = (q / temp) [N, C] @ queue_tile [C, TK].
  logits = jnp.dot(q_ref[...], queue_ref[...],
                   preferred_element_type=jnp.float32)

  if assume_unit_norm:
    # Unit-norm q rows x unit-norm queue columns => |logit| <= 1/temp = 5.0,
    # so exp() cannot overflow and no running max is needed.
    l_sc[...] += _lane_local_sum_exp(logits)
  else:
    # Numerically-safe online-max path (review correctness concern).
    m_prev = m_sc[...]
    m_new = jnp.maximum(m_prev, jnp.max(logits, axis=1, keepdims=True))
    l_sc[...] = (l_sc[...] * jnp.exp(m_prev - m_new)
                 + _lane_local_sum_exp(logits, shift=m_new))
    m_sc[...] = m_new

  @pl.when(k == pl.num_programs(1) - 1)
  def _():
    l_ref[0] = l_sc[...]
    m_ref[0] = jnp.broadcast_to(m_sc[...], (m_ref.shape[1], m_ref.shape[2]))


def _default_n_splits():
  """2-way K split only on 2-TensorCore chips (v7x); 1 on v5e/v6e/etc."""
  try:
    kind = jax.devices()[0].device_kind.lower()
  except Exception:
    return 1
  return 2 if ("7x" in kind or "v7" in kind) else 1


@functools.partial(jax.jit,
                   static_argnames=("tk", "n_splits", "assume_unit_norm"))
def contrastive_queue_forward(ob_no, params, queue, *, tk=None, n_splits=None,
                              assume_unit_norm=True):
  """error [N] = logsumexp(normalize(encoder_q(ob_no)) @ queue / temp, axis=1).

  assume_unit_norm=True (default) relies on the module invariant that queue
  columns are unit-norm (built normalized, only ever overwritten with
  normalized q rows); pass False for the numerically-safe online-max path.
  """
  w0, b0, w1, b1, w2, b2 = params
  n, _ = ob_no.shape
  c, k_total = queue.shape

  if n_splits is None:
    n_splits = _default_n_splits()
  if tk is None:
    # Two K-steps per core keeps the pipeline alive while minimizing the
    # per-grid-step fixed overhead (queue block = c x tk f32, double buffered).
    tk = max(_LANES, min(16384, k_total // (2 * n_splits)))
  assert tk % _LANES == 0, tk
  assert k_total % (n_splits * tk) == 0, (k_total, n_splits, tk)
  kpc = k_total // (n_splits * tk)          # K-tiles per core / split

  # Kernel 1: encoder + normalize + 1/temp fold (everything fits VMEM).
  q_scaled = pl.pallas_call(
      _encoder_kernel,
      out_shape=jax.ShapeDtypeStruct((n, c), jnp.float32),
  )(ob_no, w0, b0, w1, b1, w2, b2)

  # Kernel 2: HBM-bound stream-reduce over the queue.
  split_sem = pltpu.CORE_PARALLEL if n_splits > 1 else pltpu.ARBITRARY
  cost = pl.CostEstimate(
      flops=2 * n * c * k_total,
      transcendentals=n * k_total,
      bytes_accessed=4 * (queue.size + n * c + 2 * n_splits * n * _LANES))

  l_out, m_out = pl.pallas_call(
      functools.partial(_queue_lse_kernel, assume_unit_norm=assume_unit_norm),
      out_shape=(
          jax.ShapeDtypeStruct((n_splits, n, _LANES), jnp.float32),
          jax.ShapeDtypeStruct((n_splits, n, _LANES), jnp.float32),
      ),
      grid_spec=pltpu.PrefetchScalarGridSpec(
          num_scalar_prefetch=0,
          grid=(n_splits, kpc),
          in_specs=[
              pl.BlockSpec((n, c), lambda p, k: (0, 0)),
              pl.BlockSpec((c, tk), lambda p, k: (0, p * kpc + k)),
          ],
          out_specs=[
              pl.BlockSpec((1, n, _LANES), lambda p, k: (p, 0, 0)),
              pl.BlockSpec((1, n, _LANES), lambda p, k: (p, 0, 0)),
          ],
          scratch_shapes=[
              pltpu.VMEM((n, _LANES), jnp.float32),   # lane-resident sum-exp
              pltpu.VMEM((n, 1), jnp.float32),        # running max (safe path)
          ],
      ),
      compiler_params=pltpu.CompilerParams(
          dimension_semantics=(split_sem, pltpu.ARBITRARY),
          vmem_limit_bytes=32 * 1024 * 1024),
      cost_estimate=cost,
  )(q_scaled, queue)

  # Tiny wrapper combine: one lane reduction + per-split logsumexp merge.
  sums = jnp.sum(l_out, axis=2)             # (S, N)
  m = m_out[:, :, 0]                        # (S, N); all lanes equal
  m_star = jnp.max(m, axis=0)               # (N,)   (all zeros on the fast path)
  return m_star + jnp.log(jnp.sum(sums * jnp.exp(m - m_star), axis=0))


def _reference(ob_no, params, queue):
  w0, b0, w1, b1, w2, b2 = params
  h = jnp.tanh(ob_no @ w0 + b0)
  h = jnp.tanh(h @ w1 + b1)
  q = h @ w2 + b2
  q = q / jnp.maximum(jnp.linalg.norm(q, axis=1, keepdims=True), EPS)
  logits = (q @ queue) / TEMP
  return jax.scipy.special.logsumexp(logits, axis=1)


if __name__ == "__main__":
  # Hyperparameters implied by the module (small, deterministic).
  N = 8            # batch
  OB_DIM = 16      # hparams['ob_dim']
  SIZE = 64        # hparams['rnd_size']
  OUT = 32         # hparams['rnd_output_size'] (= queue dim)
  K = 65536 // 2   # self.K

  key = jax.random.PRNGKey(0)
  ks = jax.random.split(key, 8)

  # encoder_q uses init_method_1: weight.uniform_(), bias.uniform_() -> U[0,1)
  w0 = jax.random.uniform(ks[0], (OB_DIM, SIZE), jnp.float32)
  b0 = jax.random.uniform(ks[1], (1, SIZE), jnp.float32)
  w1 = jax.random.uniform(ks[2], (SIZE, SIZE), jnp.float32)
  b1 = jax.random.uniform(ks[3], (1, SIZE), jnp.float32)
  w2 = jax.random.uniform(ks[4], (SIZE, OUT), jnp.float32)
  b2 = jax.random.uniform(ks[5], (1, OUT), jnp.float32)
  params = (w0, b0, w1, b1, w2, b2)

  # queue = normalize(randn(dim, K), dim=0) -> unit-norm columns (precondition
  # for the default no-max logsumexp path inside the kernel).
  queue = jax.random.normal(ks[6], (OUT, K), jnp.float32)
  queue = queue / jnp.maximum(
      jnp.linalg.norm(queue, axis=0, keepdims=True), EPS)

  ob_no = jax.random.normal(ks[7], (N, OB_DIM), jnp.float32)

  ref = _reference(ob_no, params, queue)

  # Default (fast) path: unit-norm invariant assumed.
  err = jax.block_until_ready(contrastive_queue_forward(ob_no, params, queue))
  assert err.shape == (N,)
  assert jnp.allclose(err, ref, atol=1e-4, rtol=1e-4), (err, ref)

  # Numerically-safe online-max fallback must agree as well.
  err_safe = jax.block_until_ready(
      contrastive_queue_forward(ob_no, params, queue, assume_unit_norm=False))
  assert jnp.allclose(err_safe, ref, atol=1e-4, rtol=1e-4), (err_safe, ref)

  print("KERNEL_OK")
</pallas_src>

<mosaic_0001>
module attributes {stable_mosaic.version = 11 : i64} {
  func.func @_queue_lse_kernel(%arg0: i32, %arg1: i32, %arg2: memref<8x32xf32, #tpu.memory_space<vmem>>, %arg3: memref<32x16384xf32, #tpu.memory_space<vmem>>, %arg4: memref<1x8x128xf32, #tpu.memory_space<vmem>>, %arg5: memref<1x8x128xf32, #tpu.memory_space<vmem>>, %arg6: memref<8x128xf32, #tpu.memory_space<vmem>>, %arg7: memref<8x1xf32, #tpu.memory_space<vmem>>) attributes {dimension_semantics = [#tpu.dimension_semantics<arbitrary>, #tpu.dimension_semantics<arbitrary>], iteration_bounds = array<i64: 1, 2>, scalar_prefetch = 0 : i64, scratch_operands = 2 : i64, tpu.core_type = #tpu.core_type<tc>, window_params = [{pipeline_mode = #tpu.pipeline_mode<synchronous>, transform_indices = @transform_0, window_bounds = array<i64: 8, 32>}, {transform_indices = @transform_1, window_bounds = array<i64: 32, 16384>}, {transform_indices = @transform_2, window_bounds = array<i64: 1, 8, 128>}, {transform_indices = @transform_3, window_bounds = array<i64: 1, 8, 128>}]} {
    %c0_i32 = arith.constant 0 : i32
    %0 = arith.cmpi eq, %arg1, %c0_i32 : i32
    %1 = arith.extui %0 : i1 to i32
    %c0_i32_0 = arith.constant 0 : i32
    %2 = arith.cmpi ne, %1, %c0_i32_0 : i32
    scf.if %2 {
      %cst_9 = arith.constant 0.000000e+00 : f32
      %395 = vector.broadcast %cst_9 : f32 to vector<8x128xf32>
      %c0_10 = arith.constant 0 : index
      %c0_11 = arith.constant 0 : index
      %396 = vector.load %arg6[%c0_10, %c0_11] : memref<8x128xf32, #tpu.memory_space<vmem>>, vector<8x128xf32>
      tpu.vector_store %arg6[%c0_10, %c0_11], %395 {strides = array<i32>} : memref<8x128xf32, #tpu.memory_space<vmem>>, vector<8x128xf32>,
      %cst_12 = arith.constant 0.000000e+00 : f32
      %397 = vector.broadcast %cst_12 : f32 to vector<8x1xf32>
      %c0_13 = arith.constant 0 : index
      %c0_14 = arith.constant 0 : index
      %398 = vector.load %arg7[%c0_13, %c0_14] : memref<8x1xf32, #tpu.memory_space<vmem>>, vector<8x1xf32>
      tpu.vector_store %arg7[%c0_13, %c0_14], %397 {strides = array<i32>} : memref<8x1xf32, #tpu.memory_space<vmem>>, vector<8x1xf32>,
    } else {
    }
    %c0 = arith.constant 0 : index
    %c0_1 = arith.constant 0 : index
    %3 = vector.load %arg2[%c0, %c0_1] : memref<8x32xf32, #tpu.memory_space<vmem>>, vector<8x32xf32>
    %c0_2 = arith.constant 0 : index
    %c0_3 = arith.constant 0 : index
    %4 = vector.load %arg3[%c0_2, %c0_3] : memref<32x16384xf32, #tpu.memory_space<vmem>>, vector<32x16384xf32>
    %cst = arith.constant dense<0.000000e+00> : vector<8x16384xf32>
    %5 = tpu.matmul %3, %4, %cst {dimension_numbers = #tpu.dot_dimension_numbers<[1], [0], [0], [1], [0, 0, 1, 1], [], []>} : vector<8x32xf32>, vector<32x16384xf32>, vector<8x16384xf32> -> vector<8x16384xf32>
    %c0_4 = arith.constant 0 : index
    %c0_5 = arith.constant 0 : index
    %6 = vector.load %arg6[%c0_4, %c0_5] : memref<8x128xf32, #tpu.memory_space<vmem>>, vector<8x128xf32>
    %7 = vector.extract_strided_slice %5 {offsets = [0, 0], sizes = [8, 128], strides = [1, 1]} : vector<8x16384xf32> to vector<8x128xf32>
    %8 = math.exp %7 : vector<8x128xf32>
    %9 = vector.extract_strided_slice %5 {offsets = [0, 128], sizes = [8, 128], strides = [1, 1]} : vector<8x16384xf32> to vector<8x128xf32>
    %10 = math.exp %9 : vector<8x128xf32>
    %11 = vector.extract_strided_slice %5 {offsets = [0, 256], sizes = [8, 128], strides = [1, 1]} : vector<8x16384xf32> to vector<8x128xf32>
    %12 = math.exp %11 : vector<8x128xf32>
    %13 = vector.extract_strided_slice %5 {offsets = [0, 384], sizes = [8, 128], strides = [1, 1]} : vector<8x16384xf32> to vector<8x128xf32>
    %14 = math.exp %13 : vector<8x128xf32>
    %15 = vector.extract_strided_slice %5 {offsets = [0, 512], sizes = [8, 128], strides = [1, 1]} : vector<8x16384xf32> to vector<8x128xf32>
    %16 = math.exp %15 : vector<8x128xf32>
    %17 = vector.extract_strided_slice %5 {offsets = [0, 640], sizes = [8, 128], strides = [1, 1]} : vector<8x16384xf32> to vector<8x128xf32>
    %18 = math.exp %17 : vector<8x128xf32>
    %19 = vector.extract_strided_slice %5 {offsets = [0, 768], sizes = [8, 128], strides = [1, 1]} : vector<8x16384xf32> to vector<8x128xf32>
    %20 = math.exp %19 : vector<8x128xf32>
    %21 = vector.extract_strided_slice %5 {offsets = [0, 896], sizes = [8, 128], strides = [1, 1]} : vector<8x16384xf32> to vector<8x128xf32>
    %22 = math.exp %21 : vector<8x128xf32>
    %23 = vector.extract_strided_slice %5 {offsets = [0, 1024], sizes = [8, 128], strides = [1, 1]} : vector<8x16384xf32> to vector<8x128xf32>
    %24 = math.exp %23 : vector<8x128xf32>
    %25 = arith.addf %8, %24 : vector<8x128xf32>
    %26 = vector.extract_strided_slice %5 {offsets = [0, 1152], sizes = [8, 128], strides = [1, 1]} : vector<8x16384xf32> to vector<8x128xf32>
    %27 = math.exp %26 : vector<8x128xf32>
    %28 = arith.addf %10, %27 : vector<8x128xf32>
    %29 = vector.extract_strided_slice %5 {offsets = [0, 1280], sizes = [8, 128], strides = [1, 1]} : vector<8x16384xf32> to vector<8x128xf32>
    %30 = math.exp %29 : vector<8x128xf32>
    %31 = arith.addf %12, %30 : vector<8x128xf32>
    %32 = vector.extract_strided_slice %5 {offsets = [0, 1408], sizes = [8, 128], strides = [1, 1]} : vector<8x16384xf32> to vector<8x128xf32>
    %33 = math.exp %32 : vector<8x128xf32>
    %34 = arith.addf %14, %33 : vector<8x128xf32>
    %35 = vector.extract_strided_slice %5 {offsets = [0, 1536], sizes = [8, 128], strides = [1, 1]} : vector<8x16384xf32> to vector<8x128xf32>
    %36 = math.exp %35 : vector<8x128xf32>
    %37 = arith.addf %16, %36 : vector<8x128xf32>
    %38 = vector.extract_strided_slice %5 {offsets = [0, 1664], sizes = [8, 128], strides = [1, 1]} : vector<8x16384xf32> to vector<8x128xf32>
    %39 = math.exp %38 : vector<8x128xf32>
    %40 = arith.addf %18, %39 : vector<8x128xf32>
    %41 = vector.extract_strided_slice %5 {offsets = [0, 1792], sizes = [8, 128], strides = [1, 1]} : vector<8x16384xf32> to vector<8x128xf32>
    %42 = math.exp %41 : vector<8x128xf32>
    %43 = arith.addf %20, %42 : vector<8x128xf32>
    %44 = vector.extract_strided_slice %5 {offsets = [0, 1920], sizes = [8, 128], strides = [1, 1]} : vector<8x16384xf32> to vector<8x128xf32>
    %45 = math.exp %44 : vector<8x128xf32>
    %46 = arith.addf %22, %45 : vector<8x128xf32>
    %47 = vector.extract_strided_slice %5 {offsets = [0, 2048], sizes = [8, 128], strides = [1, 1]} : vector<8x16384xf32> to vector<8x128xf32>
    %48 = math.exp %47 : vector<8x128xf32>
    %49 = arith.addf %25, %48 : vector<8x128xf32>
    %50 = vector.extract_strided_slice %5 {offsets = [0, 2176], sizes = [8, 128], strides = [1, 1]} : vector<8x16384xf32> to vector<8x128xf32>
    %51 = math.exp %50 : vector<8x128xf32>
    %52 = arith.addf %28, %51 : vector<8x128xf32>
    %53 = vector.extract_strided_slice %5 {offsets = [0, 2304], sizes = [8, 128], strides = [1, 1]} : vector<8x16384xf32> to vector<8x128xf32>
    %54 = math.exp %53 : vector<8x128xf32>
    %55 = arith.addf %31, %54 : vector<8x128xf32>
    %56 = vector.extract_strided_slice %5 {offsets = [0, 2432], sizes = [8, 128], strides = [1, 1]} : vector<8x16384xf32> to vector<8x128xf32>
    %57 = math.exp %56 : vector<8x128xf32>
    %58 = arith.addf %34, %57 : vector<8x128xf32>
    %59 = vector.extract_strided_slice %5 {offsets = [0, 2560], sizes = [8, 128], strides = [1, 1]} : vector<8x16384xf32> to vector<8x128xf32>
    %60 = math.exp %59 : vector<8x128xf32>
    %61 = arith.addf %37, %60 : vector<8x128xf32>
    %62 = vector.extract_strided_slice %5 {offsets = [0, 2688], sizes = [8, 128], strides = [1, 1]} : vector<8x16384xf32> to vector<8x128xf32>
    %63 = math.exp %62 : vector<8x128xf32>
    %64 = arith.addf %40, %63 : vector<8x128xf32>
    %65 = vector.extract_strided_slice %5 {offsets = [0, 2816], sizes = [8, 128], strides = [1, 1]} : vector<8x16384xf32> to vector<8x128xf32>
    %66 = math.exp %65 : vector<8x128xf32>
    %67 = arith.addf %43, %66 : vector<8x128xf32>
    %68 = vector.extract_strided_slice %5 {offsets = [0, 2944], sizes = [8, 128], strides = [1, 1]} : vector<8x16384xf32> to vector<8x128xf32>
    %69 = math.exp %68 : vector<8x128xf32>
    %70 = arith.addf %46, %69 : vector<8x128xf32>
    %71 = vector.extract_strided_slice %5 {offsets = [0, 3072], sizes = [8, 128], strides = [1, 1]} : vector<8x16384xf32> to vector<8x128xf32>
    %72 = math.exp %71 : vector<8x128xf32>
    %73 = arith.addf %49, %72 : vector<8x128xf32>
    %74 = vector.extract_strided_slice %5 {offsets = [0, 3200], sizes = [8, 128], strides = [1, 1]} : vector<8x16384xf32> to vector<8x128xf32>
    %75 = math.exp %74 : vector<8x128xf32>
    %76 = arith.addf %52, %75 : vector<8x128xf32>
    %77 = vector.extract_strided_slice %5 {offsets = [0, 3328], sizes = [8, 128], strides = [1, 1]} : vector<8x16384xf32> to vector<8x128xf32>
    %78 = math.exp %77 : vector<8x128xf32>
    %79 = arith.addf %55, %78 : vector<8x128xf32>
    %80 = vector.extract_strided_slice %5 {offsets = [0, 3456], sizes = [8, 128], strides = [1, 1]} : vector<8x16384xf32> to vector<8x128xf32>
    %81 = math.exp %80 : vector<8x128xf32>
    %82 = arith.addf %58, %81 : vector<8x128xf32>
    %83 = vector.extract_strided_slice %5 {offsets = [0, 3584], sizes = [8, 128], strides = [1, 1]} : vector<8x16384xf32> to vector<8x128xf32>
    %84 = math.exp %83 : vector<8x128xf32>
    %85 = arith.addf %61, %84 : vector<8x128xf32>
    %86 = vector.extract_strided_slice %5 {offsets = [0, 3712], sizes = [8, 128], strides = [1, 1]} : vector<8x16384xf32> to vector<8x128xf32>
    %87 = math.exp %86 : vector<8x128xf32>
    %88 = arith.addf %64, %87 : vector<8x128xf32>
    %89 = vector.extract_strided_slice %5 {offsets = [0, 3840], sizes = [8, 128], strides = [1, 1]} : vector<8x16384xf32> to vector<8x128xf32>
    %90 = math.exp %89 : vector<8x128xf32>
    %91 = arith.addf %67, %90 : vector<8x128xf32>
    %92 = vector.extract_strided_slice %5 {offsets = [0, 3968], sizes = [8, 128], strides = [1, 1]} : vector<8x16384xf32> to vector<8x128xf32>
    %93 = math.exp %92 : vector<8x128xf32>
    %94 = arith.addf %70, %93 : vector<8x128xf32>
    %95 = vector.extract_strided_slice %5 {offsets = [0, 4096], sizes = [8, 128], strides = [1, 1]} : vector<8x16384xf32> to vector<8x128xf32>
    %96 = math.exp %95 : vector<8x128xf32>
    %97 = arith.addf %73, %96 : vector<8x128xf32>
    %98 = vector.extract_strided_slice %5 {offsets = [0, 4224], sizes = [8, 128], strides = [1, 1]} : vector<8x16384xf32> to vector<8x128xf32>
    %99 = math.exp %98 : vector<8x128xf32>
    %100 = arith.addf %76, %99 : vector<8x128xf32>
    %101 = vector.extract_strided_slice %5 {offsets = [0, 4352], sizes = [8, 128], strides = [1, 1]} : vector<8x16384xf32> to vector<8x128xf32>
    %102 = math.exp %101 : vector<8x128xf32>
    %103 = arith.addf %79, %102 : vector<8x128xf32>
    %104 = vector.extract_strided_slice %5 {offsets = [0, 4480], sizes = [8, 128], strides = [1, 1]} : vector<8x16384xf32> to vector<8x128xf32>
    %105 = math.exp %104 : vector<8x128xf32>
    %106 = arith.addf %82, %105 : vector<8x128xf32>
    %107 = vector.extract_strided_slice %5 {offsets = [0, 4608], sizes = [8, 128], strides = [1, 1]} : vector<8x16384xf32> to vector<8x128xf32>
    %108 = math.exp %107 : vector<8x128xf32>
    %109 = arith.addf %85, %108 : vector<8x128xf32>
    %110 = vector.extract_strided_slice %5 {offsets = [0, 4736], sizes = [8, 128], strides = [1, 1]} : vector<8x16384xf32> to vector<8x128xf32>
    %111 = math.exp %110 : vector<8x128xf32>
    %112 = arith.addf %88, %111 : vector<8x128xf32>
    %113 = vector.extract_strided_slice %5 {offsets = [0, 4864], sizes = [8, 128], strides = [1, 1]} : vector<8x16384xf32> to vector<8x128xf32>
    %114 = math.exp %113 : vector<8x128xf32>
    %115 = arith.addf %91, %114 : vector<8x128xf32>
    %116 = vector.extract_strided_slice %5 {offsets = [0, 4992], sizes = [8, 128], strides = [1, 1]} : vector<8x16384xf32> to vector<8x128xf32>
    %117 = math.exp %116 : vector<8x128xf32>
    %118 = arith.addf %94, %117 : vector<8x128xf32>
    %119 = vector.extract_strided_slice %5 {offsets = [0, 5120], sizes = [8, 128], strides = [1, 1]} : vector<8x16384xf32> to vector<8x128xf32>
    %120 = math.exp %119 : vector<8x128xf32>
    %121 = arith.addf %97, %120 : vector<8x128xf32>
    %122 = vector.extract_strided_slice %5 {offsets = [0, 5248], sizes = [8, 128], strides = [1, 1]} : vector<8x16384xf32> to vector<8x128xf32>
    %123 = math.exp %122 : vector<8x128xf32>
    %124 = arith.addf %100, %123 : vector<8x128xf32>
    %125 = vector.extract_strided_slice %5 {offsets = [0, 5376], sizes = [8, 128], strides = [1, 1]} : vector<8x16384xf32> to vector<8x128xf32>
    %126 = math.exp %125 : vector<8x128xf32>
    %127 = arith.addf %103, %126 : vector<8x128xf32>
    %128 = vector.extract_strided_slice %5 {offsets = [0, 5504], sizes = [8, 128], strides = [1, 1]} : vector<8x16384xf32> to vector<8x128xf32>
    %129 = math.exp %128 : vector<8x128xf32>
    %130 = arith.addf %106, %129 : vector<8x128xf32>
    %131 = vector.extract_strided_slice %5 {offsets = [0, 5632], sizes = [8, 128], strides = [1, 1]} : vector<8x16384xf32> to vector<8x128xf32>
    %132 = math.exp %131 : vector<8x128xf32>
    %133 = arith.addf %109, %132 : vector<8x128xf32>
    %134 = vector.extract_strided_slice %5 {offsets = [0, 5760], sizes = [8, 128], strides = [1, 1]} : vector<8x16384xf32> to vector<8x128xf32>
    %135 = math.exp %134 : vector<8x128xf32>
    %136 = arith.addf %112, %135 : vector<8x128xf32>
    %137 = vector.extract_strided_slice %5 {offsets = [0, 5888], sizes = [8, 128], strides = [1, 1]} : vector<8x16384xf32> to vector<8x128xf32>
    %138 = math.exp %137 : vector<8x128xf32>
    %139 = arith.addf %115, %138 : vector<8x128xf32>
    %140 = vector.extract_strided_slice %5 {offsets = [0, 6016], sizes = [8, 128], strides = [1, 1]} : vector<8x16384xf32> to vector<8x128xf32>
    %141 = math.exp %140 : vector<8x128xf32>
    %142 = arith.addf %118, %141 : vector<8x128xf32>
    %143 = vector.extract_strided_slice %5 {offsets = [0, 6144], sizes = [8, 128], strides = [1, 1]} : vector<8x16384xf32> to vector<8x128xf32>
    %144 = math.exp %143 : vector<8x128xf32>
    %145 = arith.addf %121, %144 : vector<8x128xf32>
    %146 = vector.extract_strided_slice %5 {offsets = [0, 6272], sizes = [8, 128], strides = [1, 1]} : vector<8x16384xf32> to vector<8x128xf32>
    %147 = math.exp %146 : vector<8x128xf32>
    %148 = arith.addf %124, %147 : vector<8x128xf32>
    %149 = vector.extract_strided_slice %5 {offsets = [0, 6400], sizes = [8, 128], strides = [1, 1]} : vector<8x16384xf32> to vector<8x128xf32>
    %150 = math.exp %149 : vector<8x128xf32>
    %151 = arith.addf %127, %150 : vector<8x128xf32>
    %152 = vector.extract_strided_slice %5 {offsets = [0, 6528], sizes = [8, 128], strides = [1, 1]} : vector<8x16384xf32> to vector<8x128xf32>
    %153 = math.exp %152 : vector<8x128xf32>
    %154 = arith.addf %130, %153 : vector<8x128xf32>
    %155 = vector.extract_strided_slice %5 {offsets = [0, 6656], sizes = [8, 128], strides = [1, 1]} : vector<8x16384xf32> to vector<8x128xf32>
    %156 = math.exp %155 : vector<8x128xf32>
    %157 = arith.addf %133, %156 : vector<8x128xf32>
    %158 = vector.extract_strided_slice %5 {offsets = [0, 6784], sizes = [8, 128], strides = [1, 1]} : vector<8x16384xf32> to vector<8x128xf32>
    %159 = math.exp %158 : vector<8x128xf32>
    %160 = arith.addf %136, %159 : vector<8x128xf32>
    %161 = vector.extract_strided_slice %5 {offsets = [0, 6912], sizes = [8, 128], strides = [1, 1]} : vector<8x16384xf32> to vector<8x128xf32>
    %162 = math.exp %161 : vector<8x128xf32>
    %163 = arith.addf %139, %162 : vector<8x128xf32>
    %164 = vector.extract_strided_slice %5 {offsets = [0, 7040], sizes = [8, 128], strides = [1, 1]} : vector<8x16384xf32> to vector<8x128xf32>
    %165 = math.exp %164 : vector<8x128xf32>
    %166 = arith.addf %142, %165 : vector<8x128xf32>
    %167 = vector.extract_strided_slice %5 {offsets = [0, 7168], sizes = [8, 128], strides = [1, 1]} : vector<8x16384xf32> to vector<8x128xf32>
    %168 = math.exp %167 : vector<8x128xf32>
    %169 = arith.addf %145, %168 : vector<8x128xf32>
    %170 = vector.extract_strided_slice %5 {offsets = [0, 7296], sizes = [8, 128], strides = [1, 1]} : vector<8x16384xf32> to vector<8x128xf32>
    %171 = math.exp %170 : vector<8x128xf32>
    %172 = arith.addf %148, %171 : vector<8x128xf32>
    %173 = vector.extract_strided_slice %5 {offsets = [0, 7424], sizes = [8, 128], strides = [1, 1]} : vector<8x16384xf32> to vector<8x128xf32>
    %174 = math.exp %173 : vector<8x128xf32>
    %175 = arith.addf %151, %174 : vector<8x128xf32>
    %176 = vector.extract_strided_slice %5 {offsets = [0, 7552], sizes = [8, 128], strides = [1, 1]} : vector<8x16384xf32> to vector<8x128xf32>
    %177 = math.exp %176 : vector<8x128xf32>
    %178 = arith.addf %154, %177 : vector<8x128xf32>
    %179 = vector.extract_strided_slice %5 {offsets = [0, 7680], sizes = [8, 128], strides = [1, 1]} : vector<8x16384xf32> to vector<8x128xf32>
    %180 = math.exp %179 : vector<8x128xf32>
    %181 = arith.addf %157, %180 : vector<8x128xf32>
    %182 = vector.extract_strided_slice %5 {offsets = [0, 7808], sizes = [8, 128], strides = [1, 1]} : vector<8x16384xf32> to vector<8x128xf32>
    %183 = math.exp %182 : vector<8x128xf32>
    %184 = arith.addf %160, %183 : vector<8x128xf32>
    %185 = vector.extract_strided_slice %5 {offsets = [0, 7936], sizes = [8, 128], strides = [1, 1]} : vector<8x16384xf32> to vector<8x128xf32>
    %186 = math.exp %185 : vector<8x128xf32>
    %187 = arith.addf %163, %186 : vector<8x128xf32>
    %188 = vector.extract_strided_slice %5 {offsets = [0, 8064], sizes = [8, 128], strides = [1, 1]} : vector<8x16384xf32> to vector<8x128xf32>
    %189 = math.exp %188 : vector<8x128xf32>
    %190 = arith.addf %166, %189 : vector<8x128xf32>
    %191 = vector.extract_strided_slice %5 {offsets = [0, 8192], sizes = [8, 128], strides = [1, 1]} : vector<8x16384xf32> to vector<8x128xf32>
    %192 = math.exp %191 : vector<8x128xf32>
    %193 = arith.addf %169, %192 : vector<8x128xf32>
    %194 = vector.extract_strided_slice %5 {offsets = [0, 8320], sizes = [8, 128], strides = [1, 1]} : vector<8x16384xf32> to vector<8x128xf32>
    %195 = math.exp %194 : vector<8x128xf32>
    %196 = arith.addf %172, %195 : vector<8x128xf32>
    %197 = vector.extract_strided_slice %5 {offsets = [0, 8448], sizes = [8, 128], strides = [1, 1]} : vector<8x16384xf32> to vector<8x128xf32>
    %198 = math.exp %197 : vector<8x128xf32>
    %199 = arith.addf %175, %198 : vector<8x128xf32>
    %200 = vector.extract_strided_slice %5 {offsets = [0, 8576], sizes = [8, 128], strides = [1, 1]} : vector<8x16384xf32> to vector<8x128xf32>
    %201 = math.exp %200 : vector<8x128xf32>
    %202 = arith.addf %178, %201 : vector<8x128xf32>
    %203 = vector.extract_strided_slice %5 {offsets = [0, 8704], sizes = [8, 128], strides = [1, 1]} : vector<8x16384xf32> to vector<8x128xf32>
    %204 = math.exp %203 : vector<8x128xf32>
    %205 = arith.addf %181, %204 : vector<8x128xf32>
    %206 = vector.extract_strided_slice %5 {offsets = [0, 8832], sizes = [8, 128], strides = [1, 1]} : vector<8x16384xf32> to vector<8x128xf32>
    %207 = math.exp %206 : vector<8x128xf32>
    %208 = arith.addf %184, %207 : vector<8x128xf32>
    %209 = vector.extract_strided_slice %5 {offsets = [0, 8960], sizes = [8, 128], strides = [1, 1]} : vector<8x16384xf32> to vector<8x128xf32>
    %210 = math.exp %209 : vector<8x128xf32>
    %211 = arith.addf %187, %210 : vector<8x128xf32>
    %212 = vector.extract_strided_slice %5 {offsets = [0, 9088], sizes = [8, 128], strides = [1, 1]} : vector<8x16384xf32> to vector<8x128xf32>
    %213 = math.exp %212 : vector<8x128xf32>
    %214 = arith.addf %190, %213 : vector<8x128xf32>
    %215 = vector.extract_strided_slice %5 {offsets = [0, 9216], sizes = [8, 128], strides = [1, 1]} : vector<8x16384xf32> to vector<8x128xf32>
    %216 = math.exp %215 : vector<8x128xf32>
    %217 = arith.addf %193, %216 : vector<8x128xf32>
    %218 = vector.extract_strided_slice %5 {offsets = [0, 9344], sizes = [8, 128], strides = [1, 1]} : vector<8x16384xf32> to vector<8x128xf32>
    %219 = math.exp %218 : vector<8x128xf32>
    %220 = arith.addf %196, %219 : vector<8x128xf32>
    %221 = vector.extract_strided_slice %5 {offsets = [0, 9472], sizes = [8, 128], strides = [1, 1]} : vector<8x16384xf32> to vector<8x128xf32>
    %222 = math.exp %221 : vector<8x128xf32>
    %223 = arith.addf %199, %222 : vector<8x128xf32>
    %224 = vector.extract_strided_slice %5 {offsets = [0, 9600], sizes = [8, 128], strides = [1, 1]} : vector<8x16384xf32> to vector<8x128xf32>
    %225 = math.exp %224 : vector<8x128xf32>
    %226 = arith.addf %202, %225 : vector<8x128xf32>
    %227 = vector.extract_strided_slice %5 {offsets = [0, 9728], sizes = [8, 128], strides = [1, 1]} : vector<8x16384xf32> to vector<8x128xf32>
    %228 = math.exp %227 : vector<8x128xf32>
    %229 = arith.addf %205, %228 : vector<8x128xf32>
    %230 = vector.extract_strided_slice %5 {offsets = [0, 9856], sizes = [8, 128], strides = [1, 1]} : vector<8x16384xf32> to vector<8x128xf32>
    %231 = math.exp %230 : vector<8x128xf32>
    %232 = arith.addf %208, %231 : vector<8x128xf32>
    %233 = vector.extract_strided_slice %5 {offsets = [0, 9984], sizes = [8, 128], strides = [1, 1]} : vector<8x16384xf32> to vector<8x128xf32>
    %234 = math.exp %233 : vector<8x128xf32>
    %235 = arith.addf %211, %234 : vector<8x128xf32>
    %236 = vector.extract_strided_slice %5 {offsets = [0, 10112], sizes = [8, 128], strides = [1, 1]} : vector<8x16384xf32> to vector<8x128xf32>
    %237 = math.exp %236 : vector<8x128xf32>
    %238 = arith.addf %214, %237 : vector<8x128xf32>
    %239 = vector.extract_strided_slice %5 {offsets = [0, 10240], sizes = [8, 128], strides = [1, 1]} : vector<8x16384xf32> to vector<8x128xf32>
    %240 = math.exp %239 : vector<8x128xf32>
    %241 = arith.addf %217, %240 : vector<8x128xf32>
    %242 = vector.extract_strided_slice %5 {offsets = [0, 10368], sizes = [8, 128], strides = [1, 1]} : vector<8x16384xf32> to vector<8x128xf32>
    %243 = math.exp %242 : vector<8x128xf32>
    %244 = arith.addf %220, %243 : vector<8x128xf32>
    %245 = vector.extract_strided_slice %5 {offsets = [0, 10496], sizes = [8, 128], strides = [1, 1]} : vector<8x16384xf32> to vector<8x128xf32>
    %246 = math.exp %245 : vector<8x128xf32>
    %247 = arith.addf %223, %246 : vector<8x128xf32>
    %248 = vector.extract_strided_slice %5 {offsets = [0, 10624], sizes = [8, 128], strides = [1, 1]} : vector<8x16384xf32> to vector<8x128xf32>
    %249 = math.exp %248 : vector<8x128xf32>
    %250 = arith.addf %226, %249 : vector<8x128xf32>
    %251 = vector.extract_strided_slice %5 {offsets = [0, 10752], sizes = [8, 128], strides = [1, 1]} : vector<8x16384xf32> to vector<8x128xf32>
    %252 = math.exp %251 : vector<8x128xf32>
    %253 = arith.addf %229, %252 : vector<8x128xf32>
    %254 = vector.extract_strided_slice %5 {offsets = [0, 10880], sizes = [8, 128], strides = [1, 1]} : vector<8x16384xf32> to vector<8x128xf32>
    %255 = math.exp %254 : vector<8x128xf32>
    %256 = arith.addf %232, %255 : vector<8x128xf32>
    %257 = vector.extract_strided_slice %5 {offsets = [0, 11008], sizes = [8, 128], strides = [1, 1]} : vector<8x16384xf32> to vector<8x128xf32>
    %258 = math.exp %257 : vector<8x128xf32>
    %259 = arith.addf %235, %258 : vector<8x128xf32>
    %260 = vector.extract_strided_slice %5 {offsets = [0, 11136], sizes = [8, 128], strides = [1, 1]} : vector<8x16384xf32> to vector<8x128xf32>
    %261 = math.exp %260 : vector<8x128xf32>
    %262 = arith.addf %238, %261 : vector<8x128xf32>
    %263 = vector.extract_strided_slice %5 {offsets = [0, 11264], sizes = [8, 128], strides = [1, 1]} : vector<8x16384xf32> to vector<8x128xf32>
    %264 = math.exp %263 : vector<8x128xf32>
    %265 = arith.addf %241, %264 : vector<8x128xf32>
    %266 = vector.extract_strided_slice %5 {offsets = [0, 11392], sizes = [8, 128], strides = [1, 1]} : vector<8x16384xf32> to vector<8x128xf32>
    %267 = math.exp %266 : vector<8x128xf32>
    %268 = arith.addf %244, %267 : vector<8x128xf32>
    %269 = vector.extract_strided_slice %5 {offsets = [0, 11520], sizes = [8, 128], strides = [1, 1]} : vector<8x16384xf32> to vector<8x128xf32>
    %270 = math.exp %269 : vector<8x128xf32>
    %271 = arith.addf %247, %270 : vector<8x128xf32>
    %272 = vector.extract_strided_slice %5 {offsets = [0, 11648], sizes = [8, 128], strides = [1, 1]} : vector<8x16384xf32> to vector<8x128xf32>
    %273 = math.exp %272 : vector<8x128xf32>
    %274 = arith.addf %250, %273 : vector<8x128xf32>
    %275 = vector.extract_strided_slice %5 {offsets = [0, 11776], sizes = [8, 128], strides = [1, 1]} : vector<8x16384xf32> to vector<8x128xf32>
    %276 = math.exp %275 : vector<8x128xf32>
    %277 = arith.addf %253, %276 : vector<8x128xf32>
    %278 = vector.extract_strided_slice %5 {offsets = [0, 11904], sizes = [8, 128], strides = [1, 1]} : vector<8x16384xf32> to vector<8x128xf32>
    %279 = math.exp %278 : vector<8x128xf32>
    %280 = arith.addf %256, %279 : vector<8x128xf32>
    %281 = vector.extract_strided_slice %5 {offsets = [0, 12032], sizes = [8, 128], strides = [1, 1]} : vector<8x16384xf32> to vector<8x128xf32>
    %282 = math.exp %281 : vector<8x128xf32>
    %283 = arith.addf %259, %282 : vector<8x128xf32>
    %284 = vector.extract_strided_slice %5 {offsets = [0, 12160], sizes = [8, 128], strides = [1, 1]} : vector<8x16384xf32> to vector<8x128xf32>
    %285 = math.exp %284 : vector<8x128xf32>
    %286 = arith.addf %262, %285 : vector<8x128xf32>
    %287 = vector.extract_strided_slice %5 {offsets = [0, 12288], sizes = [8, 128], strides = [1, 1]} : vector<8x16384xf32> to vector<8x128xf32>
    %288 = math.exp %287 : vector<8x128xf32>
    %289 = arith.addf %265, %288 : vector<8x128xf32>
    %290 = vector.extract_strided_slice %5 {offsets = [0, 12416], sizes = [8, 128], strides = [1, 1]} : vector<8x16384xf32> to vector<8x128xf32>
    %291 = math.exp %290 : vector<8x128xf32>
    %292 = arith.addf %268, %291 : vector<8x128xf32>
    %293 = vector.extract_strided_slice %5 {offsets = [0, 12544], sizes = [8, 128], strides = [1, 1]} : vector<8x16384xf32> to vector<8x128xf32>
    %294 = math.exp %293 : vector<8x128xf32>
    %295 = arith.addf %271, %294 : vector<8x128xf32>
    %296 = vector.extract_strided_slice %5 {offsets = [0, 12672], sizes = [8, 128], strides = [1, 1]} : vector<8x16384xf32> to vector<8x128xf32>
    %297 = math.exp %296 : vector<8x128xf32>
    %298 = arith.addf %274, %297 : vector<8x128xf32>
    %299 = vector.extract_strided_slice %5 {offsets = [0, 12800], sizes = [8, 128], strides = [1, 1]} : vector<8x16384xf32> to vector<8x128xf32>
    %300 = math.exp %299 : vector<8x128xf32>
    %301 = arith.addf %277, %300 : vector<8x128xf32>
    %302 = vector.extract_strided_slice %5 {offsets = [0, 12928], sizes = [8, 128], strides = [1, 1]} : vector<8x16384xf32> to vector<8x128xf32>
    %303 = math.exp %302 : vector<8x128xf32>
    %304 = arith.addf %280, %303 : vector<8x128xf32>
    %305 = vector.extract_strided_slice %5 {offsets = [0, 13056], sizes = [8, 128], strides = [1, 1]} : vector<8x16384xf32> to vector<8x128xf32>
    %306 = math.exp %305 : vector<8x128xf32>
    %307 = arith.addf %283, %306 : vector<8x128xf32>
    %308 = vector.extract_strided_slice %5 {offsets = [0, 13184], sizes = [8, 128], strides = [1, 1]} : vector<8x16384xf32> to vector<8x128xf32>
    %309 = math.exp %308 : vector<8x128xf32>
    %310 = arith.addf %286, %309 : vector<8x128xf32>
    %311 = vector.extract_strided_slice %5 {offsets = [0, 13312], sizes = [8, 128], strides = [1, 1]} : vector<8x16384xf32> to vector<8x128xf32>
    %312 = math.exp %311 : vector<8x128xf32>
    %313 = arith.addf %289, %312 : vector<8x128xf32>
    %314 = vector.extract_strided_slice %5 {offsets = [0, 13440], sizes = [8, 128], strides = [1, 1]} : vector<8x16384xf32> to vector<8x128xf32>
    %315 = math.exp %314 : vector<8x128xf32>
    %316 = arith.addf %292, %315 : vector<8x128xf32>
    %317 = vector.extract_strided_slice %5 {offsets = [0, 13568], sizes = [8, 128], strides = [1, 1]} : vector<8x16384xf32> to vector<8x128xf32>
    %318 = math.exp %317 : vector<8x128xf32>
    %319 = arith.addf %295, %318 : vector<8x128xf32>
    %320 = vector.extract_strided_slice %5 {offsets = [0, 13696], sizes = [8, 128], strides = [1, 1]} : vector<8x16384xf32> to vector<8x128xf32>
    %321 = math.exp %320 : vector<8x128xf32>
    %322 = arith.addf %298, %321 : vector<8x128xf32>
    %323 = vector.extract_strided_slice %5 {offsets = [0, 13824], sizes = [8, 128], strides = [1, 1]} : vector<8x16384xf32> to vector<8x128xf32>
    %324 = math.exp %323 : vector<8x128xf32>
    %325 = arith.addf %301, %324 : vector<8x128xf32>
    %326 = vector.extract_strided_slice %5 {offsets = [0, 13952], sizes = [8, 128], strides = [1, 1]} : vector<8x16384xf32> to vector<8x128xf32>
    %327 = math.exp %326 : vector<8x128xf32>
    %328 = arith.addf %304, %327 : vector<8x128xf32>
    %329 = vector.extract_strided_slice %5 {offsets = [0, 14080], sizes = [8, 128], strides = [1, 1]} : vector<8x16384xf32> to vector<8x128xf32>
    %330 = math.exp %329 : vector<8x128xf32>
    %331 = arith.addf %307, %330 : vector<8x128xf32>
    %332 = vector.extract_strided_slice %5 {offsets = [0, 14208], sizes = [8, 128], strides = [1, 1]} : vector<8x16384xf32> to vector<8x128xf32>
    %333 = math.exp %332 : vector<8x128xf32>
    %334 = arith.addf %310, %333 : vector<8x128xf32>
    %335 = vector.extract_strided_slice %5 {offsets = [0, 14336], sizes = [8, 128], strides = [1, 1]} : vector<8x16384xf32> to vector<8x128xf32>
    %336 = math.exp %335 : vector<8x128xf32>
    %337 = arith.addf %313, %336 : vector<8x128xf32>
    %338 = vector.extract_strided_slice %5 {offsets = [0, 14464], sizes = [8, 128], strides = [1, 1]} : vector<8x16384xf32> to vector<8x128xf32>
    %339 = math.exp %338 : vector<8x128xf32>
    %340 = arith.addf %316, %339 : vector<8x128xf32>
    %341 = vector.extract_strided_slice %5 {offsets = [0, 14592], sizes = [8, 128], strides = [1, 1]} : vector<8x16384xf32> to vector<8x128xf32>
    %342 = math.exp %341 : vector<8x128xf32>
    %343 = arith.addf %319, %342 : vector<8x128xf32>
    %344 = vector.extract_strided_slice %5 {offsets = [0, 14720], sizes = [8, 128], strides = [1, 1]} : vector<8x16384xf32> to vector<8x128xf32>
    %345 = math.exp %344 : vector<8x128xf32>
    %346 = arith.addf %322, %345 : vector<8x128xf32>
    %347 = vector.extract_strided_slice %5 {offsets = [0, 14848], sizes = [8, 128], strides = [1, 1]} : vector<8x16384xf32> to vector<8x128xf32>
    %348 = math.exp %347 : vector<8x128xf32>
    %349 = arith.addf %325, %348 : vector<8x128xf32>
    %350 = vector.extract_strided_slice %5 {offsets = [0, 14976], sizes = [8, 128], strides = [1, 1]} : vector<8x16384xf32> to vector<8x128xf32>
    %351 = math.exp %350 : vector<8x128xf32>
    %352 = arith.addf %328, %351 : vector<8x128xf32>
    %353 = vector.extract_strided_slice %5 {offsets = [0, 15104], sizes = [8, 128], strides = [1, 1]} : vector<8x16384xf32> to vector<8x128xf32>
    %354 = math.exp %353 : vector<8x128xf32>
    %355 = arith.addf %331, %354 : vector<8x128xf32>
    %356 = vector.extract_strided_slice %5 {offsets = [0, 15232], sizes = [8, 128], strides = [1, 1]} : vector<8x16384xf32> to vector<8x128xf32>
    %357 = math.exp %356 : vector<8x128xf32>
    %358 = arith.addf %334, %357 : vector<8x128xf32>
    %359 = vector.extract_strided_slice %5 {offsets = [0, 15360], sizes = [8, 128], strides = [1, 1]} : vector<8x16384xf32> to vector<8x128xf32>
    %360 = math.exp %359 : vector<8x128xf32>
    %361 = arith.addf %337, %360 : vector<8x128xf32>
    %362 = vector.extract_strided_slice %5 {offsets = [0, 15488], sizes = [8, 128], strides = [1, 1]} : vector<8x16384xf32> to vector<8x128xf32>
    %363 = math.exp %362 : vector<8x128xf32>
    %364 = arith.addf %340, %363 : vector<8x128xf32>
    %365 = vector.extract_strided_slice %5 {offsets = [0, 15616], sizes = [8, 128], strides = [1, 1]} : vector<8x16384xf32> to vector<8x128xf32>
    %366 = math.exp %365 : vector<8x128xf32>
    %367 = arith.addf %343, %366 : vector<8x128xf32>
    %368 = vector.extract_strided_slice %5 {offsets = [0, 15744], sizes = [8, 128], strides = [1, 1]} : vector<8x16384xf32> to vector<8x128xf32>
    %369 = math.exp %368 : vector<8x128xf32>
    %370 = arith.addf %346, %369 : vector<8x128xf32>
    %371 = vector.extract_strided_slice %5 {offsets = [0, 15872], sizes = [8, 128], strides = [1, 1]} : vector<8x16384xf32> to vector<8x128xf32>
    %372 = math.exp %371 : vector<8x128xf32>
    %373 = arith.addf %349, %372 : vector<8x128xf32>
    %374 = vector.extract_strided_slice %5 {offsets = [0, 16000], sizes = [8, 128], strides = [1, 1]} : vector<8x16384xf32> to vector<8x128xf32>
    %375 = math.exp %374 : vector<8x128xf32>
    %376 = arith.addf %352, %375 : vector<8x128xf32>
    %377 = vector.extract_strided_slice %5 {offsets = [0, 16128], sizes = [8, 128], strides = [1, 1]} : vector<8x16384xf32> to vector<8x128xf32>
    %378 = math.exp %377 : vector<8x128xf32>
    %379 = arith.addf %355, %378 : vector<8x128xf32>
    %380 = vector.extract_strided_slice %5 {offsets = [0, 16256], sizes = [8, 128], strides = [1, 1]} : vector<8x16384xf32> to vector<8x128xf32>
    %381 = math.exp %380 : vector<8x128xf32>
    %382 = arith.addf %358, %381 : vector<8x128xf32>
    %383 = arith.addf %361, %364 : vector<8x128xf32>
    %384 = arith.addf %367, %370 : vector<8x128xf32>
    %385 = arith.addf %373, %376 : vector<8x128xf32>
    %386 = arith.addf %379, %382 : vector<8x128xf32>
    %387 = arith.addf %383, %384 : vector<8x128xf32>
    %388 = arith.addf %385, %386 : vector<8x128xf32>
    %389 = arith.addf %387, %388 : vector<8x128xf32>
    %390 = arith.addf %6, %389 : vector<8x128xf32>
    %c0_6 = arith.constant 0 : index
    %c0_7 = arith.constant 0 : index
    %391 = vector.load %arg6[%c0_6, %c0_7] : memref<8x128xf32, #tpu.memory_space<vmem>>, vector<8x128xf32>
    tpu.vector_store %arg6[%c0_6, %c0_7], %390 {strides = array<i32>} : memref<8x128xf32, #tpu.memory_space<vmem>>, vector<8x128xf32>,
    %c1_i32 = arith.constant 1 : i32
    %392 = arith.cmpi eq, %arg1, %c1_i32 : i32
    %393 = arith.extui %392 : i1 to i32
    %c0_i32_8 = arith.constant 0 : i32
    %394 = arith.cmpi ne, %393, %c0_i32_8 : i32
    scf.if %394 {
      %c0_9 = arith.constant 0 : index
      %c0_10 = arith.constant 0 : index
      %395 = vector.load %arg6[%c0_9, %c0_10] : memref<8x128xf32, #tpu.memory_space<vmem>>, vector<8x128xf32>
      %c0_11 = arith.constant 0 : index
      %c0_12 = arith.constant 0 : index
      %c0_13 = arith.constant 0 : index
      %396 = vector.load %arg4[%c0_11, %c0_12, %c0_13] : memref<1x8x128xf32, #tpu.memory_space<vmem>>, vector<1x8x128xf32>
      %397 = vector.shape_cast %396 : vector<1x8x128xf32> to vector<8x128xf32>
      %398 = vector.shape_cast %395 : vector<8x128xf32> to vector<1x8x128xf32>
      tpu.vector_store %arg4[%c0_11, %c0_12, %c0_13], %398 {strides = array<i32>} : memref<1x8x128xf32, #tpu.memory_space<vmem>>, vector<1x8x128xf32>,
      %c0_14 = arith.constant 0 : index
      %c0_15 = arith.constant 0 : index
      %399 = vector.load %arg7[%c0_14, %c0_15] : memref<8x1xf32, #tpu.memory_space<vmem>>, vector<8x1xf32>
      %400 = vector.shape_cast %399 : vector<8x1xf32> to vector<8x1xf32>
      %401 = vector.broadcast %400 : vector<8x1xf32> to vector<8x128xf32>
      %c0_16 = arith.constant 0 : index
      %c0_17 = arith.constant 0 : index
      %c0_18 = arith.constant 0 : index
      %402 = vector.load %arg5[%c0_16, %c0_17, %c0_18] : memref<1x8x128xf32, #tpu.memory_space<vmem>>, vector<1x8x128xf32>
      %403 = vector.shape_cast %402 : vector<1x8x128xf32> to vector<8x128xf32>
      %404 = vector.shape_cast %401 : vector<8x128xf32> to vector<1x8x128xf32>
      tpu.vector_store %arg5[%c0_16, %c0_17, %c0_18], %404 {strides = array<i32>} : memref<1x8x128xf32, #tpu.memory_space<vmem>>, vector<1x8x128xf32>,
    } else {
    }
    return
  }
  func.func @transform_0(%arg0: i32, %arg1: i32) -> (i32, i32) {
    %c0_i32 = arith.constant 0 : i32
    %c0_i32_0 = arith.constant 0 : i32
    %c0_i32_1 = arith.constant 0 : i32
    return %c0_i32, %c0_i32_0 : i32, i32
  }
  func.func @transform_1(%arg0: i32, %arg1: i32) -> (i32, i32) {
    %c2_i32 = arith.constant 2 : i32
    %0 = arith.muli %arg0, %c2_i32 : i32
    %1 = arith.addi %0, %arg1 : i32
    %c0_i32 = arith.constant 0 : i32
    %c0_i32_0 = arith.constant 0 : i32
    return %c0_i32, %1 : i32, i32
  }
  func.func @transform_2(%arg0: i32, %arg1: i32) -> (i32, i32, i32) {
    %c0_i32 = arith.constant 0 : i32
    %c0_i32_0 = arith.constant 0 : i32
    %c0_i32_1 = arith.constant 0 : i32
    return %arg0, %c0_i32, %c0_i32_0 : i32, i32, i32
  }
  func.func @transform_3(%arg0: i32, %arg1: i32) -> (i32, i32, i32) {
    %c0_i32 = arith.constant 0 : i32
    %c0_i32_0 = arith.constant 0 : i32
    %c0_i32_1 = arith.constant 0 : i32
    return %arg0, %c0_i32, %c0_i32_0 : i32, i32, i32
  }
}

module attributes {stable_mosaic.version = 11 : i64} {
  func.func @_encoder_kernel(%arg0: memref<8x16xf32, #tpu.memory_space<vmem>>, %arg1: memref<16x64xf32, #tpu.memory_space<vmem>>, %arg2: memref<1x64xf32, #tpu.memory_space<vmem>>, %arg3: memref<64x64xf32, #tpu.memory_space<vmem>>, %arg4: memref<1x64xf32, #tpu.memory_space<vmem>>, %arg5: memref<64x32xf32, #tpu.memory_space<vmem>>, %arg6: memref<1x32xf32, #tpu.memory_space<vmem>>, %arg7: memref<8x32xf32, #tpu.memory_space<vmem>>) attributes {dimension_semantics = [], scalar_prefetch = 0 : i64, scratch_operands = 0 : i64, tpu.core_type = #tpu.core_type<tc>} {
    %c0 = arith.constant 0 : index
    %c0_0 = arith.constant 0 : index
    %0 = vector.load %arg0[%c0, %c0_0] : memref<8x16xf32, #tpu.memory_space<vmem>>, vector<8x16xf32>
    %c0_1 = arith.constant 0 : index
    %c0_2 = arith.constant 0 : index
    %1 = vector.load %arg1[%c0_1, %c0_2] : memref<16x64xf32, #tpu.memory_space<vmem>>, vector<16x64xf32>
    %cst = arith.constant dense<0.000000e+00> : vector<8x64xf32>
    %2 = tpu.matmul %0, %1, %cst {dimension_numbers = #tpu.dot_dimension_numbers<[1], [0], [0], [1], [0, 0, 1, 1], [], []>} : vector<8x16xf32>, vector<16x64xf32>, vector<8x64xf32> -> vector<8x64xf32>
    %c0_3 = arith.constant 0 : index
    %c0_4 = arith.constant 0 : index
    %3 = vector.load %arg2[%c0_3, %c0_4] : memref<1x64xf32, #tpu.memory_space<vmem>>, vector<1x64xf32>
    %4 = vector.broadcast %3 : vector<1x64xf32> to vector<8x64xf32>
    %5 = arith.addf %2, %4 : vector<8x64xf32>
    %6 = math.tanh %5 : vector<8x64xf32>
    %c0_5 = arith.constant 0 : index
    %c0_6 = arith.constant 0 : index
    %7 = vector.load %arg3[%c0_5, %c0_6] : memref<64x64xf32, #tpu.memory_space<vmem>>, vector<64x64xf32>
    %cst_7 = arith.constant dense<0.000000e+00> : vector<8x64xf32>
    %8 = tpu.matmul %6, %7, %cst_7 {dimension_numbers = #tpu.dot_dimension_numbers<[1], [0], [0], [1], [0, 0, 1, 1], [], []>} : vector<8x64xf32>, vector<64x64xf32>, vector<8x64xf32> -> vector<8x64xf32>
    %c0_8 = arith.constant 0 : index
    %c0_9 = arith.constant 0 : index
    %9 = vector.load %arg4[%c0_8, %c0_9] : memref<1x64xf32, #tpu.memory_space<vmem>>, vector<1x64xf32>
    %10 = vector.broadcast %9 : vector<1x64xf32> to vector<8x64xf32>
    %11 = arith.addf %8, %10 : vector<8x64xf32>
    %12 = math.tanh %11 : vector<8x64xf32>
    %c0_10 = arith.constant 0 : index
    %c0_11 = arith.constant 0 : index
    %13 = vector.load %arg5[%c0_10, %c0_11] : memref<64x32xf32, #tpu.memory_space<vmem>>, vector<64x32xf32>
    %cst_12 = arith.constant dense<0.000000e+00> : vector<8x32xf32>
    %14 = tpu.matmul %12, %13, %cst_12 {dimension_numbers = #tpu.dot_dimension_numbers<[1], [0], [0], [1], [0, 0, 1, 1], [], []>} : vector<8x64xf32>, vector<64x32xf32>, vector<8x32xf32> -> vector<8x32xf32>
    %c0_13 = arith.constant 0 : index
    %c0_14 = arith.constant 0 : index
    %15 = vector.load %arg6[%c0_13, %c0_14] : memref<1x32xf32, #tpu.memory_space<vmem>>, vector<1x32xf32>
    %16 = vector.broadcast %15 : vector<1x32xf32> to vector<8x32xf32>
    %17 = arith.addf %14, %16 : vector<8x32xf32>
    %18 = arith.mulf %17, %17 : vector<8x32xf32>
    %cst_15 = arith.constant dense<0.000000e+00> : vector<8xf32>
    %19 = vector.multi_reduction <add>, %18, %cst_15 [1] : vector<8x32xf32> to vector<8xf32>
    %20 = vector.shape_cast %19 : vector<8xf32> to vector<8x1xf32>
    %21 = math.sqrt %20 : vector<8x1xf32>
    %cst_16 = arith.constant 9.99999996E-13 : f32
    %22 = vector.broadcast %cst_16 : f32 to vector<8x1xf32>
    %23 = arith.maximumf %21, %22 : vector<8x1xf32>
    %24 = vector.broadcast %23 : vector<8x1xf32> to vector<8x32xf32>
    %25 = arith.divf %17, %24 : vector<8x32xf32>
    %cst_17 = arith.constant 5.000000e+00 : f32
    %26 = vector.broadcast %cst_17 : f32 to vector<8x32xf32>
    %27 = arith.mulf %25, %26 : vector<8x32xf32>
    %c0_18 = arith.constant 0 : index
    %c0_19 = arith.constant 0 : index
    %28 = vector.load %arg7[%c0_18, %c0_19] : memref<8x32xf32, #tpu.memory_space<vmem>>, vector<8x32xf32>
    tpu.vector_store %arg7[%c0_18, %c0_19], %27 {strides = array<i32>} : memref<8x32xf32, #tpu.memory_space<vmem>>, vector<8x32xf32>,
    return
  }
}

</mosaic_0001>

<bundles_post_ra>
// kernel: contrastive_queue_forward.2
= control target key start
LH: loop header
LB: loop body
LE: loop exit
PB: predicated region body
PF: predicated region fallthrough
CT: control target
= control target key end

     0   :  { %12 = vsyncpa [#allocation3], 0  ;;  %s803_s0 = inlined_call_operand.hbm [shape: f32[8,16], index: 0, kind: input, shape index: {}]   ;;  %s804_s1 = inlined_call_operand.hbm [shape: f32[16,64], index: 1, kind: input, shape index: {}]   ;;  %s805_s2 = inlined_call_operand.hbm [shape: f32[1,64], index: 2, kind: input, shape index: {}]   ;;  %s806_s3 = inlined_call_operand.hbm [shape: f32[64,64], index: 3, kind: input, shape index: {}]   ;;  %s807_s4 = inlined_call_operand.hbm [shape: f32[1,64], index: 4, kind: input, shape index: {}]   ;;  %s808_s5 = inlined_call_operand.vmem [shape: f32[64,32], index: 5, kind: input, shape index: {}]   ;;  %s809_s6 = inlined_call_operand.hbm [shape: f32[1,32], index: 6, kind: input, shape index: {}]   ;;  %s810_s7 = inlined_call_operand.vmem [shape: f32[8,32], index: 7, kind: output, shape index: {}]  }
   0x1   :  { %13 = vsyncpa [#allocation5], 0 }
   0x2   :  { %14 = vsyncpa [#allocation8], 0 }
   0x3   :  { %15 = vsyncpa [#allocation11], 0  ;;  %s646_s24 = smov [#allocation4]   ;;  %s506_s28 = scalar_lea.hbm %s804_s1, 256 }
   0x4   :  { %s31_s25 = sshll.u32 %s646_s24, 4  ;;  %p507_p0 = scmp.ne.s32.totalorder %s804_s1, %s506_s28  ;;  %s32_s25 = int_to_ptr.vmem [resolvable:$true] %s31_s25 }
   0x5   :  { %p510_p1 = scmp.lt.u32.totalorder %s506_s28, %s804_s1 }
   0x7   :  { %p512_p2 = pnand %p510_p1, %p507_p0 }
   0x9   :  { %515 = shalt.err (!%p512_p2)
}
   0xa   :  { %s516_s10 = scalar_lea.vmem %s32_s25, 256  ;;  %p521_p4 = scmp.lt.s32.totalorder %s32_s25, %s32_s25 }
   0xb   :  { %p517_p3 = scmp.ne.s32.totalorder %s32_s25, %s516_s10  ;;  %p522_p5 = scmp.lt.s32.totalorder %s516_s10, %s516_s10 }
   0xd   :  { %p523_p6 = por %p522_p5, %p521_p4 }
   0xf   :  { %p524_p7 = pnand %p523_p6, %p517_p3 }
  0x11   :  { %527 = shalt.err (!%p524_p7)
}
  0x12   :  { %s647_s11 = smov 128   ;;  %s648_s12 = smov 8  }
  0x13   :  { %37 = dma.hbm_to_vmem [thread:$0]  %s804_s1, 256, %s32_s25, [#allocation5], %s647_s11, %s647_s11, %s648_s12  }
  0x14   :  { %s649_s15 = smov [#allocation7]   ;;  %s650_s17 = smov [#allocation2]  }
  0x15   :  { %s53_s16 = sshll.u32 %s649_s15, 4  ;;  %s22_s18 = sshll.u32 %s650_s17, 4  ;;  %s54_s16 = int_to_ptr.vmem [resolvable:$true] %s53_s16  ;;  %s23_s18 = int_to_ptr.vmem [resolvable:$true] %s22_s18 }
  0x16   :  { %s528_s21 = scalar_lea.hbm %s806_s3, 1024 }
  0x17   :  { %p529_p8 = scmp.ne.s32.totalorder %s806_s3, %s528_s21  ;;  %p532_p9 = scmp.lt.u32.totalorder %s528_s21, %s806_s3 }
  0x19   :  { %p534_p10 = pnand %p532_p9, %p529_p8 }
  0x1b   :  { %537 = shalt.err (!%p534_p10)
}
  0x1c   :  { %s538_s1 = scalar_lea.vmem %s54_s16, 1024  ;;  %p543_p12 = scmp.lt.s32.totalorder %s54_s16, %s54_s16 }
  0x1d   :  { %p539_p11 = scmp.ne.s32.totalorder %s54_s16, %s538_s1  ;;  %p544_p13 = scmp.lt.s32.totalorder %s538_s1, %s538_s1 }
  0x1f   :  { %p545_p0 = por %p544_p13, %p543_p12 }
  0x21   :  { %p546_p1 = pnand %p545_p0, %p539_p11 }
  0x23   :  { %549 = shalt.err (!%p546_p1)
}
  0x24   :  { %59 = dma.hbm_to_vmem [thread:$0]  %s806_s3, 1024, %s54_s16, [#allocation8], %s647_s11, %s647_s11, %s648_s12  }
  0x25   :  { %s550_s30 = scalar_lea.hbm %s803_s0, 128 }
  0x26   :  { %p551_p2 = scmp.ne.s32.totalorder %s803_s0, %s550_s30  ;;  %p554_p3 = scmp.lt.u32.totalorder %s550_s30, %s803_s0 }
  0x28   :  { %p556_p4 = pnand %p554_p3, %p551_p2 }
  0x2a   :  { %559 = shalt.err (!%p556_p4)
}
  0x2b   :  { %s560_s14 = scalar_lea.vmem %s23_s18, 128  ;;  %p565_p6 = scmp.lt.s32.totalorder %s23_s18, %s23_s18 }
  0x2c   :  { %p561_p5 = scmp.ne.s32.totalorder %s23_s18, %s560_s14  ;;  %p566_p7 = scmp.lt.s32.totalorder %s560_s14, %s560_s14 }
  0x2e   :  { %p567_p8 = por %p566_p7, %p565_p6 }
  0x30   :  { %p568_p9 = pnand %p567_p8, %p561_p5 }
  0x32   :  { %571 = shalt.err (!%p568_p9)
}
  0x33   :  { %25 = dma.hbm_to_vmem [thread:$0]  %s803_s0, 128, %s23_s18, [#allocation3]  }
  0x34   :  { %s651_s12 = smov [#allocation6]   ;;  %s652_s16 = smov [#allocation9]  }
  0x35   :  { %s44_s15 = sshll.u32 %s651_s12, 4  ;;  %s66_s17 = sshll.u32 %s652_s16, 4  ;;  %s45_s15 = int_to_ptr.vmem [resolvable:$true] %s44_s15  ;;  %s67_s17 = int_to_ptr.vmem [resolvable:$true] %s66_s17 }
  0x36   :  { %s572_s21 = scalar_lea.hbm %s805_s2, 16 }
  0x37   :  { %p573_p10 = scmp.ne.s32.totalorder %s805_s2, %s572_s21  ;;  %p576_p11 = scmp.lt.u32.totalorder %s572_s21, %s805_s2 }
  0x39   :  { %p578_p12 = pnand %p576_p11, %p573_p10 }
  0x3b   :  { %581 = shalt.err (!%p578_p12)
}
  0x3c   :  { %s582_s0 = scalar_lea.vmem %s45_s15, 16  ;;  %s586_s18 = scalar_lea.vmem %s45_s15, 32 }
  0x3d   :  { %p583_p13 = scmp.ne.s32.totalorder %s45_s15, %s582_s0  ;;  %p587_p0 = scmp.lt.s32.totalorder %s45_s15, %s45_s15 }
  0x3e   :  { %p588_p1 = scmp.lt.s32.totalorder %s586_s18, %s582_s0 }
  0x40   :  { %p589_p2 = por %p588_p1, %p587_p0 }
  0x42   :  { %p590_p3 = pnand %p589_p2, %p583_p13 }
  0x44   :  { %593 = shalt.err (!%p590_p3)
}
  0x45   :  { %47 = dma.hbm_to_vmem [thread:$0]  %s805_s2, 16, %s45_s15, [#allocation5]  }
  0x46   :  { %s594_s29 = scalar_lea.hbm %s807_s4, 16 }
  0x47   :  { %p595_p4 = scmp.ne.s32.totalorder %s807_s4, %s594_s29  ;;  %p598_p5 = scmp.lt.u32.totalorder %s594_s29, %s807_s4 }
  0x49   :  { %p600_p6 = pnand %p598_p5, %p595_p4 }
  0x4b   :  { %603 = shalt.err (!%p600_p6)
}
  0x4c   :  { %s604_s13 = scalar_lea.vmem %s67_s17, 16  ;;  %s608_s14 = scalar_lea.vmem %s67_s17, 32 }
  0x4d   :  { %p605_p7 = scmp.ne.s32.totalorder %s67_s17, %s604_s13  ;;  %p609_p8 = scmp.lt.s32.totalorder %s67_s17, %s67_s17 }
  0x4e   :  { %p610_p9 = scmp.lt.s32.totalorder %s608_s14, %s604_s13 }
  0x50   :  { %p611_p10 = por %p610_p9, %p609_p8 }
  0x52   :  { %p612_p11 = pnand %p611_p10, %p605_p7 }
  0x54   :  { %615 = shalt.err (!%p612_p11)
}
  0x55   :  { %69 = dma.hbm_to_vmem [thread:$0]  %s807_s4, 16, %s67_s17, [#allocation8]  }
  0x56   :  { %s653_s11 = smov [#allocation10]   ;;  %s616_s19 = scalar_lea.hbm %s809_s6, 16 }
  0x57   :  { %s78_s12 = sshll.u32 %s653_s11, 4  ;;  %p617_p12 = scmp.ne.s32.totalorder %s809_s6, %s616_s19  ;;  %s79_s12 = int_to_ptr.vmem [resolvable:$true] %s78_s12 }
  0x58   :  { %p620_p13 = scmp.lt.u32.totalorder %s616_s19, %s809_s6 }
  0x5a   :  { %p622_p0 = pnand %p620_p13, %p617_p12 }
  0x5c   :  { %625 = shalt.err (!%p622_p0)
}
  0x5d   :  { %s626_s24 = scalar_lea.vmem %s79_s12, 16  ;;  %s630_s4 = scalar_lea.vmem %s79_s12, 32 }
  0x5e   :  { %p627_p1 = scmp.ne.s32.totalorder %s79_s12, %s626_s24  ;;  %p631_p2 = scmp.lt.s32.totalorder %s79_s12, %s79_s12 }
  0x5f   :  { %p632_p3 = scmp.lt.s32.totalorder %s630_s4, %s626_s24 }
  0x61   :  { %p633_p4 = por %p632_p3, %p631_p2 }
  0x63   :  { %p634_p5 = pnand %p633_p4, %p627_p1 }
  0x65   :  { %637 = shalt.err (!%p634_p5)
}
  0x66   :  { %81 = dma.hbm_to_vmem [thread:$0]  %s809_s6, 16, %s79_s12, [#allocation11]  }
  0x67   :  { %638 = dma.done.wait [#allocation3], 128  }
  0x68   :  { %639 = vsyncadd [#allocation3], 4294967168 }
  0x69   :  { %640 = dma.done.wait [#allocation5], 272  }
  0x6a   :  { %641 = vsyncadd [#allocation5], 4294967024 }
  0x6b   :  { %642 = dma.done.wait [#allocation8], 1040  }
  0x6c   :  { %643 = vsyncadd [#allocation8], 4294966256 }
  0x6d   :  { %644 = dma.done.wait [#allocation11], 16  }
  0x6e   :  { %645 = vsyncadd [#allocation11], 4294967280  ;;  %v654_v0 = vmov 0.0|0.0   ;;  %vm655_vm0 = vmmov 0   ;;  %v656_v1 = vmov 0.0   ;;  %v101_v2 = vld [vmem:[#allocation4] sm:$0xff] }
  0x6f   :  { %460 = vmatprep.subr.bf16.mxu0 %v654_v0  ;;  %419 = vmatprep.mubr.msk.f32.mxu0 %vm655_vm0, %v656_v1  ;;  %v102_v3 = vld [vmem:[#allocation4 + $0x8] sm:$0xff]  ;;  %v185_v5 = vld [vmem:[#allocation7] sm:$0xff]  ;;  %v186_v6 = vld [vmem:[#allocation7 + $0x8] sm:$0xff]  ;;  %vm110_vm1 = vcmask 130048   ;;  %vm200_vm2 = vcmask 523264   ;;  %vm364_vm3 = vcmask 261120  }
  0x70   :  { %463 = vmatprep.subr.bf16.mxu1 %v654_v0  ;;  %438 = vmatprep.mubr.msk.f32.mxu1 %vm655_vm0, %v656_v1  ;;  %v461_v4 = vpack.c.bf16 %v102_v3, %v101_v2  ;;  %v464_v7 = vpack.c.bf16 %v186_v6, %v185_v5  ;;  %v100_v8 = vld [vmem:[#allocation2] sm:$0xff]  ;;  %v187_v9 = vld [vmem:[#allocation7 + $0x10] sm:$0xff]  ;;  %v188_v10 = vld [vmem:[#allocation7 + $0x18] sm:$0xff] }
  0x71   :  { %v467_v11 = vpack.c.bf16 %v188_v10, %v187_v9  ;;  %v189_v12 = vld [vmem:[#allocation7 + $0x20] sm:$0xff]  ;;  %v190_v13 = vld [vmem:[#allocation7 + $0x28] sm:$0xff]  ;;  %v191_v15 = vld [vmem:[#allocation7 + $0x30] sm:$0xff] }
  0x72   :  { %462 = vmatpush3.bf16.msra.mxu0 %v461_v4  ;;  %465 = vmatpush3.bf16.msra.mxu1 %v464_v7  ;;  %v470_v14 = vpack.c.bf16 %v190_v13, %v189_v12  ;;  %v192_v16 = vld [vmem:[#allocation7 + $0x38] sm:$0xff]  ;;  %v275_v18 = vld [vmem:[%s808_s5] sm:$0xff]  ;;  %v276_v19 = vld [vmem:[%s808_s5 + $0x8] sm:$0xff] }
  0x73   :  { %475 = vmatprep.subr.bf16.mxu0 %v654_v0  ;;  %466 = vmatprep.subr.bf16.mxu1 %v654_v0  ;;  %v473_v17 = vpack.c.bf16 %v192_v16, %v191_v15  ;;  %v476_v20 = vpack.c.bf16 %v276_v19, %v275_v18  ;;  %v388_v21 = vld [vmem:[#allocation6] ss:$0 sm:$0xff]  ;;  %v277_v26 = vld [vmem:[%s808_s5 + $0x10] sm:$0xff]  ;;  %v279_v29 = vld [vmem:[%s808_s5 + $0x20] sm:$0xff] }
  0x74   :  { %v278_v27 = vld [vmem:[%s808_s5 + $0x18] sm:$0xff]  ;;  %v280_v30 = vld [vmem:[%s808_s5 + $0x28] sm:$0xff]  ;;  %v281_v32 = vld [vmem:[%s808_s5 + $0x30] sm:$0xff] }
  0x75   :  { %420 = vmatmul.mubr.msk.f32.vlgmr.msra.gmra.mrb[0].mxu0 %vm110_vm1, %v100_v8  ;;  %v479_v28 = vpack.c.bf16 %v278_v27, %v277_v26  ;;  %v482_v31 = vpack.c.bf16 %v280_v30, %v279_v29  ;;  %v282_v33 = vld [vmem:[%s808_s5 + $0x38] sm:$0xff] }
  0x76   :  { %457 = vmatprep.mubr.msk.f32.mxu0 %vm655_vm0, %v656_v1  ;;  %468 = vmatpush3.bf16.msra.mxu1 %v467_v11  ;;  %v485_v34 = vpack.c.bf16 %v282_v33, %v281_v32  ;;  %v390_v35 = vld [vmem:[#allocation9] ss:$0 sm:$0xff]  ;;  %v392_v40 = vld [vmem:[#allocation10] ss:$0 sm:$0xff] }
  0x77   :  { %469 = vmatprep.subr.bf16.mxu1 %v654_v0  ;;  %477 = vmatpush3.bf16.msra.mxu0 %v476_v20 }
  0x78   :  { %478 = vmatprep.subr.bf16.mxu0 %v654_v0 }
  0x7a   :  { %471 = vmatpush3.bf16.msra.mxu1 %v470_v14 }
  0x7b   :  { %472 = vmatprep.subr.bf16.mxu1 %v654_v0  ;;  %480 = vmatpush3.bf16.msra.mxu0 %v479_v28 }
  0x7c   :  { %481 = vmatprep.subr.bf16.mxu0 %v654_v0 }
  0x7e   :  { %474 = vmatpush3.bf16.msra.mxu1 %v473_v17 }
  0x7f   :  { %483 = vmatpush3.bf16.msra.mxu0 %v482_v31 }
  0x80   :  { %484 = vmatprep.subr.bf16.mxu0 %v654_v0 }
  0x83   :  { %486 = vmatpush3.bf16.msra.mxu0 %v485_v34 }
 0x148   :  { %v180_v22 = vpop.f32.mrb[0].mxu0 }
 0x149   :  { %v181_v23 = vadd.f32 %v388_v21, %v180_v22  ;;  %v421_v24 = vpop.f32.mrb[1].mxu0 }
 0x14b   :  { %498 = vtanh.f32 %v181_v23 }
 0x155   :  { %v499_v25 = vpop.eup %498 }
 0x156   :  { %439 = vmatmul.mubr.msk.f32.vlgmr.msra.gmra.mrb[0].mxu1 %vm200_vm2, %v499_v25 }
 0x229   :  { %v270_v36 = vpop.f32.mrb[0].mxu1 }
 0x22a   :  { %v271_v37 = vadd.f32 %v390_v35, %v270_v36  ;;  %v440_v38 = vpop.f32.mrb[1].mxu1 }
 0x22c   :  { %500 = vtanh.f32 %v271_v37 }
 0x236   :  { %v501_v39 = vpop.eup %500 }
 0x237   :  { %458 = vmatmul.mubr.msk.f32.vlgmr.msra.gmra.mrb[2].mxu0 %vm200_vm2, %v501_v39 }
 0x30a   :  { %v359_v41 = vpop.f32.mrb[2].mxu0 }
 0x30b   :  { %v360_v42 = vadd.f32 %v392_v40, %v359_v41  ;;  %v459_v43 = vpop.f32.mrb[3].mxu0 }
 0x30d   :  { %v363_v44 = vmul.f32 %v360_v42, %v360_v42 }
 0x30f   :  { %v365_v45 = vsel %vm364_vm3, %v363_v44, 0.0 }
 0x310   :  { %366 = vadd.xlane.f32.xlu0 %v365_v45 }
 0x39d   :  { %v367_v46 = vpop.xlane.xlu0 %366 }
 0x39e   :  { %502 = vrsqrt.f32 %v367_v46  ;;  %vm370_vm4 = vcmp.eq.f32.partialorder %v367_v46, inf  ;;  %v373_v49 = vand.u32 2147483648, %v367_v46  ;;  %vm372_vm5 = vcmp.eq.f32.partialorder %v367_v46, 0.0 }
 0x3a8   :  { %v503_v47 = vpop.eup %502 }
 0x3a9   :  { %v369_v48 = vmul.f32 %v503_v47, %v367_v46 }
 0x3ab   :  { %v371_v50 = vsel %vm370_vm4, %v367_v46, %v369_v48 }
 0x3ac   :  { %v374_v51 = vsel %vm372_vm5, %v373_v49, %v371_v50 }
 0x3ad   :  { %v375_v52 = vmax.f32 %v374_v51, 1e-12 }
 0x3af   :  { %504 = vrcp.f32 %v375_v52 }
 0x3b9   :  { %v505_v53 = vpop.eup %504 }
 0x3ba   :  { %v377_v54 = vmul.f32 %v505_v53, %v360_v42 }
 0x3bc   :  { %v378_v55 = vmul.f32 5.0, %v377_v54 }
 0x3be   :  { %379 = vst.msk [vmem:[%s810_s7] sm:$0xff] %vm364_vm3, %v378_v55 }
 0x3bf   :  { %384 = vsyncpa [#allocation3], 1 }
 0x3c0   :  { %385 = vsyncpa [#allocation5], 1 }
 0x3c1   :  { %386 = vsyncpa [#allocation8], 1 }
 0x3c2   :  { %387 = vsyncpa [#allocation11], 1 }

// kernel: contrastive_queue_forward.3
= control target key start
LH: loop header
LB: loop body
LE: loop exit
PB: predicated region body
PF: predicated region fallthrough
CT: control target
= control target key end

     0   :  { %9 = vsyncpa [#allocation5], 0  ;;  %s7670_s0 = inlined_call_operand.vmem [shape: f32[8,32], index: 0, kind: input, shape index: {}]   ;;  %s7671_s1 = inlined_call_operand.hbm [shape: f32[32,32768], index: 1, kind: input, shape index: {}]   ;;  %s7672_s2 = inlined_call_operand.vmem [shape: f32[1,8,128], index: 2, kind: output, shape index: {0}]   ;;  %s7673_s3 = inlined_call_operand.vmem [shape: f32[1,8,128], index: 3, kind: output, shape index: {1}]  }
   0x1   :  { %11 = vsyncpa [#allocation5 + $0x1], 0  ;;  %s6808_s12 = smov 0   ;;  %s6810_s13 = smov 0  }
   0x2   :  { %s6812_s14 = smov 0   ;;  %s6814_s15 = smov 0  }
   0x3   :  { %s6816_s16 = smov 0   ;;  %s6818_s17 = smov 0  }
   0x4 LB: > { %s5788_s18 = sadd.s32 4294967295, %s6779_s17   ;;  %s26_s19 = sadd.s32 1, %s6775_s16  ;;  %s6779_s17 = sphi %s6818_s17, %s17_s17   ;;  %s6775_s16 = sphi %s6816_s16, %s7682_s16   ;;  %s6771_s15 = sphi %s6814_s15, %s7681_s15   ;;  %s6767_s14 = sphi %s6812_s14, %s7680_s14   ;;  %s6763_s13 = sphi %s6810_s13, %s7679_s13   ;;  %s6759_s12 = sphi %s6808_s12, %s7678_s12  }
   0x5   : > { %p27_p0 = scmp.ge.s32.totalorder %s26_s19, 2  ;;  %s61_s20 = sadd.s32 1, %s6767_s14 }
   0x6   : > { %p68_p1 = scmp.ne.s32.totalorder %s6767_s14, %s6763_s13  ;;  %p69_p2 = scmp.eq.s32.totalorder %s6779_s17, 0 }
   0x7   : > { %s7684_s19 = smov (%p27_p0, %s26_s19), 0  ;;  %p74_p4 = scmp.ne.s32.totalorder %s6763_s13, %s6759_s12 }
   0x8   : > { %p6844_p3 = por %p69_p2, %p68_p1  ;;  %s58_s22 = ssub.s32 %s6775_s16, %s7684_s19 }
   0x9   : > { %p75_p5 = scmp.eq.s32.totalorder %s5788_s18, 0  ;;  %p59_p6 = scmp.eq.s32.totalorder %s58_s22, 0 }
   0xa   : > { %p6385_p8 = scmp.lt.s32.totalorder %s6779_s17, 2  ;;  %s153_s25 = sand.u32 1, %s6767_s14  }
   0xb   : > { %p6851_p7 = por %p75_p5, %p74_p4  ;;  %s5866_s26 = sshll.u32 %s6775_s16, 14 }
   0xc   : > { %s6857_s24 = scalar_select %p59_p6, %s6767_s14, %s61_s20  }
   0xd   : > { %s5791_s27 = sshll.u32 %s153_s25, 12  ;;  %s6864_s30 = scalar_lea.hbm %s7671_s1, %s5866_s26 }
   0xe   : > { %s157_s4 = scalar_lea.vmem [#allocation4], %s5791_s27  ;;  %p6868_p9 = pnand %p6385_p8, %p6844_p3 }
   0xf   : > { %s166_s5 = sshll.u32 %s157_s4, 4  ;;  %s6875_s7 = scalar_lea.sflag [#allocation5], %s153_s25  ;;  %s6872_s5 = int_to_ptr.vmem [resolvable:$true] %s166_s5 }
  0x10   : > { %s6699_s8 = scalar_lea.hbm %s6864_s30, 65536  ;;  %p6701_p12 = pneg %p6868_p9 }
  0x11   : > { %p6700_p11 = scmp.ne.s32.totalorder %s6864_s30, %s6699_s8  ;;  %s6704_s11 = scalar_lea.hbm %s7671_s1, 131072 }
  0x12   : > { %p6705_p1 = scmp.lt.u32.totalorder %s6864_s30, %s7671_s1  ;;  %p6706_p2 = scmp.lt.u32.totalorder %s6704_s11, %s6699_s8 }
  0x13   : > { %p6702_p13 = pnand %p6701_p12, %p6700_p11  ;;  %p6708_p4 = scmp.lt.u32.totalorder %s6699_s8, %s6864_s30 }
  0x14   : > { %p6707_p3 = por %p6706_p2, %p6705_p1 }
  0x15   : > { %p6703_p0 = pneg %p6702_p13 }
  0x16   : > { %p6709_p5 = por %p6708_p4, %p6707_p3 }
  0x18   : > { %p6710_p6 = pnand %p6709_p5, %p6703_p0 }
  0x1a   : > { %6713 = shalt.err (!%p6710_p6)
}
  0x1b   : > { %s6714_s20 = scalar_lea.vmem %s6872_s5, 65536  ;;  %s6781_s21 = smov [#allocation4]  }
  0x1c   : > { %p6715_p8 = scmp.ne.s32.totalorder %s6872_s5, %s6714_s20  ;;  %s6719_s22 = sshll.u32 %s6781_s21, 4  ;;  %s6720_s22 = int_to_ptr.vmem [resolvable:$false] %s6719_s22 }
  0x1d   : > { %s6721_s25 = scalar_lea.vmem %s6720_s22, 131072  ;;  %p6722_p10 = scmp.lt.s32.totalorder %s6872_s5, %s6720_s22 }
  0x1e   : > { %p6717_p11 = pnand %p6715_p8, %p6701_p12  ;;  %p6723_p1 = scmp.lt.s32.totalorder %s6721_s25, %s6714_s20 }
  0x20   : > { %p6718_p13 = pneg %p6717_p11  ;;  %p6724_p2 = por %p6723_p1, %p6722_p10 }
  0x22   : > { %p6725_p3 = pnand %p6724_p2, %p6718_p13 }
  0x24   : > { %6728 = shalt.err (!%p6725_p3)
}
  0x25   : > { %s6782_s26 = smov 32768   ;;  %s6783_s27 = smov 16384  }
  0x26   : > { %s6784_s28 = smov 1024   ;;  %p174_p12 = scmp.lt.s32.totalorder %s6779_s17, 3 }
  0x27   : > { %6384 = dma.hbm_to_vmem [thread:$0]  (!%p6868_p9), %s6864_s30, 65536, %s6872_s5, %s6875_s7, %s6782_s26, %s6783_s27, %s6784_s28  }
  0x28   : > { %p7677_p0 = scmp.ge.s32.totalorder %s6779_s17, 1 }
  0x2a   : > { %p175_p4 = pnand %p7677_p0, %p174_p12 }
  0x2b   : > { %s180_s29 = sand.u32 (!%p175_p4), 1, %s6763_s13  }
  0x2c   : > { %178 = sbr.rel (%p175_p4) target bundleno = 649 (0x289), region = 28  ;;  %s5795_s4 = sshll.u32 (!%p175_p4), %s180_s29, 12 }
  0x2d   : > { %s181_s8 = scalar_lea.sflag (!%p175_p4), [#allocation5], %s180_s29  ;;  %s6907_s9 = scalar_lea.vmem (!%p175_p4), [#allocation4], %s5795_s4 }
  0x33   : > { %6754 = dma.done.wait (%p6851_p7), %s181_s8, 65536  }
  0x34   : > { %6756 = vsyncadd (%p6851_p7), %s181_s8, 4294901760  ;;  %p5796_p10 = scmp.ne.s32.totalorder %s6771_s15, 0 }
  0x35   : > { %vm226_vm0 = vcmask (!%p5796_p10), 7168   ;;  %v6785_v0 = vmov (!%p5796_p10), 0.0  }
  0x36   : > { %224 = sbr.rel (%p5796_p10) target bundleno = 61 (0x3d), region = 36  ;;  %225 = vst [vmem:[#allocation2] sm:$0xff] (!%p5796_p10), %v6785_v0  ;;  %227 = vst.msk [vmem:[#allocation3] sm:$0xff] (!%p5796_p10), %vm226_vm0, %v6785_v0 }
  0x3d PF: > { %v230_v1 = vld [vmem:[%s6907_s9 + $0x8] sm:$0xff]  ;;  %v232_v3 = vld [vmem:[%s6907_s9 + $0x18] sm:$0xff]  ;;  %v229_v6 = vld [vmem:[%s6907_s9] sm:$0xff]  ;;  %v6786_v8 = vmov 0.0   ;;  %vm741_vm1 = vcmask 261120   ;;  %p5861_p7 = scmp.ne.s32.totalorder %s6771_s15, 1 }
  0x3e   : > { %v358_v2 = vld [vmem:[%s6907_s9 + $0x408] sm:$0xff]  ;;  %v360_v5 = vld [vmem:[%s6907_s9 + $0x418] sm:$0xff]  ;;  %v357_v7 = vld [vmem:[%s6907_s9 + $0x400] sm:$0xff]  ;;  %809 = vmatprep.mubr.f32.mxu0 %v6786_v8  ;;  %880 = vmatprep.mubr.f32.mxu1 %v6786_v8 }
  0x3f   : > { %v5867_v4 = vpack.c.bf16 %v358_v2, %v230_v1  ;;  %v5875_v9 = vpack.c.bf16 %v360_v5, %v232_v3  ;;  %v5869_v10 = vpack.c.bf16 %v357_v7, %v229_v6  ;;  %v231_v11 = vld [vmem:[%s6907_s9 + $0x10] sm:$0xff]  ;;  %v486_v13 = vld [vmem:[%s6907_s9 + $0x808] sm:$0xff]  ;;  %v488_v16 = vld [vmem:[%s6907_s9 + $0x818] sm:$0xff] }
  0x40   : > { %v359_v12 = vld [vmem:[%s6907_s9 + $0x410] sm:$0xff]  ;;  %v614_v15 = vld [vmem:[%s6907_s9 + $0xc08] sm:$0xff]  ;;  %v616_v17 = vld [vmem:[%s6907_s9 + $0xc18] sm:$0xff] }
  0x41   : > { %5868 = vmatprep.subr.bf16.mxu0 %v5867_v4  ;;  %v5877_v14 = vpack.c.bf16 %v359_v12, %v231_v11  ;;  %5876 = vmatprep.subr.bf16.mxu1 %v5875_v9  ;;  %v5871_v18 = vpack.c.bf16 %v614_v15, %v486_v13  ;;  %v5879_v19 = vpack.c.bf16 %v616_v17, %v488_v16  ;;  %v485_v20 = vld [vmem:[%s6907_s9 + $0x800] sm:$0xff]  ;;  %v487_v22 = vld [vmem:[%s6907_s9 + $0x810] sm:$0xff]  ;;  %v234_v25 = vld [vmem:[%s6907_s9 + $0x28] sm:$0xff] }
  0x42   : > { %5870 = vmatpush1.bf16.msra.mxu0 %v5869_v10  ;;  %v613_v21 = vld [vmem:[%s6907_s9 + $0xc00] sm:$0xff]  ;;  %v615_v24 = vld [vmem:[%s6907_s9 + $0xc10] sm:$0xff]  ;;  %v362_v28 = vld [vmem:[%s6907_s9 + $0x428] sm:$0xff] }
  0x43   : > { %5878 = vmatpush1.bf16.msra.mxu1 %v5877_v14  ;;  %v5873_v23 = vpack.c.bf16 %v613_v21, %v485_v20  ;;  %5872 = vmatprep.subr.bf16.mxu0 %v5871_v18  ;;  %v5881_v26 = vpack.c.bf16 %v615_v24, %v487_v22  ;;  %v6936_v27 = vld [vmem:[%s7670_s0] sm:$0xff]  ;;  %v236_v29 = vld [vmem:[%s6907_s9 + $0x38] sm:$0xff]  ;;  %v5883_v31 = vpack.c.bf16 %v362_v28, %v234_v25  ;;  %v233_v33 = vld [vmem:[%s6907_s9 + $0x20] sm:$0xff] }
  0x44   : > { %5880 = vmatprep.subr.bf16.mxu1 %v5879_v19  ;;  %v364_v30 = vld [vmem:[%s6907_s9 + $0x438] sm:$0xff]  ;;  %v361_v34 = vld [vmem:[%s6907_s9 + $0x420] sm:$0xff]  ;;  %v235_v35 = vld [vmem:[%s6907_s9 + $0x30] sm:$0xff] }
  0x45   : > { %v5891_v32 = vpack.c.bf16 %v364_v30, %v236_v29  ;;  %v5885_v36 = vpack.c.bf16 %v361_v34, %v233_v33  ;;  %v363_v37 = vld [vmem:[%s6907_s9 + $0x430] sm:$0xff]  ;;  %v490_v38 = vld [vmem:[%s6907_s9 + $0x828] sm:$0xff]  ;;  %v492_v42 = vld [vmem:[%s6907_s9 + $0x838] sm:$0xff] }
  0x46   : > { %5874 = vmatpush1.bf16.msra.mxu0 %v5873_v23  ;;  %v618_v39 = vld [vmem:[%s6907_s9 + $0xc28] sm:$0xff]  ;;  %v5893_v40 = vpack.c.bf16 %v363_v37, %v235_v35  ;;  %v620_v43 = vld [vmem:[%s6907_s9 + $0xc38] sm:$0xff]  ;;  %v489_v44 = vld [vmem:[%s6907_s9 + $0x820] sm:$0xff] }
  0x47   : > { %5882 = vmatpush1.bf16.msra.mxu1 %v5881_v26  ;;  %5884 = vmatprep.subr.bf16.mxu0 %v5883_v31  ;;  %v5887_v41 = vpack.c.bf16 %v618_v39, %v490_v38  ;;  %v5895_v45 = vpack.c.bf16 %v620_v43, %v492_v42  ;;  %v617_v46 = vld [vmem:[%s6907_s9 + $0xc20] sm:$0xff]  ;;  %v491_v47 = vld [vmem:[%s6907_s9 + $0x830] sm:$0xff]  ;;  %v238_v49 = vld [vmem:[%s6907_s9 + $0x48] sm:$0xff] }
  0x48   : > { %5892 = vmatprep.subr.bf16.mxu1 %v5891_v32  ;;  %v619_v48 = vld [vmem:[%s6907_s9 + $0xc30] sm:$0xff]  ;;  %v366_v50 = vld [vmem:[%s6907_s9 + $0x448] sm:$0xff]  ;;  %v240_v51 = vld [vmem:[%s6907_s9 + $0x58] sm:$0xff]  ;;  %v5889_v52 = vpack.c.bf16 %v617_v46, %v489_v44 }
  0x49   : > { %5797 = vmatmul.mubr.msk.f32.vlgmr.msra.gmra.mrb[0].mxu0 %vm741_vm1, %v6936_v27  ;;  %v368_v53 = vld [vmem:[%s6907_s9 + $0x458] sm:$0xff]  ;;  %v5897_v54 = vpack.c.bf16 %v619_v48, %v491_v47  ;;  %v5899_v55 = vpack.c.bf16 %v366_v50, %v238_v49  ;;  %v237_v56 = vld [vmem:[%s6907_s9 + $0x40] sm:$0xff]  ;;  %v239_v58 = vld [vmem:[%s6907_s9 + $0x50] sm:$0xff] }
  0x4a   : > { %5798 = vmatmul.mubr.msk.f32.vlgmr.msra.gmra.mrb[0].mxu1 %vm741_vm1, %v6936_v27  ;;  %5886 = vmatpush1.bf16.msra.mxu0 %v5885_v36  ;;  %v365_v57 = vld [vmem:[%s6907_s9 + $0x440] sm:$0xff]  ;;  %v5907_v59 = vpack.c.bf16 %v368_v53, %v240_v51  ;;  %v367_v60 = vld [vmem:[%s6907_s9 + $0x450] sm:$0xff]  ;;  %v494_v61 = vld [vmem:[%s6907_s9 + $0x848] sm:$0xff] }
  0x4b   : > { %5894 = vmatpush1.bf16.msra.mxu1 %v5893_v40  ;;  %5888 = vmatprep.subr.bf16.mxu0 %v5887_v41  ;;  %v622_v62 = vld [vmem:[%s6907_s9 + $0xc48] sm:$0xff]  ;;  %v496_v63 = vld [vmem:[%s6907_s9 + $0x858] sm:$0xff]  ;;  %v5901_v1 = vpack.c.bf16 %v365_v57, %v237_v56  ;;  %v5909_v2 = vpack.c.bf16 %v367_v60, %v239_v58  ;;  %v493_v4 = vld [vmem:[%s6907_s9 + $0x840] sm:$0xff] }
  0x4c   : > { %5896 = vmatprep.subr.bf16.mxu1 %v5895_v45  ;;  %951 = vmatprep.mubr.f32.mxu0 %v6786_v8  ;;  %v624_v0 = vld [vmem:[%s6907_s9 + $0xc58] sm:$0xff]  ;;  %v5903_v3 = vpack.c.bf16 %v622_v62, %v494_v61  ;;  %v621_v5 = vld [vmem:[%s6907_s9 + $0xc40] sm:$0xff]  ;;  %v495_v6 = vld [vmem:[%s6907_s9 + $0x850] sm:$0xff] }
  0x4d   : > { %1022 = vmatprep.mubr.f32.mxu1 %v6786_v8  ;;  %v5911_v7 = vpack.c.bf16 %v624_v0, %v496_v63  ;;  %v623_v9 = vld [vmem:[%s6907_s9 + $0xc50] sm:$0xff]  ;;  %v242_v10 = vld [vmem:[%s6907_s9 + $0x68] sm:$0xff]  ;;  %v244_v12 = vld [vmem:[%s6907_s9 + $0x78] sm:$0xff]  ;;  %v5905_v14 = vpack.c.bf16 %v621_v5, %v493_v4 }
  0x4e   : > { %5890 = vmatpush1.bf16.msra.mxu0 %v5889_v52  ;;  %v370_v11 = vld [vmem:[%s6907_s9 + $0x468] sm:$0xff]  ;;  %v372_v13 = vld [vmem:[%s6907_s9 + $0x478] sm:$0xff]  ;;  %v5913_v15 = vpack.c.bf16 %v623_v9, %v495_v6  ;;  %v241_v17 = vld [vmem:[%s6907_s9 + $0x60] sm:$0xff] }
  0x4f   : > { %5898 = vmatpush1.bf16.msra.mxu1 %v5897_v54  ;;  %5900 = vmatprep.subr.bf16.mxu0 %v5899_v55  ;;  %v5915_v16 = vpack.c.bf16 %v370_v11, %v242_v10  ;;  %v369_v18 = vld [vmem:[%s6907_s9 + $0x460] sm:$0xff]  ;;  %v243_v19 = vld [vmem:[%s6907_s9 + $0x70] sm:$0xff]  ;;  %v5923_v20 = vpack.c.bf16 %v372_v13, %v244_v12  ;;  %v498_v22 = vld [vmem:[%s6907_s9 + $0x868] sm:$0xff] }
  0x50   : > { %5908 = vmatprep.subr.bf16.mxu1 %v5907_v59  ;;  %v371_v21 = vld [vmem:[%s6907_s9 + $0x470] sm:$0xff]  ;;  %v626_v23 = vld [vmem:[%s6907_s9 + $0xc68] sm:$0xff]  ;;  %v500_v24 = vld [vmem:[%s6907_s9 + $0x878] sm:$0xff]  ;;  %v5917_v26 = vpack.c.bf16 %v369_v18, %v241_v17 }
  0x51   : > { %5799 = vmatmul.mubr.msk.f32.vlgmr.msra.gmra.mrb[2].mxu0 %vm741_vm1, %v6936_v27  ;;  %v628_v25 = vld [vmem:[%s6907_s9 + $0xc78] sm:$0xff]  ;;  %v5925_v28 = vpack.c.bf16 %v371_v21, %v243_v19  ;;  %v5919_v29 = vpack.c.bf16 %v626_v23, %v498_v22  ;;  %v497_v30 = vld [vmem:[%s6907_s9 + $0x860] sm:$0xff]  ;;  %v499_v32 = vld [vmem:[%s6907_s9 + $0x870] sm:$0xff] }
  0x52   : > { %5800 = vmatmul.mubr.msk.f32.vlgmr.msra.gmra.mrb[2].mxu1 %vm741_vm1, %v6936_v27  ;;  %5902 = vmatpush1.bf16.msra.mxu0 %v5901_v1  ;;  %v625_v31 = vld [vmem:[%s6907_s9 + $0xc60] sm:$0xff]  ;;  %v5927_v33 = vpack.c.bf16 %v628_v25, %v500_v24  ;;  %v627_v34 = vld [vmem:[%s6907_s9 + $0xc70] sm:$0xff]  ;;  %v246_v35 = vld [vmem:[%s6907_s9 + $0x88] sm:$0xff] }
  0x53   : > { %5910 = vmatpush1.bf16.msra.mxu1 %v5909_v2  ;;  %5904 = vmatprep.subr.bf16.mxu0 %v5903_v3  ;;  %v374_v36 = vld [vmem:[%s6907_s9 + $0x488] sm:$0xff]  ;;  %v248_v37 = vld [vmem:[%s6907_s9 + $0x98] sm:$0xff]  ;;  %v5921_v39 = vpack.c.bf16 %v625_v31, %v497_v30  ;;  %v5929_v40 = vpack.c.bf16 %v627_v34, %v499_v32  ;;  %v245_v42 = vld [vmem:[%s6907_s9 + $0x80] sm:$0xff] }
  0x54   : > { %5912 = vmatprep.subr.bf16.mxu1 %v5911_v7  ;;  %1093 = vmatprep.mubr.f32.mxu0 %v6786_v8  ;;  %v376_v38 = vld [vmem:[%s6907_s9 + $0x498] sm:$0xff]  ;;  %v5931_v41 = vpack.c.bf16 %v374_v36, %v246_v35  ;;  %v373_v43 = vld [vmem:[%s6907_s9 + $0x480] sm:$0xff]  ;;  %v247_v44 = vld [vmem:[%s6907_s9 + $0x90] sm:$0xff] }
  0x55   : > { %1164 = vmatprep.mubr.f32.mxu1 %v6786_v8  ;;  %v5939_v45 = vpack.c.bf16 %v376_v38, %v248_v37  ;;  %v375_v46 = vld [vmem:[%s6907_s9 + $0x490] sm:$0xff]  ;;  %v502_v47 = vld [vmem:[%s6907_s9 + $0x888] sm:$0xff]  ;;  %v504_v49 = vld [vmem:[%s6907_s9 + $0x898] sm:$0xff]  ;;  %v5933_v51 = vpack.c.bf16 %v373_v43, %v245_v42 }
  0x56   : > { %5906 = vmatpush1.bf16.msra.mxu0 %v5905_v14  ;;  %v630_v48 = vld [vmem:[%s6907_s9 + $0xc88] sm:$0xff]  ;;  %v632_v50 = vld [vmem:[%s6907_s9 + $0xc98] sm:$0xff]  ;;  %v5941_v52 = vpack.c.bf16 %v375_v46, %v247_v44  ;;  %v501_v54 = vld [vmem:[%s6907_s9 + $0x880] sm:$0xff] }
  0x57   : > { %5914 = vmatpush1.bf16.msra.mxu1 %v5913_v15  ;;  %5916 = vmatprep.subr.bf16.mxu0 %v5915_v16  ;;  %v5935_v53 = vpack.c.bf16 %v630_v48, %v502_v47  ;;  %v629_v55 = vld [vmem:[%s6907_s9 + $0xc80] sm:$0xff]  ;;  %v503_v56 = vld [vmem:[%s6907_s9 + $0x890] sm:$0xff]  ;;  %v5943_v57 = vpack.c.bf16 %v632_v50, %v504_v49  ;;  %v250_v59 = vld [vmem:[%s6907_s9 + $0xa8] sm:$0xff] }
  0x58   : > { %5924 = vmatprep.subr.bf16.mxu1 %v5923_v20  ;;  %v631_v58 = vld [vmem:[%s6907_s9 + $0xc90] sm:$0xff]  ;;  %v378_v60 = vld [vmem:[%s6907_s9 + $0x4a8] sm:$0xff]  ;;  %v252_v61 = vld [vmem:[%s6907_s9 + $0xb8] sm:$0xff]  ;;  %v5937_v63 = vpack.c.bf16 %v629_v55, %v501_v54 }
  0x59   : > { %5801 = vmatmul.mubr.msk.f32.vlgmr.msra.gmra.mrb[4].mxu0 %vm741_vm1, %v6936_v27  ;;  %v380_v62 = vld [vmem:[%s6907_s9 + $0x4b8] sm:$0xff]  ;;  %v5945_v0 = vpack.c.bf16 %v631_v58, %v503_v56  ;;  %v5947_v1 = vpack.c.bf16 %v378_v60, %v250_v59  ;;  %v249_v2 = vld [vmem:[%s6907_s9 + $0xa0] sm:$0xff]  ;;  %v251_v4 = vld [vmem:[%s6907_s9 + $0xb0] sm:$0xff] }
  0x5a   : > { %5802 = vmatmul.mubr.msk.f32.vlgmr.msra.gmra.mrb[4].mxu1 %vm741_vm1, %v6936_v27  ;;  %5918 = vmatpush1.bf16.msra.mxu0 %v5917_v26  ;;  %v377_v3 = vld [vmem:[%s6907_s9 + $0x4a0] sm:$0xff]  ;;  %v5955_v5 = vpack.c.bf16 %v380_v62, %v252_v61  ;;  %v379_v6 = vld [vmem:[%s6907_s9 + $0x4b0] sm:$0xff]  ;;  %v506_v7 = vld [vmem:[%s6907_s9 + $0x8a8] sm:$0xff] }
  0x5b   : > { %5926 = vmatpush1.bf16.msra.mxu1 %v5925_v28  ;;  %5920 = vmatprep.subr.bf16.mxu0 %v5919_v29  ;;  %v634_v9 = vld [vmem:[%s6907_s9 + $0xca8] sm:$0xff]  ;;  %v508_v10 = vld [vmem:[%s6907_s9 + $0x8b8] sm:$0xff]  ;;  %v5949_v12 = vpack.c.bf16 %v377_v3, %v249_v2  ;;  %v5957_v13 = vpack.c.bf16 %v379_v6, %v251_v4  ;;  %v505_v15 = vld [vmem:[%s6907_s9 + $0x8a0] sm:$0xff] }
  0x5c   : > { %5928 = vmatprep.subr.bf16.mxu1 %v5927_v33  ;;  %1235 = vmatprep.mubr.f32.mxu0 %v6786_v8  ;;  %v636_v11 = vld [vmem:[%s6907_s9 + $0xcb8] sm:$0xff]  ;;  %v5951_v14 = vpack.c.bf16 %v634_v9, %v506_v7  ;;  %v633_v16 = vld [vmem:[%s6907_s9 + $0xca0] sm:$0xff]  ;;  %v507_v17 = vld [vmem:[%s6907_s9 + $0x8b0] sm:$0xff] }
  0x5d   : > { %1306 = vmatprep.mubr.f32.mxu1 %v6786_v8  ;;  %v5959_v18 = vpack.c.bf16 %v636_v11, %v508_v10  ;;  %v635_v19 = vld [vmem:[%s6907_s9 + $0xcb0] sm:$0xff]  ;;  %v254_v20 = vld [vmem:[%s6907_s9 + $0xc8] sm:$0xff]  ;;  %v256_v22 = vld [vmem:[%s6907_s9 + $0xd8] sm:$0xff]  ;;  %v5953_v24 = vpack.c.bf16 %v633_v16, %v505_v15 }
  0x5e   : > { %5922 = vmatpush1.bf16.msra.mxu0 %v5921_v39  ;;  %v382_v21 = vld [vmem:[%s6907_s9 + $0x4c8] sm:$0xff]  ;;  %v384_v23 = vld [vmem:[%s6907_s9 + $0x4d8] sm:$0xff]  ;;  %v5961_v25 = vpack.c.bf16 %v635_v19, %v507_v17  ;;  %v253_v28 = vld [vmem:[%s6907_s9 + $0xc0] sm:$0xff] }
  0x5f   : > { %5930 = vmatpush1.bf16.msra.mxu1 %v5929_v40  ;;  %5932 = vmatprep.subr.bf16.mxu0 %v5931_v41  ;;  %v5963_v26 = vpack.c.bf16 %v382_v21, %v254_v20  ;;  %v381_v29 = vld [vmem:[%s6907_s9 + $0x4c0] sm:$0xff]  ;;  %v255_v30 = vld [vmem:[%s6907_s9 + $0xd0] sm:$0xff]  ;;  %v5971_v31 = vpack.c.bf16 %v384_v23, %v256_v22  ;;  %v510_v33 = vld [vmem:[%s6907_s9 + $0x8c8] sm:$0xff] }
  0x60   : > { %5940 = vmatprep.subr.bf16.mxu1 %v5939_v45  ;;  %v383_v32 = vld [vmem:[%s6907_s9 + $0x4d0] sm:$0xff]  ;;  %v638_v34 = vld [vmem:[%s6907_s9 + $0xcc8] sm:$0xff]  ;;  %v512_v35 = vld [vmem:[%s6907_s9 + $0x8d8] sm:$0xff]  ;;  %v5965_v37 = vpack.c.bf16 %v381_v29, %v253_v28 }
  0x61   : > { %5803 = vmatmul.mubr.msk.f32.vlgmr.msra.gmra.mrb[6].mxu0 %vm741_vm1, %v6936_v27  ;;  %v640_v36 = vld [vmem:[%s6907_s9 + $0xcd8] sm:$0xff]  ;;  %v5973_v38 = vpack.c.bf16 %v383_v32, %v255_v30  ;;  %v5967_v39 = vpack.c.bf16 %v638_v34, %v510_v33  ;;  %v509_v40 = vld [vmem:[%s6907_s9 + $0x8c0] sm:$0xff]  ;;  %v511_v42 = vld [vmem:[%s6907_s9 + $0x8d0] sm:$0xff] }
  0x62   : > { %5804 = vmatmul.mubr.msk.f32.vlgmr.msra.gmra.mrb[6].mxu1 %vm741_vm1, %v6936_v27  ;;  %5934 = vmatpush1.bf16.msra.mxu0 %v5933_v51  ;;  %v637_v41 = vld [vmem:[%s6907_s9 + $0xcc0] sm:$0xff]  ;;  %v5975_v43 = vpack.c.bf16 %v640_v36, %v512_v35  ;;  %v639_v44 = vld [vmem:[%s6907_s9 + $0xcd0] sm:$0xff]  ;;  %v258_v45 = vld [vmem:[%s6907_s9 + $0xe8] sm:$0xff] }
  0x63   : > { %5942 = vmatpush1.bf16.msra.mxu1 %v5941_v52  ;;  %5936 = vmatprep.subr.bf16.mxu0 %v5935_v53  ;;  %v386_v46 = vld [vmem:[%s6907_s9 + $0x4e8] sm:$0xff]  ;;  %v260_v47 = vld [vmem:[%s6907_s9 + $0xf8] sm:$0xff]  ;;  %v5969_v49 = vpack.c.bf16 %v637_v41, %v509_v40  ;;  %v5977_v50 = vpack.c.bf16 %v639_v44, %v511_v42  ;;  %v257_v52 = vld [vmem:[%s6907_s9 + $0xe0] sm:$0xff] }
  0x64   : > { %5944 = vmatprep.subr.bf16.mxu1 %v5943_v57  ;;  %1377 = vmatprep.mubr.f32.mxu0 %v6786_v8  ;;  %v388_v48 = vld [vmem:[%s6907_s9 + $0x4f8] sm:$0xff]  ;;  %v5979_v51 = vpack.c.bf16 %v386_v46, %v258_v45  ;;  %v385_v53 = vld [vmem:[%s6907_s9 + $0x4e0] sm:$0xff]  ;;  %v259_v54 = vld [vmem:[%s6907_s9 + $0xf0] sm:$0xff] }
  0x65   : > { %1448 = vmatprep.mubr.f32.mxu1 %v6786_v8  ;;  %v5987_v55 = vpack.c.bf16 %v388_v48, %v260_v47  ;;  %v387_v56 = vld [vmem:[%s6907_s9 + $0x4f0] sm:$0xff]  ;;  %v514_v57 = vld [vmem:[%s6907_s9 + $0x8e8] sm:$0xff]  ;;  %v516_v59 = vld [vmem:[%s6907_s9 + $0x8f8] sm:$0xff]  ;;  %v5981_v61 = vpack.c.bf16 %v385_v53, %v257_v52 }
  0x66   : > { %5938 = vmatpush1.bf16.msra.mxu0 %v5937_v63  ;;  %v642_v58 = vld [vmem:[%s6907_s9 + $0xce8] sm:$0xff]  ;;  %v644_v60 = vld [vmem:[%s6907_s9 + $0xcf8] sm:$0xff]  ;;  %v5989_v62 = vpack.c.bf16 %v387_v56, %v259_v54  ;;  %v515_v2 = vld [vmem:[%s6907_s9 + $0x8f0] sm:$0xff] }
  0x67   : > { %5946 = vmatpush1.bf16.msra.mxu1 %v5945_v0  ;;  %5948 = vmatprep.subr.bf16.mxu0 %v5947_v1  ;;  %v5983_v63 = vpack.c.bf16 %v642_v58, %v514_v57  ;;  %v513_v0 = vld [vmem:[%s6907_s9 + $0x8e0] sm:$0xff]  ;;  %v5991_v3 = vpack.c.bf16 %v644_v60, %v516_v59  ;;  %v643_v4 = vld [vmem:[%s6907_s9 + $0xcf0] sm:$0xff]  ;;  %v390_v6 = vld [vmem:[%s6907_s9 + $0x508] sm:$0xff] }
  0x68   : > { %5956 = vmatprep.subr.bf16.mxu1 %v5955_v5  ;;  %v641_v1 = vld [vmem:[%s6907_s9 + $0xce0] sm:$0xff]  ;;  %v262_v5 = vld [vmem:[%s6907_s9 + $0x108] sm:$0xff]  ;;  %v264_v7 = vld [vmem:[%s6907_s9 + $0x118] sm:$0xff]  ;;  %v5993_v11 = vpack.c.bf16 %v643_v4, %v515_v2 }
  0x69   : > { %5805 = vmatmul.mubr.msk.f32.vlgmr.msra.gmra.mrb[8].mxu0 %vm741_vm1, %v6936_v27  ;;  %v392_v9 = vld [vmem:[%s6907_s9 + $0x518] sm:$0xff]  ;;  %v5985_v10 = vpack.c.bf16 %v641_v1, %v513_v0  ;;  %v263_v15 = vld [vmem:[%s6907_s9 + $0x110] sm:$0xff]  ;;  %v646_v19 = vld [vmem:[%s6907_s9 + $0xd08] sm:$0xff] }
  0x6a   : > { %5806 = vmatmul.mubr.msk.f32.vlgmr.msra.gmra.mrb[8].mxu1 %vm741_vm1, %v6936_v27  ;;  %5950 = vmatpush1.bf16.msra.mxu0 %v5949_v12  ;;  %v5995_v12 = vpack.c.bf16 %v390_v6, %v262_v5  ;;  %v6003_v16 = vpack.c.bf16 %v392_v9, %v264_v7  ;;  %v391_v17 = vld [vmem:[%s6907_s9 + $0x510] sm:$0xff]  ;;  %v520_v20 = vld [vmem:[%s6907_s9 + $0x918] sm:$0xff]  ;;  %v394_v32 = vld [vmem:[%s6907_s9 + $0x528] sm:$0xff] }
  0x6b   : > { %5958 = vmatpush1.bf16.msra.mxu1 %v5957_v13  ;;  %5952 = vmatprep.subr.bf16.mxu0 %v5951_v14  ;;  %v261_v13 = vld [vmem:[%s6907_s9 + $0x100] sm:$0xff]  ;;  %v648_v21 = vld [vmem:[%s6907_s9 + $0xd18] sm:$0xff]  ;;  %v6005_v23 = vpack.c.bf16 %v391_v17, %v263_v15  ;;  %v519_v28 = vld [vmem:[%s6907_s9 + $0x910] sm:$0xff] }
  0x6c   : > { %5960 = vmatprep.subr.bf16.mxu1 %v5959_v18  ;;  %1519 = vmatprep.mubr.f32.mxu0 %v6786_v8  ;;  %v389_v14 = vld [vmem:[%s6907_s9 + $0x500] sm:$0xff]  ;;  %v518_v18 = vld [vmem:[%s6907_s9 + $0x908] sm:$0xff]  ;;  %v6007_v29 = vpack.c.bf16 %v648_v21, %v520_v20  ;;  %v647_v30 = vld [vmem:[%s6907_s9 + $0xd10] sm:$0xff] }
  0x6d   : > { %1590 = vmatprep.mubr.f32.mxu1 %v6786_v8  ;;  %v5997_v22 = vpack.c.bf16 %v389_v14, %v261_v13  ;;  %v268_v33 = vld [vmem:[%s6907_s9 + $0x138] sm:$0xff]  ;;  %v6009_v36 = vpack.c.bf16 %v647_v30, %v519_v28  ;;  %v267_v40 = vld [vmem:[%s6907_s9 + $0x130] sm:$0xff]  ;;  %v650_v44 = vld [vmem:[%s6907_s9 + $0xd28] sm:$0xff] }
  0x6e   : > { %5954 = vmatpush1.bf16.msra.mxu0 %v5953_v24  ;;  %v5999_v24 = vpack.c.bf16 %v646_v19, %v518_v18  ;;  %v396_v34 = vld [vmem:[%s6907_s9 + $0x538] sm:$0xff]  ;;  %v395_v42 = vld [vmem:[%s6907_s9 + $0x530] sm:$0xff]  ;;  %v398_v56 = vld [vmem:[%s6907_s9 + $0x548] sm:$0xff] }
  0x6f   : > { %5962 = vmatpush1.bf16.msra.mxu1 %v5961_v25  ;;  %5964 = vmatprep.subr.bf16.mxu0 %v5963_v26  ;;  %v517_v25 = vld [vmem:[%s6907_s9 + $0x900] sm:$0xff]  ;;  %v6019_v41 = vpack.c.bf16 %v396_v34, %v268_v33  ;;  %v524_v45 = vld [vmem:[%s6907_s9 + $0x938] sm:$0xff]  ;;  %v6021_v48 = vpack.c.bf16 %v395_v42, %v267_v40  ;;  %v523_v52 = vld [vmem:[%s6907_s9 + $0x930] sm:$0xff] }
  0x70   : > { %5972 = vmatprep.subr.bf16.mxu1 %v5971_v31  ;;  %v645_v26 = vld [vmem:[%s6907_s9 + $0xd00] sm:$0xff]  ;;  %v266_v31 = vld [vmem:[%s6907_s9 + $0x128] sm:$0xff]  ;;  %v652_v46 = vld [vmem:[%s6907_s9 + $0xd38] sm:$0xff] }
  0x71   : > { %5807 = vmatmul.mubr.msk.f32.vlgmr.msra.gmra.mrb[10].mxu0 %vm741_vm1, %v6936_v27  ;;  %v6001_v35 = vpack.c.bf16 %v645_v26, %v517_v25  ;;  %v6023_v53 = vpack.c.bf16 %v652_v46, %v524_v45  ;;  %v651_v54 = vld [vmem:[%s6907_s9 + $0xd30] sm:$0xff]  ;;  %v272_v57 = vld [vmem:[%s6907_s9 + $0x158] sm:$0xff]  ;;  %v654_v4 = vld [vmem:[%s6907_s9 + $0xd48] sm:$0xff] }
  0x72   : > { %5808 = vmatmul.mubr.msk.f32.vlgmr.msra.gmra.mrb[10].mxu1 %vm741_vm1, %v6936_v27  ;;  %5966 = vmatpush1.bf16.msra.mxu0 %v5965_v37  ;;  %v6011_v37 = vpack.c.bf16 %v394_v32, %v266_v31  ;;  %v400_v58 = vld [vmem:[%s6907_s9 + $0x558] sm:$0xff]  ;;  %v6025_v60 = vpack.c.bf16 %v651_v54, %v523_v52  ;;  %v271_v0 = vld [vmem:[%s6907_s9 + $0x150] sm:$0xff]  ;;  %v402_v17 = vld [vmem:[%s6907_s9 + $0x568] sm:$0xff] }
  0x73   : > { %5974 = vmatpush1.bf16.msra.mxu1 %v5973_v38  ;;  %5968 = vmatprep.subr.bf16.mxu0 %v5967_v39  ;;  %v265_v38 = vld [vmem:[%s6907_s9 + $0x120] sm:$0xff]  ;;  %v6035_v1 = vpack.c.bf16 %v400_v58, %v272_v57  ;;  %v399_v2 = vld [vmem:[%s6907_s9 + $0x550] sm:$0xff]  ;;  %v528_v5 = vld [vmem:[%s6907_s9 + $0x958] sm:$0xff] }
  0x74   : > { %5976 = vmatprep.subr.bf16.mxu1 %v5975_v43  ;;  %1661 = vmatprep.mubr.f32.mxu0 %v6786_v8  ;;  %v393_v39 = vld [vmem:[%s6907_s9 + $0x520] sm:$0xff]  ;;  %v522_v43 = vld [vmem:[%s6907_s9 + $0x928] sm:$0xff]  ;;  %v656_v6 = vld [vmem:[%s6907_s9 + $0xd58] sm:$0xff]  ;;  %v6037_v9 = vpack.c.bf16 %v399_v2, %v271_v0 }
  0x75   : > { %1732 = vmatprep.mubr.f32.mxu1 %v6786_v8  ;;  %v6013_v47 = vpack.c.bf16 %v393_v39, %v265_v38  ;;  %v527_v13 = vld [vmem:[%s6907_s9 + $0x950] sm:$0xff]  ;;  %v6039_v14 = vpack.c.bf16 %v656_v6, %v528_v5  ;;  %v276_v18 = vld [vmem:[%s6907_s9 + $0x178] sm:$0xff]  ;;  %v658_v30 = vld [vmem:[%s6907_s9 + $0xd68] sm:$0xff] }
  0x76   : > { %5970 = vmatpush1.bf16.msra.mxu0 %v5969_v49  ;;  %v6015_v49 = vpack.c.bf16 %v650_v44, %v522_v43  ;;  %v655_v15 = vld [vmem:[%s6907_s9 + $0xd50] sm:$0xff]  ;;  %v404_v19 = vld [vmem:[%s6907_s9 + $0x578] sm:$0xff]  ;;  %v406_v42 = vld [vmem:[%s6907_s9 + $0x588] sm:$0xff] }
  0x77   : > { %5978 = vmatpush1.bf16.msra.mxu1 %v5977_v50  ;;  %5980 = vmatprep.subr.bf16.mxu0 %v5979_v51  ;;  %v521_v50 = vld [vmem:[%s6907_s9 + $0x920] sm:$0xff]  ;;  %v6041_v21 = vpack.c.bf16 %v655_v15, %v527_v13  ;;  %v275_v25 = vld [vmem:[%s6907_s9 + $0x170] sm:$0xff]  ;;  %v6051_v26 = vpack.c.bf16 %v404_v19, %v276_v18  ;;  %v532_v31 = vld [vmem:[%s6907_s9 + $0x978] sm:$0xff] }
  0x78   : > { %5988 = vmatprep.subr.bf16.mxu1 %v5987_v55  ;;  %v649_v51 = vld [vmem:[%s6907_s9 + $0xd20] sm:$0xff]  ;;  %v270_v55 = vld [vmem:[%s6907_s9 + $0x148] sm:$0xff]  ;;  %v403_v28 = vld [vmem:[%s6907_s9 + $0x570] sm:$0xff] }
  0x79   : > { %5809 = vmatmul.mubr.msk.f32.vlgmr.msra.gmra.mrb[12].mxu0 %vm741_vm1, %v6936_v27  ;;  %v6017_v59 = vpack.c.bf16 %v649_v51, %v521_v50  ;;  %v660_v32 = vld [vmem:[%s6907_s9 + $0xd78] sm:$0xff]  ;;  %v6053_v34 = vpack.c.bf16 %v403_v28, %v275_v25  ;;  %v531_v38 = vld [vmem:[%s6907_s9 + $0x970] sm:$0xff]  ;;  %v662_v54 = vld [vmem:[%s6907_s9 + $0xd88] sm:$0xff] }
  0x7a   : > { %5810 = vmatmul.mubr.msk.f32.vlgmr.msra.gmra.mrb[12].mxu1 %vm741_vm1, %v6936_v27  ;;  %5982 = vmatpush1.bf16.msra.mxu0 %v5981_v61  ;;  %v6027_v61 = vpack.c.bf16 %v398_v56, %v270_v55  ;;  %v6055_v39 = vpack.c.bf16 %v660_v32, %v532_v31  ;;  %v659_v40 = vld [vmem:[%s6907_s9 + $0xd70] sm:$0xff]  ;;  %v280_v43 = vld [vmem:[%s6907_s9 + $0x198] sm:$0xff]  ;;  %v410_v2 = vld [vmem:[%s6907_s9 + $0x5a8] sm:$0xff] }
  0x7b   : > { %5990 = vmatpush1.bf16.msra.mxu1 %v5989_v62  ;;  %5984 = vmatprep.subr.bf16.mxu0 %v5983_v63  ;;  %v269_v62 = vld [vmem:[%s6907_s9 + $0x140] sm:$0xff]  ;;  %v408_v44 = vld [vmem:[%s6907_s9 + $0x598] sm:$0xff]  ;;  %v6057_v46 = vpack.c.bf16 %v659_v40, %v531_v38  ;;  %v279_v50 = vld [vmem:[%s6907_s9 + $0x190] sm:$0xff] }
  0x7c   : > { %5992 = vmatprep.subr.bf16.mxu1 %v5991_v3  ;;  %1803 = vmatprep.mubr.f32.mxu0 %v6786_v8  ;;  %v397_v63 = vld [vmem:[%s6907_s9 + $0x540] sm:$0xff]  ;;  %v526_v3 = vld [vmem:[%s6907_s9 + $0x948] sm:$0xff]  ;;  %v6067_v51 = vpack.c.bf16 %v408_v44, %v280_v43  ;;  %v407_v52 = vld [vmem:[%s6907_s9 + $0x590] sm:$0xff] }
  0x7d   : > { %1874 = vmatprep.mubr.f32.mxu1 %v6786_v8  ;;  %v6029_v7 = vpack.c.bf16 %v397_v63, %v269_v62  ;;  %v536_v55 = vld [vmem:[%s6907_s9 + $0x998] sm:$0xff]  ;;  %v6069_v58 = vpack.c.bf16 %v407_v52, %v279_v50  ;;  %v535_v62 = vld [vmem:[%s6907_s9 + $0x990] sm:$0xff]  ;;  %v666_v15 = vld [vmem:[%s6907_s9 + $0xda8] sm:$0xff] }
  0x7e   : > { %5986 = vmatpush1.bf16.msra.mxu0 %v5985_v10  ;;  %v6031_v10 = vpack.c.bf16 %v654_v4, %v526_v3  ;;  %v664_v56 = vld [vmem:[%s6907_s9 + $0xd98] sm:$0xff]  ;;  %v663_v0 = vld [vmem:[%s6907_s9 + $0xd90] sm:$0xff]  ;;  %v414_v28 = vld [vmem:[%s6907_s9 + $0x5c8] sm:$0xff] }
  0x7f   : > { %5994 = vmatpush1.bf16.msra.mxu1 %v5993_v11  ;;  %5996 = vmatprep.subr.bf16.mxu0 %v5995_v12  ;;  %v525_v11 = vld [vmem:[%s6907_s9 + $0x940] sm:$0xff]  ;;  %v6071_v63 = vpack.c.bf16 %v664_v56, %v536_v55  ;;  %v284_v3 = vld [vmem:[%s6907_s9 + $0x1b8] sm:$0xff]  ;;  %v6073_v6 = vpack.c.bf16 %v663_v0, %v535_v62  ;;  %v411_v13 = vld [vmem:[%s6907_s9 + $0x5b0] sm:$0xff] }
  0x80   : > { %6004 = vmatprep.subr.bf16.mxu1 %v6003_v16  ;;  %v653_v12 = vld [vmem:[%s6907_s9 + $0xd40] sm:$0xff]  ;;  %v274_v16 = vld [vmem:[%s6907_s9 + $0x168] sm:$0xff]  ;;  %v412_v4 = vld [vmem:[%s6907_s9 + $0x5b8] sm:$0xff] }
  0x81   : > { %5811 = vmatmul.mubr.msk.f32.vlgmr.msra.gmra.mrb[14].mxu0 %vm741_vm1, %v6936_v27  ;;  %v6033_v20 = vpack.c.bf16 %v653_v12, %v525_v11  ;;  %v283_v11 = vld [vmem:[%s6907_s9 + $0x1b0] sm:$0xff]  ;;  %v6083_v12 = vpack.c.bf16 %v412_v4, %v284_v3  ;;  %v670_v40 = vld [vmem:[%s6907_s9 + $0xdc8] sm:$0xff]  ;;  %v548_v0 = vld [vmem:[%s6907_s9 + $0x9f8] sm:$0xff] }
  0x82   : > { %5812 = vmatmul.mubr.msk.f32.vlgmr.msra.gmra.mrb[14].mxu1 %vm741_vm1, %v6936_v27  ;;  %5998 = vmatpush1.bf16.msra.mxu0 %v5997_v22  ;;  %v6043_v22 = vpack.c.bf16 %v402_v17, %v274_v16  ;;  %v540_v16 = vld [vmem:[%s6907_s9 + $0x9b8] sm:$0xff]  ;;  %v6085_v19 = vpack.c.bf16 %v411_v13, %v283_v11  ;;  %v667_v25 = vld [vmem:[%s6907_s9 + $0xdb0] sm:$0xff]  ;;  %v418_v52 = vld [vmem:[%s6907_s9 + $0x5e8] sm:$0xff] }
  0x83   : > { %6006 = vmatpush1.bf16.msra.mxu1 %v6005_v23  ;;  %6000 = vmatprep.subr.bf16.mxu0 %v5999_v24  ;;  %v273_v23 = vld [vmem:[%s6907_s9 + $0x160] sm:$0xff]  ;;  %v668_v17 = vld [vmem:[%s6907_s9 + $0xdb8] sm:$0xff]  ;;  %v415_v38 = vld [vmem:[%s6907_s9 + $0x5d0] sm:$0xff] }
  0x84   : > { %6008 = vmatprep.subr.bf16.mxu1 %v6007_v29  ;;  %1945 = vmatprep.mubr.f32.mxu0 %v6786_v8  ;;  %v401_v24 = vld [vmem:[%s6907_s9 + $0x560] sm:$0xff]  ;;  %v530_v29 = vld [vmem:[%s6907_s9 + $0x968] sm:$0xff]  ;;  %v671_v50 = vld [vmem:[%s6907_s9 + $0xdd0] sm:$0xff] }
  0x85   : > { %2016 = vmatprep.mubr.f32.mxu1 %v6786_v8  ;;  %v6045_v33 = vpack.c.bf16 %v401_v24, %v273_v23  ;;  %v539_v23 = vld [vmem:[%s6907_s9 + $0x9b0] sm:$0xff]  ;;  %v6087_v24 = vpack.c.bf16 %v668_v17, %v540_v16  ;;  %v294_v11 = vld [vmem:[%s6907_s9 + $0x208] sm:$0xff] }
  0x86   : > { %6002 = vmatpush1.bf16.msra.mxu0 %v6001_v35  ;;  %v6047_v35 = vpack.c.bf16 %v658_v30, %v530_v29  ;;  %v288_v29 = vld [vmem:[%s6907_s9 + $0x1d8] sm:$0xff]  ;;  %v6089_v32 = vpack.c.bf16 %v667_v25, %v539_v23  ;;  %v419_v62 = vld [vmem:[%s6907_s9 + $0x5f0] sm:$0xff]  ;;  %v678_v25 = vld [vmem:[%s6907_s9 + $0xe08] sm:$0xff] }
  0x87   : > { %6010 = vmatpush1.bf16.msra.mxu1 %v6009_v36  ;;  %6012 = vmatprep.subr.bf16.mxu0 %v6011_v37  ;;  %v529_v36 = vld [vmem:[%s6907_s9 + $0x960] sm:$0xff]  ;;  %v416_v30 = vld [vmem:[%s6907_s9 + $0x5d8] sm:$0xff]  ;;  %v7266_v13 = vld [vmem:[%s7670_s0] sm:$0xff] }
  0x88   : > { %6020 = vmatprep.subr.bf16.mxu1 %v6019_v41  ;;  %v657_v37 = vld [vmem:[%s6907_s9 + $0xd60] sm:$0xff]  ;;  %v278_v41 = vld [vmem:[%s6907_s9 + $0x188] sm:$0xff]  ;;  %v423_v23 = vld [vmem:[%s6907_s9 + $0x610] sm:$0xff] }
  0x89   : > { %5813 = vmatmul.mubr.msk.f32.vlgmr.msra.gmra.mrb[16].mxu0 %vm741_vm1, %v6936_v27  ;;  %v6049_v45 = vpack.c.bf16 %v657_v37, %v529_v36  ;;  %v287_v36 = vld [vmem:[%s6907_s9 + $0x1d0] sm:$0xff]  ;;  %v6099_v37 = vpack.c.bf16 %v416_v30, %v288_v29 }
  0x8a   : > { %5814 = vmatmul.mubr.msk.f32.vlgmr.msra.gmra.mrb[16].mxu1 %vm741_vm1, %v6936_v27  ;;  %6014 = vmatpush1.bf16.msra.mxu0 %v6013_v47  ;;  %v6059_v47 = vpack.c.bf16 %v406_v42, %v278_v41  ;;  %v544_v41 = vld [vmem:[%s6907_s9 + $0x9d8] sm:$0xff]  ;;  %v6101_v44 = vpack.c.bf16 %v415_v38, %v287_v36  ;;  %v679_v36 = vld [vmem:[%s6907_s9 + $0xe10] sm:$0xff]  ;;  %v426_v38 = vld [vmem:[%s6907_s9 + $0x628] sm:$0xff] }
  0x8b   : > { %6022 = vmatpush1.bf16.msra.mxu1 %v6021_v48  ;;  %6016 = vmatprep.subr.bf16.mxu0 %v6015_v49  ;;  %v277_v48 = vld [vmem:[%s6907_s9 + $0x180] sm:$0xff]  ;;  %v672_v42 = vld [vmem:[%s6907_s9 + $0xdd8] sm:$0xff] }
  0x8c   : > { %6024 = vmatprep.subr.bf16.mxu1 %v6023_v53  ;;  %2087 = vmatprep.mubr.f32.mxu0 %v6786_v8  ;;  %v405_v49 = vld [vmem:[%s6907_s9 + $0x580] sm:$0xff]  ;;  %v534_v53 = vld [vmem:[%s6907_s9 + $0x988] sm:$0xff] }
  0x8d   : > { %2158 = vmatprep.mubr.f32.mxu1 %v6786_v8  ;;  %v6061_v57 = vpack.c.bf16 %v405_v49, %v277_v48  ;;  %v543_v48 = vld [vmem:[%s6907_s9 + $0x9d0] sm:$0xff]  ;;  %v6103_v49 = vpack.c.bf16 %v672_v42, %v544_v41 }
  0x8e   : > { %6018 = vmatpush1.bf16.msra.mxu0 %v6017_v59  ;;  %v6063_v59 = vpack.c.bf16 %v662_v54, %v534_v53  ;;  %v292_v53 = vld [vmem:[%s6907_s9 + $0x1f8] sm:$0xff]  ;;  %v6105_v56 = vpack.c.bf16 %v671_v50, %v543_v48  ;;  %v427_v48 = vld [vmem:[%s6907_s9 + $0x630] sm:$0xff]  ;;  %v682_v50 = vld [vmem:[%s6907_s9 + $0xe28] sm:$0xff] }
  0x8f   : > { %6026 = vmatpush1.bf16.msra.mxu1 %v6025_v60  ;;  %6028 = vmatprep.subr.bf16.mxu0 %v6027_v61  ;;  %v533_v60 = vld [vmem:[%s6907_s9 + $0x980] sm:$0xff]  ;;  %v420_v54 = vld [vmem:[%s6907_s9 + $0x5f8] sm:$0xff] }
  0x90   : > { %6036 = vmatprep.subr.bf16.mxu1 %v6035_v1  ;;  %v661_v61 = vld [vmem:[%s6907_s9 + $0xd80] sm:$0xff]  ;;  %v282_v1 = vld [vmem:[%s6907_s9 + $0x1a8] sm:$0xff] }
  0x91   : > { %5815 = vmatmul.mubr.msk.f32.vlgmr.msra.gmra.mrb[18].mxu0 %vm741_vm1, %v6936_v27  ;;  %v6065_v5 = vpack.c.bf16 %v661_v61, %v533_v60  ;;  %v291_v60 = vld [vmem:[%s6907_s9 + $0x1f0] sm:$0xff]  ;;  %v6115_v61 = vpack.c.bf16 %v420_v54, %v292_v53 }
  0x92   : > { %5816 = vmatmul.mubr.msk.f32.vlgmr.msra.gmra.mrb[18].mxu1 %vm741_vm1, %v6936_v27  ;;  %6030 = vmatpush1.bf16.msra.mxu0 %v6029_v7  ;;  %v6075_v7 = vpack.c.bf16 %v410_v2, %v282_v1  ;;  %v676_v1 = vld [vmem:[%s6907_s9 + $0xdf8] sm:$0xff]  ;;  %v6117_v3 = vpack.c.bf16 %v419_v62, %v291_v60  ;;  %v683_v60 = vld [vmem:[%s6907_s9 + $0xe30] sm:$0xff]  ;;  %v430_v62 = vld [vmem:[%s6907_s9 + $0x648] sm:$0xff] }
  0x93   : > { %6038 = vmatpush1.bf16.msra.mxu1 %v6037_v9  ;;  %6032 = vmatprep.subr.bf16.mxu0 %v6031_v10  ;;  %v281_v9 = vld [vmem:[%s6907_s9 + $0x1a0] sm:$0xff] }
  0x94   : > { %6040 = vmatprep.subr.bf16.mxu1 %v6039_v14  ;;  %2229 = vmatprep.mubr.f32.mxu0 %v6786_v8  ;;  %v409_v10 = vld [vmem:[%s6907_s9 + $0x5a0] sm:$0xff]  ;;  %v538_v14 = vld [vmem:[%s6907_s9 + $0x9a8] sm:$0xff] }
  0x95   : > { %2300 = vmatprep.mubr.f32.mxu1 %v6786_v8  ;;  %v6077_v18 = vpack.c.bf16 %v409_v10, %v281_v9  ;;  %v6119_v9 = vpack.c.bf16 %v676_v1, %v548_v0  ;;  %v675_v10 = vld [vmem:[%s6907_s9 + $0xdf0] sm:$0xff] }
  0x96   : > { %6034 = vmatpush1.bf16.msra.mxu0 %v6033_v20  ;;  %v6079_v20 = vpack.c.bf16 %v666_v15, %v538_v14  ;;  %v296_v14 = vld [vmem:[%s6907_s9 + $0x218] sm:$0xff] }
  0x97   : > { %6042 = vmatpush1.bf16.msra.mxu1 %v6041_v21  ;;  %6044 = vmatprep.subr.bf16.mxu0 %v6043_v22  ;;  %v537_v21 = vld [vmem:[%s6907_s9 + $0x9a0] sm:$0xff]  ;;  %v424_v15 = vld [vmem:[%s6907_s9 + $0x618] sm:$0xff] }
  0x98   : > { %6052 = vmatprep.subr.bf16.mxu1 %v6051_v26  ;;  %v665_v22 = vld [vmem:[%s6907_s9 + $0xda0] sm:$0xff]  ;;  %v286_v26 = vld [vmem:[%s6907_s9 + $0x1c8] sm:$0xff] }
  0x99   : > { %5817 = vmatmul.mubr.msk.f32.vlgmr.msra.gmra.mrb[20].mxu0 %vm741_vm1, %v6936_v27  ;;  %v6081_v31 = vpack.c.bf16 %v665_v22, %v537_v21  ;;  %v295_v21 = vld [vmem:[%s6907_s9 + $0x210] sm:$0xff]  ;;  %v6131_v22 = vpack.c.bf16 %v424_v15, %v296_v14 }
  0x9a   : > { %5818 = vmatmul.mubr.msk.f32.vlgmr.msra.gmra.mrb[20].mxu1 %vm741_vm1, %v6936_v27  ;;  %6046 = vmatpush1.bf16.msra.mxu0 %v6045_v33  ;;  %v6091_v33 = vpack.c.bf16 %v414_v28, %v286_v26  ;;  %v552_v26 = vld [vmem:[%s6907_s9 + $0xa18] sm:$0xff]  ;;  %v6133_v30 = vpack.c.bf16 %v423_v23, %v295_v21  ;;  %v687_v21 = vld [vmem:[%s6907_s9 + $0xe50] sm:$0xff]  ;;  %v434_v23 = vld [vmem:[%s6907_s9 + $0x668] sm:$0xff] }
  0x9b   : > { %6054 = vmatpush1.bf16.msra.mxu1 %v6053_v34  ;;  %6048 = vmatprep.subr.bf16.mxu0 %v6047_v35  ;;  %v285_v34 = vld [vmem:[%s6907_s9 + $0x1c0] sm:$0xff]  ;;  %v680_v28 = vld [vmem:[%s6907_s9 + $0xe18] sm:$0xff] }
  0x9c   : > { %6056 = vmatprep.subr.bf16.mxu1 %v6055_v39  ;;  %2371 = vmatprep.mubr.f32.mxu0 %v6786_v8  ;;  %v413_v35 = vld [vmem:[%s6907_s9 + $0x5c0] sm:$0xff]  ;;  %v542_v39 = vld [vmem:[%s6907_s9 + $0x9c8] sm:$0xff] }
  0x9d   : > { %2442 = vmatprep.mubr.f32.mxu1 %v6786_v8  ;;  %v6093_v43 = vpack.c.bf16 %v413_v35, %v285_v34  ;;  %v551_v34 = vld [vmem:[%s6907_s9 + $0xa10] sm:$0xff]  ;;  %v6135_v35 = vpack.c.bf16 %v680_v28, %v552_v26 }
  0x9e   : > { %6050 = vmatpush1.bf16.msra.mxu0 %v6049_v45  ;;  %v6095_v45 = vpack.c.bf16 %v670_v40, %v542_v39  ;;  %v300_v39 = vld [vmem:[%s6907_s9 + $0x238] sm:$0xff]  ;;  %v6137_v42 = vpack.c.bf16 %v679_v36, %v551_v34  ;;  %v435_v34 = vld [vmem:[%s6907_s9 + $0x670] sm:$0xff]  ;;  %v690_v36 = vld [vmem:[%s6907_s9 + $0xe68] sm:$0xff] }
  0x9f   : > { %6058 = vmatpush1.bf16.msra.mxu1 %v6057_v46  ;;  %6060 = vmatprep.subr.bf16.mxu0 %v6059_v47  ;;  %v541_v46 = vld [vmem:[%s6907_s9 + $0x9c0] sm:$0xff]  ;;  %v428_v40 = vld [vmem:[%s6907_s9 + $0x638] sm:$0xff] }
  0xa0   : > { %6068 = vmatprep.subr.bf16.mxu1 %v6067_v51  ;;  %v669_v47 = vld [vmem:[%s6907_s9 + $0xdc0] sm:$0xff]  ;;  %v290_v51 = vld [vmem:[%s6907_s9 + $0x1e8] sm:$0xff] }
  0xa1   : > { %5819 = vmatmul.mubr.msk.f32.vlgmr.msra.gmra.mrb[22].mxu0 %vm741_vm1, %v6936_v27  ;;  %v6097_v55 = vpack.c.bf16 %v669_v47, %v541_v46  ;;  %v299_v46 = vld [vmem:[%s6907_s9 + $0x230] sm:$0xff]  ;;  %v6147_v47 = vpack.c.bf16 %v428_v40, %v300_v39 }
  0xa2   : > { %5820 = vmatmul.mubr.msk.f32.vlgmr.msra.gmra.mrb[22].mxu1 %vm741_vm1, %v6936_v27  ;;  %6062 = vmatpush1.bf16.msra.mxu0 %v6061_v57  ;;  %v6107_v57 = vpack.c.bf16 %v418_v52, %v290_v51  ;;  %v556_v51 = vld [vmem:[%s6907_s9 + $0xa38] sm:$0xff]  ;;  %v6149_v54 = vpack.c.bf16 %v427_v48, %v299_v46  ;;  %v691_v46 = vld [vmem:[%s6907_s9 + $0xe70] sm:$0xff]  ;;  %v438_v48 = vld [vmem:[%s6907_s9 + $0x688] sm:$0xff] }
  0xa3   : > { %6070 = vmatpush1.bf16.msra.mxu1 %v6069_v58  ;;  %6064 = vmatprep.subr.bf16.mxu0 %v6063_v59  ;;  %v289_v58 = vld [vmem:[%s6907_s9 + $0x1e0] sm:$0xff]  ;;  %v684_v52 = vld [vmem:[%s6907_s9 + $0xe38] sm:$0xff] }
  0xa4   : > { %6072 = vmatprep.subr.bf16.mxu1 %v6071_v63  ;;  %2513 = vmatprep.mubr.f32.mxu0 %v6786_v8  ;;  %v417_v59 = vld [vmem:[%s6907_s9 + $0x5e0] sm:$0xff]  ;;  %v674_v63 = vld [vmem:[%s6907_s9 + $0xde8] sm:$0xff] }
  0xa5   : > { %2584 = vmatprep.mubr.f32.mxu1 %v6786_v8  ;;  %v6109_v2 = vpack.c.bf16 %v417_v59, %v289_v58  ;;  %v555_v58 = vld [vmem:[%s6907_s9 + $0xa30] sm:$0xff]  ;;  %v6151_v59 = vpack.c.bf16 %v684_v52, %v556_v51 }
  0xa6   : > { %6066 = vmatpush1.bf16.msra.mxu0 %v6065_v5  ;;  %v545_v5 = vld [vmem:[%s6907_s9 + $0x9e0] sm:$0xff]  ;;  %v6153_v1 = vpack.c.bf16 %v683_v60, %v555_v58  ;;  %v439_v58 = vld [vmem:[%s6907_s9 + $0x690] sm:$0xff]  ;;  %v694_v60 = vld [vmem:[%s6907_s9 + $0xe88] sm:$0xff] }
  0xa7   : > { %6074 = vmatpush1.bf16.msra.mxu1 %v6073_v6  ;;  %6076 = vmatprep.subr.bf16.mxu0 %v6075_v7  ;;  %v673_v6 = vld [vmem:[%s6907_s9 + $0xde0] sm:$0xff]  ;;  %v547_v7 = vld [vmem:[%s6907_s9 + $0x9f0] sm:$0xff] }
  0xa8   : > { %6084 = vmatprep.subr.bf16.mxu1 %v6083_v12  ;;  %v422_v12 = vld [vmem:[%s6907_s9 + $0x608] sm:$0xff]  ;;  %v6113_v16 = vpack.c.bf16 %v673_v6, %v545_v5  ;;  %v6121_v17 = vpack.c.bf16 %v675_v10, %v547_v7  ;;  %v303_v5 = vld [vmem:[%s6907_s9 + $0x250] sm:$0xff] }
  0xa9   : > { %5821 = vmatmul.mubr.msk.f32.vlgmr.msra.gmra.mrb[24].mxu0 %vm741_vm1, %v6936_v27  ;;  %v431_v7 = vld [vmem:[%s6907_s9 + $0x650] sm:$0xff]  ;;  %v686_v10 = vld [vmem:[%s6907_s9 + $0xe48] sm:$0xff] }
  0xaa   : > { %5822 = vmatmul.mubr.msk.f32.vlgmr.msra.gmra.mrb[24].mxu1 %vm741_vm1, %v6936_v27  ;;  %6078 = vmatpush1.bf16.msra.mxu0 %v6077_v18  ;;  %v6123_v18 = vpack.c.bf16 %v422_v12, %v294_v11  ;;  %v560_v11 = vld [vmem:[%s6907_s9 + $0xa58] sm:$0xff]  ;;  %v6165_v15 = vpack.c.bf16 %v431_v7, %v303_v5  ;;  %v695_v5 = vld [vmem:[%s6907_s9 + $0xe90] sm:$0xff]  ;;  %v442_v7 = vld [vmem:[%s6907_s9 + $0x6a8] sm:$0xff] }
  0xab   : > { %6086 = vmatpush1.bf16.msra.mxu1 %v6085_v19  ;;  %6080 = vmatprep.subr.bf16.mxu0 %v6079_v20  ;;  %v293_v19 = vld [vmem:[%s6907_s9 + $0x200] sm:$0xff]  ;;  %v688_v12 = vld [vmem:[%s6907_s9 + $0xe58] sm:$0xff] }
  0xac   : > { %6088 = vmatprep.subr.bf16.mxu1 %v6087_v24  ;;  %2655 = vmatprep.mubr.f32.mxu0 %v6786_v8  ;;  %v421_v20 = vld [vmem:[%s6907_s9 + $0x600] sm:$0xff]  ;;  %v550_v24 = vld [vmem:[%s6907_s9 + $0xa08] sm:$0xff] }
  0xad   : > { %2726 = vmatprep.mubr.f32.mxu1 %v6786_v8  ;;  %v6125_v29 = vpack.c.bf16 %v421_v20, %v293_v19  ;;  %v559_v19 = vld [vmem:[%s6907_s9 + $0xa50] sm:$0xff]  ;;  %v6167_v20 = vpack.c.bf16 %v688_v12, %v560_v11 }
  0xae   : > { %6082 = vmatpush1.bf16.msra.mxu0 %v6081_v31  ;;  %v6127_v31 = vpack.c.bf16 %v678_v25, %v550_v24  ;;  %v308_v24 = vld [vmem:[%s6907_s9 + $0x278] sm:$0xff]  ;;  %v6169_v28 = vpack.c.bf16 %v687_v21, %v559_v19  ;;  %v443_v19 = vld [vmem:[%s6907_s9 + $0x6b0] sm:$0xff]  ;;  %v698_v21 = vld [vmem:[%s6907_s9 + $0xea8] sm:$0xff] }
  0xaf   : > { %6090 = vmatpush1.bf16.msra.mxu1 %v6089_v32  ;;  %6092 = vmatprep.subr.bf16.mxu0 %v6091_v33  ;;  %v549_v32 = vld [vmem:[%s6907_s9 + $0xa00] sm:$0xff]  ;;  %v436_v25 = vld [vmem:[%s6907_s9 + $0x678] sm:$0xff] }
  0xb0   : > { %6100 = vmatprep.subr.bf16.mxu1 %v6099_v37  ;;  %v677_v33 = vld [vmem:[%s6907_s9 + $0xe00] sm:$0xff]  ;;  %v298_v37 = vld [vmem:[%s6907_s9 + $0x228] sm:$0xff] }
  0xb1   : > { %5823 = vmatmul.mubr.msk.f32.vlgmr.msra.gmra.mrb[26].mxu0 %vm741_vm1, %v6936_v27  ;;  %v6129_v41 = vpack.c.bf16 %v677_v33, %v549_v32  ;;  %v307_v32 = vld [vmem:[%s6907_s9 + $0x270] sm:$0xff]  ;;  %v6179_v33 = vpack.c.bf16 %v436_v25, %v308_v24 }
  0xb2   : > { %5824 = vmatmul.mubr.msk.f32.vlgmr.msra.gmra.mrb[26].mxu1 %vm741_vm1, %v6936_v27  ;;  %6094 = vmatpush1.bf16.msra.mxu0 %v6093_v43  ;;  %v546_v27 = vld [vmem:[%s6907_s9 + $0x9e8] sm:$0xff]  ;;  %v6139_v43 = vpack.c.bf16 %v426_v38, %v298_v37  ;;  %v564_v37 = vld [vmem:[%s6907_s9 + $0xa78] sm:$0xff]  ;;  %v6181_v40 = vpack.c.bf16 %v435_v34, %v307_v32  ;;  %v699_v32 = vld [vmem:[%s6907_s9 + $0xeb0] sm:$0xff] }
  0xb3   : > { %6102 = vmatpush1.bf16.msra.mxu1 %v6101_v44  ;;  %6096 = vmatprep.subr.bf16.mxu0 %v6095_v45  ;;  %v6111_v4 = vpack.c.bf16 %v674_v63, %v546_v27  ;;  %v297_v44 = vld [vmem:[%s6907_s9 + $0x220] sm:$0xff]  ;;  %v304_v27 = vld [vmem:[%s6907_s9 + $0x258] sm:$0xff]  ;;  %v446_v34 = vld [vmem:[%s6907_s9 + $0x6c8] sm:$0xff] }
  0xb4   : > { %6104 = vmatprep.subr.bf16.mxu1 %v6103_v49  ;;  %2797 = vmatprep.mubr.f32.mxu0 %v6786_v8  ;;  %v425_v45 = vld [vmem:[%s6907_s9 + $0x620] sm:$0xff]  ;;  %v554_v49 = vld [vmem:[%s6907_s9 + $0xa28] sm:$0xff]  ;;  %v432_v63 = vld [vmem:[%s6907_s9 + $0x658] sm:$0xff] }
  0xb5   : > { %2868 = vmatprep.mubr.f32.mxu1 %v6786_v8  ;;  %v6141_v53 = vpack.c.bf16 %v425_v45, %v297_v44  ;;  %v6163_v6 = vpack.c.bf16 %v432_v63, %v304_v27  ;;  %v692_v38 = vld [vmem:[%s6907_s9 + $0xe78] sm:$0xff]  ;;  %v563_v44 = vld [vmem:[%s6907_s9 + $0xa70] sm:$0xff] }
  0xb6   : > { %6098 = vmatpush1.bf16.msra.mxu0 %v6097_v55  ;;  %v6143_v55 = vpack.c.bf16 %v682_v50, %v554_v49  ;;  %v6183_v45 = vpack.c.bf16 %v692_v38, %v564_v37  ;;  %v312_v49 = vld [vmem:[%s6907_s9 + $0x298] sm:$0xff]  ;;  %v6185_v52 = vpack.c.bf16 %v691_v46, %v563_v44  ;;  %v447_v44 = vld [vmem:[%s6907_s9 + $0x6d0] sm:$0xff]  ;;  %v702_v46 = vld [vmem:[%s6907_s9 + $0xec8] sm:$0xff] }
  0xb7   : > { %6106 = vmatpush1.bf16.msra.mxu1 %v6105_v56  ;;  %6108 = vmatprep.subr.bf16.mxu0 %v6107_v57  ;;  %v553_v56 = vld [vmem:[%s6907_s9 + $0xa20] sm:$0xff]  ;;  %v440_v50 = vld [vmem:[%s6907_s9 + $0x698] sm:$0xff] }
  0xb8   : > { %6116 = vmatprep.subr.bf16.mxu1 %v6115_v61  ;;  %v681_v57 = vld [vmem:[%s6907_s9 + $0xe20] sm:$0xff]  ;;  %v302_v61 = vld [vmem:[%s6907_s9 + $0x248] sm:$0xff] }
  0xb9   : > { %5825 = vmatmul.mubr.msk.f32.vlgmr.msra.gmra.mrb[28].mxu0 %vm741_vm1, %v7266_v13  ;;  %v6145_v0 = vpack.c.bf16 %v681_v57, %v553_v56  ;;  %v311_v56 = vld [vmem:[%s6907_s9 + $0x290] sm:$0xff]  ;;  %v6195_v57 = vpack.c.bf16 %v440_v50, %v312_v49 }
  0xba   : > { %5826 = vmatmul.mubr.msk.f32.vlgmr.msra.gmra.mrb[28].mxu1 %vm741_vm1, %v7266_v13  ;;  %6110 = vmatpush1.bf16.msra.mxu0 %v6109_v2  ;;  %v6155_v2 = vpack.c.bf16 %v430_v62, %v302_v61  ;;  %v568_v61 = vld [vmem:[%s6907_s9 + $0xa98] sm:$0xff]  ;;  %v6197_v63 = vpack.c.bf16 %v439_v58, %v311_v56  ;;  %v703_v56 = vld [vmem:[%s6907_s9 + $0xed0] sm:$0xff]  ;;  %v450_v58 = vld [vmem:[%s6907_s9 + $0x6e8] sm:$0xff] }
  0xbb   : > { %6118 = vmatpush1.bf16.msra.mxu1 %v6117_v3  ;;  %6112 = vmatprep.subr.bf16.mxu0 %v6111_v4  ;;  %v301_v3 = vld [vmem:[%s6907_s9 + $0x240] sm:$0xff]  ;;  %v696_v62 = vld [vmem:[%s6907_s9 + $0xe98] sm:$0xff] }
  0xbc   : > { %6120 = vmatprep.subr.bf16.mxu1 %v6119_v9  ;;  %2939 = vmatprep.mubr.f32.mxu0 %v6786_v8  ;;  %v429_v4 = vld [vmem:[%s6907_s9 + $0x640] sm:$0xff]  ;;  %v558_v9 = vld [vmem:[%s6907_s9 + $0xa48] sm:$0xff] }
  0xbd   : > { %3010 = vmatprep.mubr.f32.mxu1 %v6786_v8  ;;  %v6157_v14 = vpack.c.bf16 %v429_v4, %v301_v3  ;;  %v567_v3 = vld [vmem:[%s6907_s9 + $0xa90] sm:$0xff]  ;;  %v6199_v4 = vpack.c.bf16 %v696_v62, %v568_v61 }
  0xbe   : > { %6114 = vmatpush1.bf16.msra.mxu0 %v6113_v16  ;;  %v6159_v16 = vpack.c.bf16 %v686_v10, %v558_v9  ;;  %v316_v9 = vld [vmem:[%s6907_s9 + $0x2b8] sm:$0xff]  ;;  %v6201_v12 = vpack.c.bf16 %v695_v5, %v567_v3  ;;  %v451_v3 = vld [vmem:[%s6907_s9 + $0x6f0] sm:$0xff]  ;;  %v706_v5 = vld [vmem:[%s6907_s9 + $0xee8] sm:$0xff] }
  0xbf   : > { %6122 = vmatpush1.bf16.msra.mxu1 %v6121_v17  ;;  %6124 = vmatprep.subr.bf16.mxu0 %v6123_v18  ;;  %v557_v17 = vld [vmem:[%s6907_s9 + $0xa40] sm:$0xff]  ;;  %v444_v10 = vld [vmem:[%s6907_s9 + $0x6b8] sm:$0xff] }
  0xc0   : > { %6132 = vmatprep.subr.bf16.mxu1 %v6131_v22  ;;  %v685_v18 = vld [vmem:[%s6907_s9 + $0xe40] sm:$0xff]  ;;  %v306_v22 = vld [vmem:[%s6907_s9 + $0x268] sm:$0xff] }
  0xc1   : > { %5827 = vmatmul.mubr.msk.f32.vlgmr.msra.gmra.mrb[30].mxu0 %vm741_vm1, %v7266_v13  ;;  %v6161_v26 = vpack.c.bf16 %v685_v18, %v557_v17  ;;  %v315_v17 = vld [vmem:[%s6907_s9 + $0x2b0] sm:$0xff]  ;;  %v6211_v18 = vpack.c.bf16 %v444_v10, %v316_v9 }
  0xc2   : > { %5828 = vmatmul.mubr.msk.f32.vlgmr.msra.gmra.mrb[30].mxu1 %vm741_vm1, %v7266_v13  ;;  %6126 = vmatpush1.bf16.msra.mxu0 %v6125_v29  ;;  %v6171_v29 = vpack.c.bf16 %v434_v23, %v306_v22  ;;  %v572_v22 = vld [vmem:[%s6907_s9 + $0xab8] sm:$0xff]  ;;  %v6213_v25 = vpack.c.bf16 %v443_v19, %v315_v17  ;;  %v707_v17 = vld [vmem:[%s6907_s9 + $0xef0] sm:$0xff]  ;;  %v454_v19 = vld [vmem:[%s6907_s9 + $0x708] sm:$0xff] }
  0xc3   : > { %6134 = vmatpush1.bf16.msra.mxu1 %v6133_v30  ;;  %6128 = vmatprep.subr.bf16.mxu0 %v6127_v31  ;;  %v305_v30 = vld [vmem:[%s6907_s9 + $0x260] sm:$0xff]  ;;  %v700_v23 = vld [vmem:[%s6907_s9 + $0xeb8] sm:$0xff] }
  0xc4   : > { %6136 = vmatprep.subr.bf16.mxu1 %v6135_v35  ;;  %3081 = vmatprep.mubr.f32.mxu0 %v6786_v8  ;;  %v433_v31 = vld [vmem:[%s6907_s9 + $0x660] sm:$0xff]  ;;  %v562_v35 = vld [vmem:[%s6907_s9 + $0xa68] sm:$0xff] }
  0xc5   : > { %3152 = vmatprep.mubr.f32.mxu1 %v6786_v8  ;;  %v6173_v39 = vpack.c.bf16 %v433_v31, %v305_v30  ;;  %v571_v30 = vld [vmem:[%s6907_s9 + $0xab0] sm:$0xff]  ;;  %v6215_v31 = vpack.c.bf16 %v700_v23, %v572_v22 }
  0xc6   : > { %6130 = vmatpush1.bf16.msra.mxu0 %v6129_v41  ;;  %v6175_v41 = vpack.c.bf16 %v690_v36, %v562_v35  ;;  %v320_v35 = vld [vmem:[%s6907_s9 + $0x2d8] sm:$0xff]  ;;  %v6217_v38 = vpack.c.bf16 %v699_v32, %v571_v30  ;;  %v455_v30 = vld [vmem:[%s6907_s9 + $0x710] sm:$0xff]  ;;  %v710_v32 = vld [vmem:[%s6907_s9 + $0xf08] sm:$0xff] }
  0xc7   : > { %6138 = vmatpush1.bf16.msra.mxu1 %v6137_v42  ;;  %6140 = vmatprep.subr.bf16.mxu0 %v6139_v43  ;;  %v561_v42 = vld [vmem:[%s6907_s9 + $0xa60] sm:$0xff]  ;;  %v448_v36 = vld [vmem:[%s6907_s9 + $0x6d8] sm:$0xff] }
  0xc8   : > { %6148 = vmatprep.subr.bf16.mxu1 %v6147_v47  ;;  %v689_v43 = vld [vmem:[%s6907_s9 + $0xe60] sm:$0xff]  ;;  %v310_v47 = vld [vmem:[%s6907_s9 + $0x288] sm:$0xff] }
  0xc9   : > { %5829 = vmatmul.mubr.msk.f32.vlgmr.msra.gmra.mrb[32].mxu0 %vm741_vm1, %v7266_v13  ;;  %v6177_v51 = vpack.c.bf16 %v689_v43, %v561_v42  ;;  %v319_v42 = vld [vmem:[%s6907_s9 + $0x2d0] sm:$0xff]  ;;  %v6227_v43 = vpack.c.bf16 %v448_v36, %v320_v35 }
  0xca   : > { %5830 = vmatmul.mubr.msk.f32.vlgmr.msra.gmra.mrb[32].mxu1 %vm741_vm1, %v7266_v13  ;;  %6142 = vmatpush1.bf16.msra.mxu0 %v6141_v53  ;;  %v6187_v53 = vpack.c.bf16 %v438_v48, %v310_v47  ;;  %v576_v47 = vld [vmem:[%s6907_s9 + $0xad8] sm:$0xff]  ;;  %v6229_v50 = vpack.c.bf16 %v447_v44, %v319_v42  ;;  %v711_v42 = vld [vmem:[%s6907_s9 + $0xf10] sm:$0xff]  ;;  %v458_v44 = vld [vmem:[%s6907_s9 + $0x728] sm:$0xff] }
  0xcb   : > { %6150 = vmatpush1.bf16.msra.mxu1 %v6149_v54  ;;  %6144 = vmatprep.subr.bf16.mxu0 %v6143_v55  ;;  %v309_v54 = vld [vmem:[%s6907_s9 + $0x280] sm:$0xff]  ;;  %v704_v48 = vld [vmem:[%s6907_s9 + $0xed8] sm:$0xff] }
  0xcc   : > { %6152 = vmatprep.subr.bf16.mxu1 %v6151_v59  ;;  %3223 = vmatprep.mubr.f32.mxu0 %v6786_v8  ;;  %v437_v55 = vld [vmem:[%s6907_s9 + $0x680] sm:$0xff]  ;;  %v566_v59 = vld [vmem:[%s6907_s9 + $0xa88] sm:$0xff] }
  0xcd   : > { %3294 = vmatprep.mubr.f32.mxu1 %v6786_v8  ;;  %v6189_v27 = vpack.c.bf16 %v437_v55, %v309_v54  ;;  %v575_v54 = vld [vmem:[%s6907_s9 + $0xad0] sm:$0xff]  ;;  %v6231_v55 = vpack.c.bf16 %v704_v48, %v576_v47 }
  0xce   : > { %6146 = vmatpush1.bf16.msra.mxu0 %v6145_v0  ;;  %v6191_v0 = vpack.c.bf16 %v694_v60, %v566_v59  ;;  %v324_v59 = vld [vmem:[%s6907_s9 + $0x2f8] sm:$0xff]  ;;  %v6233_v62 = vpack.c.bf16 %v703_v56, %v575_v54  ;;  %v459_v54 = vld [vmem:[%s6907_s9 + $0x730] sm:$0xff]  ;;  %v714_v56 = vld [vmem:[%s6907_s9 + $0xf28] sm:$0xff] }
  0xcf   : > { %6154 = vmatpush1.bf16.msra.mxu1 %v6153_v1  ;;  %6156 = vmatprep.subr.bf16.mxu0 %v6155_v2  ;;  %v565_v1 = vld [vmem:[%s6907_s9 + $0xa80] sm:$0xff]  ;;  %v452_v60 = vld [vmem:[%s6907_s9 + $0x6f8] sm:$0xff] }
  0xd0   : > { %6164 = vmatprep.subr.bf16.mxu1 %v6163_v6  ;;  %v693_v2 = vld [vmem:[%s6907_s9 + $0xe80] sm:$0xff]  ;;  %v314_v6 = vld [vmem:[%s6907_s9 + $0x2a8] sm:$0xff] }
  0xd1   : > { %5831 = vmatmul.mubr.msk.f32.vlgmr.msra.gmra.mrb[34].mxu0 %vm741_vm1, %v7266_v13  ;;  %v6193_v11 = vpack.c.bf16 %v693_v2, %v565_v1  ;;  %v323_v1 = vld [vmem:[%s6907_s9 + $0x2f0] sm:$0xff]  ;;  %v6243_v2 = vpack.c.bf16 %v452_v60, %v324_v59 }
  0xd2   : > { %5832 = vmatmul.mubr.msk.f32.vlgmr.msra.gmra.mrb[34].mxu1 %vm741_vm1, %v7266_v13  ;;  %6158 = vmatpush1.bf16.msra.mxu0 %v6157_v14  ;;  %v6203_v14 = vpack.c.bf16 %v442_v7, %v314_v6  ;;  %v580_v6 = vld [vmem:[%s6907_s9 + $0xaf8] sm:$0xff]  ;;  %v6245_v10 = vpack.c.bf16 %v451_v3, %v323_v1  ;;  %v715_v1 = vld [vmem:[%s6907_s9 + $0xf30] sm:$0xff]  ;;  %v462_v3 = vld [vmem:[%s6907_s9 + $0x748] sm:$0xff] }
  0xd3   : > { %6166 = vmatpush1.bf16.msra.mxu1 %v6165_v15  ;;  %6160 = vmatprep.subr.bf16.mxu0 %v6159_v16  ;;  %v313_v15 = vld [vmem:[%s6907_s9 + $0x2a0] sm:$0xff]  ;;  %v708_v7 = vld [vmem:[%s6907_s9 + $0xef8] sm:$0xff] }
  0xd4   : > { %6168 = vmatprep.subr.bf16.mxu1 %v6167_v20  ;;  %3365 = vmatprep.mubr.f32.mxu0 %v6786_v8  ;;  %v441_v16 = vld [vmem:[%s6907_s9 + $0x6a0] sm:$0xff]  ;;  %v570_v20 = vld [vmem:[%s6907_s9 + $0xaa8] sm:$0xff] }
  0xd5   : > { %3436 = vmatprep.mubr.f32.mxu1 %v6786_v8  ;;  %v6205_v24 = vpack.c.bf16 %v441_v16, %v313_v15  ;;  %v579_v15 = vld [vmem:[%s6907_s9 + $0xaf0] sm:$0xff]  ;;  %v6247_v16 = vpack.c.bf16 %v708_v7, %v580_v6 }
  0xd6   : > { %6162 = vmatpush1.bf16.msra.mxu0 %v6161_v26  ;;  %v6207_v26 = vpack.c.bf16 %v698_v21, %v570_v20  ;;  %v328_v20 = vld [vmem:[%s6907_s9 + $0x318] sm:$0xff]  ;;  %v6249_v23 = vpack.c.bf16 %v707_v17, %v579_v15  ;;  %v463_v15 = vld [vmem:[%s6907_s9 + $0x750] sm:$0xff]  ;;  %v718_v17 = vld [vmem:[%s6907_s9 + $0xf48] sm:$0xff] }
  0xd7   : > { %6170 = vmatpush1.bf16.msra.mxu1 %v6169_v28  ;;  %6172 = vmatprep.subr.bf16.mxu0 %v6171_v29  ;;  %v569_v28 = vld [vmem:[%s6907_s9 + $0xaa0] sm:$0xff]  ;;  %v456_v21 = vld [vmem:[%s6907_s9 + $0x718] sm:$0xff] }
  0xd8   : > { %6180 = vmatprep.subr.bf16.mxu1 %v6179_v33  ;;  %v697_v29 = vld [vmem:[%s6907_s9 + $0xea0] sm:$0xff]  ;;  %v318_v33 = vld [vmem:[%s6907_s9 + $0x2c8] sm:$0xff] }
  0xd9   : > { %5833 = vmatmul.mubr.msk.f32.vlgmr.msra.gmra.mrb[36].mxu0 %vm741_vm1, %v7266_v13  ;;  %v6209_v37 = vpack.c.bf16 %v697_v29, %v569_v28  ;;  %v327_v28 = vld [vmem:[%s6907_s9 + $0x310] sm:$0xff]  ;;  %v6259_v29 = vpack.c.bf16 %v456_v21, %v328_v20 }
  0xda   : > { %5834 = vmatmul.mubr.msk.f32.vlgmr.msra.gmra.mrb[36].mxu1 %vm741_vm1, %v7266_v13  ;;  %6174 = vmatpush1.bf16.msra.mxu0 %v6173_v39  ;;  %v6219_v39 = vpack.c.bf16 %v446_v34, %v318_v33  ;;  %v584_v33 = vld [vmem:[%s6907_s9 + $0xb18] sm:$0xff]  ;;  %v6261_v36 = vpack.c.bf16 %v455_v30, %v327_v28  ;;  %v719_v28 = vld [vmem:[%s6907_s9 + $0xf50] sm:$0xff]  ;;  %v466_v30 = vld [vmem:[%s6907_s9 + $0x768] sm:$0xff] }
  0xdb   : > { %6182 = vmatpush1.bf16.msra.mxu1 %v6181_v40  ;;  %6176 = vmatprep.subr.bf16.mxu0 %v6175_v41  ;;  %v317_v40 = vld [vmem:[%s6907_s9 + $0x2c0] sm:$0xff]  ;;  %v712_v34 = vld [vmem:[%s6907_s9 + $0xf18] sm:$0xff] }
  0xdc   : > { %6184 = vmatprep.subr.bf16.mxu1 %v6183_v45  ;;  %3507 = vmatprep.mubr.f32.mxu0 %v6786_v8  ;;  %v445_v41 = vld [vmem:[%s6907_s9 + $0x6c0] sm:$0xff]  ;;  %v574_v45 = vld [vmem:[%s6907_s9 + $0xac8] sm:$0xff] }
  0xdd   : > { %3578 = vmatprep.mubr.f32.mxu1 %v6786_v8  ;;  %v6221_v49 = vpack.c.bf16 %v445_v41, %v317_v40  ;;  %v583_v40 = vld [vmem:[%s6907_s9 + $0xb10] sm:$0xff]  ;;  %v6263_v41 = vpack.c.bf16 %v712_v34, %v584_v33 }
  0xde   : > { %6178 = vmatpush1.bf16.msra.mxu0 %v6177_v51  ;;  %v6223_v51 = vpack.c.bf16 %v702_v46, %v574_v45  ;;  %v332_v45 = vld [vmem:[%s6907_s9 + $0x338] sm:$0xff]  ;;  %v6265_v48 = vpack.c.bf16 %v711_v42, %v583_v40  ;;  %v467_v40 = vld [vmem:[%s6907_s9 + $0x770] sm:$0xff]  ;;  %v722_v42 = vld [vmem:[%s6907_s9 + $0xf68] sm:$0xff] }
  0xdf   : > { %6186 = vmatpush1.bf16.msra.mxu1 %v6185_v52  ;;  %6188 = vmatprep.subr.bf16.mxu0 %v6187_v53  ;;  %v573_v52 = vld [vmem:[%s6907_s9 + $0xac0] sm:$0xff]  ;;  %v460_v46 = vld [vmem:[%s6907_s9 + $0x738] sm:$0xff] }
  0xe0   : > { %6196 = vmatprep.subr.bf16.mxu1 %v6195_v57  ;;  %v701_v53 = vld [vmem:[%s6907_s9 + $0xec0] sm:$0xff]  ;;  %v322_v57 = vld [vmem:[%s6907_s9 + $0x2e8] sm:$0xff] }
  0xe1   : > { %5835 = vmatmul.mubr.msk.f32.vlgmr.msra.gmra.mrb[38].mxu0 %vm741_vm1, %v7266_v13  ;;  %v6225_v61 = vpack.c.bf16 %v701_v53, %v573_v52  ;;  %v331_v52 = vld [vmem:[%s6907_s9 + $0x330] sm:$0xff]  ;;  %v6275_v53 = vpack.c.bf16 %v460_v46, %v332_v45 }
  0xe2   : > { %5836 = vmatmul.mubr.msk.f32.vlgmr.msra.gmra.mrb[38].mxu1 %vm741_vm1, %v7266_v13  ;;  %6190 = vmatpush1.bf16.msra.mxu0 %v6189_v27  ;;  %v6235_v27 = vpack.c.bf16 %v450_v58, %v322_v57  ;;  %v588_v57 = vld [vmem:[%s6907_s9 + $0xb38] sm:$0xff]  ;;  %v6277_v60 = vpack.c.bf16 %v459_v54, %v331_v52  ;;  %v723_v52 = vld [vmem:[%s6907_s9 + $0xf70] sm:$0xff]  ;;  %v470_v54 = vld [vmem:[%s6907_s9 + $0x788] sm:$0xff] }
  0xe3   : > { %6198 = vmatpush1.bf16.msra.mxu1 %v6197_v63  ;;  %6192 = vmatprep.subr.bf16.mxu0 %v6191_v0  ;;  %v321_v63 = vld [vmem:[%s6907_s9 + $0x2e0] sm:$0xff]  ;;  %v716_v58 = vld [vmem:[%s6907_s9 + $0xf38] sm:$0xff] }
  0xe4   : > { %6200 = vmatprep.subr.bf16.mxu1 %v6199_v4  ;;  %3649 = vmatprep.mubr.f32.mxu0 %v6786_v8  ;;  %v449_v0 = vld [vmem:[%s6907_s9 + $0x6e0] sm:$0xff]  ;;  %v578_v4 = vld [vmem:[%s6907_s9 + $0xae8] sm:$0xff] }
  0xe5   : > { %3720 = vmatprep.mubr.f32.mxu1 %v6786_v8  ;;  %v6237_v9 = vpack.c.bf16 %v449_v0, %v321_v63  ;;  %v587_v63 = vld [vmem:[%s6907_s9 + $0xb30] sm:$0xff]  ;;  %v6279_v0 = vpack.c.bf16 %v716_v58, %v588_v57 }
  0xe6   : > { %6194 = vmatpush1.bf16.msra.mxu0 %v6193_v11  ;;  %v6239_v11 = vpack.c.bf16 %v706_v5, %v578_v4  ;;  %v336_v4 = vld [vmem:[%s6907_s9 + $0x358] sm:$0xff]  ;;  %v6281_v7 = vpack.c.bf16 %v715_v1, %v587_v63  ;;  %v598_v1 = vld [vmem:[%s6907_s9 + $0xb88] sm:$0xff] }
  0xe7   : > { %6202 = vmatpush1.bf16.msra.mxu1 %v6201_v12  ;;  %6204 = vmatprep.subr.bf16.mxu0 %v6203_v14  ;;  %v577_v12 = vld [vmem:[%s6907_s9 + $0xae0] sm:$0xff]  ;;  %v464_v5 = vld [vmem:[%s6907_s9 + $0x758] sm:$0xff] }
  0xe8   : > { %6212 = vmatprep.subr.bf16.mxu1 %v6211_v18  ;;  %v705_v14 = vld [vmem:[%s6907_s9 + $0xee0] sm:$0xff]  ;;  %v326_v18 = vld [vmem:[%s6907_s9 + $0x308] sm:$0xff] }
  0xe9   : > { %5837 = vmatmul.mubr.msk.f32.vlgmr.msra.gmra.mrb[40].mxu0 %vm741_vm1, %v7266_v13  ;;  %v6241_v22 = vpack.c.bf16 %v705_v14, %v577_v12  ;;  %v335_v12 = vld [vmem:[%s6907_s9 + $0x350] sm:$0xff]  ;;  %v6291_v14 = vpack.c.bf16 %v464_v5, %v336_v4  ;;  %v600_v5 = vld [vmem:[%s6907_s9 + $0xb98] sm:$0xff] }
  0xea   : > { %5838 = vmatmul.mubr.msk.f32.vlgmr.msra.gmra.mrb[40].mxu1 %vm741_vm1, %v7266_v13  ;;  %6206 = vmatpush1.bf16.msra.mxu0 %v6205_v24  ;;  %v6251_v24 = vpack.c.bf16 %v454_v19, %v326_v18  ;;  %v592_v18 = vld [vmem:[%s6907_s9 + $0xb58] sm:$0xff]  ;;  %v6293_v21 = vpack.c.bf16 %v463_v15, %v335_v12  ;;  %v597_v12 = vld [vmem:[%s6907_s9 + $0xb80] sm:$0xff]  ;;  %v599_v15 = vld [vmem:[%s6907_s9 + $0xb90] sm:$0xff] }
  0xeb   : > { %6214 = vmatpush1.bf16.msra.mxu1 %v6213_v25  ;;  %6208 = vmatprep.subr.bf16.mxu0 %v6207_v26  ;;  %v325_v25 = vld [vmem:[%s6907_s9 + $0x300] sm:$0xff]  ;;  %v720_v19 = vld [vmem:[%s6907_s9 + $0xf58] sm:$0xff] }
  0xec   : > { %6216 = vmatprep.subr.bf16.mxu1 %v6215_v31  ;;  %3791 = vmatprep.mubr.f32.mxu0 %v6786_v8  ;;  %v453_v26 = vld [vmem:[%s6907_s9 + $0x700] sm:$0xff]  ;;  %v582_v31 = vld [vmem:[%s6907_s9 + $0xb08] sm:$0xff] }
  0xed   : > { %3862 = vmatprep.mubr.f32.mxu1 %v6786_v8  ;;  %v6253_v35 = vpack.c.bf16 %v453_v26, %v325_v25  ;;  %v591_v25 = vld [vmem:[%s6907_s9 + $0xb50] sm:$0xff]  ;;  %v6295_v26 = vpack.c.bf16 %v720_v19, %v592_v18  ;;  %v346_v18 = vld [vmem:[%s6907_s9 + $0x3a8] sm:$0xff] }
  0xee   : > { %6210 = vmatpush1.bf16.msra.mxu0 %v6209_v37  ;;  %v6255_v37 = vpack.c.bf16 %v710_v32, %v582_v31  ;;  %v340_v31 = vld [vmem:[%s6907_s9 + $0x378] sm:$0xff]  ;;  %v6297_v34 = vpack.c.bf16 %v719_v28, %v591_v25  ;;  %v474_v19 = vld [vmem:[%s6907_s9 + $0x7a8] sm:$0xff]  ;;  %v345_v25 = vld [vmem:[%s6907_s9 + $0x3a0] sm:$0xff] }
  0xef   : > { %6218 = vmatpush1.bf16.msra.mxu1 %v6217_v38  ;;  %6220 = vmatprep.subr.bf16.mxu0 %v6219_v39  ;;  %v581_v38 = vld [vmem:[%s6907_s9 + $0xb00] sm:$0xff]  ;;  %v468_v32 = vld [vmem:[%s6907_s9 + $0x778] sm:$0xff]  ;;  %v347_v28 = vld [vmem:[%s6907_s9 + $0x3b0] sm:$0xff] }
  0xf0   : > { %6228 = vmatprep.subr.bf16.mxu1 %v6227_v43  ;;  %v709_v39 = vld [vmem:[%s6907_s9 + $0xf00] sm:$0xff]  ;;  %v330_v43 = vld [vmem:[%s6907_s9 + $0x328] sm:$0xff] }
  0xf1   : > { %5839 = vmatmul.mubr.msk.f32.vlgmr.msra.gmra.mrb[42].mxu0 %vm741_vm1, %v7266_v13  ;;  %v6257_v47 = vpack.c.bf16 %v709_v39, %v581_v38  ;;  %v339_v38 = vld [vmem:[%s6907_s9 + $0x370] sm:$0xff]  ;;  %v6307_v39 = vpack.c.bf16 %v468_v32, %v340_v31  ;;  %v730_v32 = vld [vmem:[%s6907_s9 + $0xfa8] sm:$0xff] }
  0xf2   : > { %5840 = vmatmul.mubr.msk.f32.vlgmr.msra.gmra.mrb[42].mxu1 %vm741_vm1, %v7266_v13  ;;  %6222 = vmatpush1.bf16.msra.mxu0 %v6221_v49  ;;  %v6267_v49 = vpack.c.bf16 %v458_v44, %v330_v43  ;;  %v596_v43 = vld [vmem:[%s6907_s9 + $0xb78] sm:$0xff]  ;;  %v6309_v46 = vpack.c.bf16 %v467_v40, %v339_v38  ;;  %v475_v31 = vld [vmem:[%s6907_s9 + $0x7b0] sm:$0xff] }
  0xf3   : > { %6230 = vmatpush1.bf16.msra.mxu1 %v6229_v50  ;;  %6224 = vmatprep.subr.bf16.mxu0 %v6223_v51  ;;  %v329_v50 = vld [vmem:[%s6907_s9 + $0x320] sm:$0xff]  ;;  %v724_v44 = vld [vmem:[%s6907_s9 + $0xf78] sm:$0xff]  ;;  %v6341_v40 = vpack.c.bf16 %v475_v31, %v347_v28 }
  0xf4   : > { %6232 = vmatprep.subr.bf16.mxu1 %v6231_v55  ;;  %3933 = vmatprep.mubr.f32.mxu0 %v6786_v8  ;;  %v457_v51 = vld [vmem:[%s6907_s9 + $0x720] sm:$0xff]  ;;  %v586_v55 = vld [vmem:[%s6907_s9 + $0xb28] sm:$0xff] }
  0xf5   : > { %4004 = vmatprep.mubr.f32.mxu1 %v6786_v8  ;;  %v6269_v59 = vpack.c.bf16 %v457_v51, %v329_v50  ;;  %v595_v50 = vld [vmem:[%s6907_s9 + $0xb70] sm:$0xff]  ;;  %v6311_v51 = vpack.c.bf16 %v724_v44, %v596_v43  ;;  %v729_v43 = vld [vmem:[%s6907_s9 + $0xfa0] sm:$0xff] }
  0xf6   : > { %6226 = vmatpush1.bf16.msra.mxu0 %v6225_v61  ;;  %v6271_v61 = vpack.c.bf16 %v714_v56, %v586_v55  ;;  %v344_v55 = vld [vmem:[%s6907_s9 + $0x398] sm:$0xff]  ;;  %v6313_v58 = vpack.c.bf16 %v723_v52, %v595_v50  ;;  %v603_v44 = vld [vmem:[%s6907_s9 + $0xbb0] sm:$0xff] }
  0xf7   : > { %6234 = vmatpush1.bf16.msra.mxu1 %v6233_v62  ;;  %6236 = vmatprep.subr.bf16.mxu0 %v6235_v27  ;;  %v585_v62 = vld [vmem:[%s6907_s9 + $0xb20] sm:$0xff]  ;;  %v472_v56 = vld [vmem:[%s6907_s9 + $0x798] sm:$0xff] }
  0xf8   : > { %6244 = vmatprep.subr.bf16.mxu1 %v6243_v2  ;;  %v713_v27 = vld [vmem:[%s6907_s9 + $0xf20] sm:$0xff]  ;;  %v334_v2 = vld [vmem:[%s6907_s9 + $0x348] sm:$0xff]  ;;  %v6323_v63 = vpack.c.bf16 %v472_v56, %v344_v55  ;;  %v352_v52 = vld [vmem:[%s6907_s9 + $0x3d8] sm:$0xff] }
  0xf9   : > { %5841 = vmatmul.mubr.msk.f32.vlgmr.msra.gmra.mrb[44].mxu0 %vm741_vm1, %v7266_v13  ;;  %v6273_v6 = vpack.c.bf16 %v713_v27, %v585_v62  ;;  %v343_v62 = vld [vmem:[%s6907_s9 + $0x390] sm:$0xff]  ;;  %v349_v56 = vld [vmem:[%s6907_s9 + $0x3c0] sm:$0xff] }
  0xfa   : > { %5842 = vmatmul.mubr.msk.f32.vlgmr.msra.gmra.mrb[44].mxu1 %vm741_vm1, %v7266_v13  ;;  %6238 = vmatpush1.bf16.msra.mxu0 %v6237_v9  ;;  %v6283_v9 = vpack.c.bf16 %v462_v3, %v334_v2  ;;  %v726_v2 = vld [vmem:[%s6907_s9 + $0xf88] sm:$0xff] }
  0xfb   : > { %6246 = vmatpush1.bf16.msra.mxu1 %v6245_v10  ;;  %6240 = vmatprep.subr.bf16.mxu0 %v6239_v11  ;;  %v333_v10 = vld [vmem:[%s6907_s9 + $0x340] sm:$0xff] }
  0xfc   : > { %6248 = vmatprep.subr.bf16.mxu1 %v6247_v16  ;;  %4075 = vmatprep.mubr.f32.mxu0 %v6786_v8  ;;  %v461_v11 = vld [vmem:[%s6907_s9 + $0x740] sm:$0xff]  ;;  %v590_v16 = vld [vmem:[%s6907_s9 + $0xb48] sm:$0xff] }
  0xfd   : > { %4146 = vmatprep.mubr.f32.mxu1 %v6786_v8  ;;  %v6285_v20 = vpack.c.bf16 %v461_v11, %v333_v10  ;;  %v6319_v11 = vpack.c.bf16 %v726_v2, %v598_v1 }
  0xfe   : > { %6242 = vmatpush1.bf16.msra.mxu0 %v6241_v22  ;;  %v6287_v22 = vpack.c.bf16 %v718_v17, %v590_v16  ;;  %v727_v17 = vld [vmem:[%s6907_s9 + $0xf90] sm:$0xff] }
  0xff   : > { %6250 = vmatpush1.bf16.msra.mxu1 %v6249_v23  ;;  %6252 = vmatprep.subr.bf16.mxu0 %v6251_v24  ;;  %v589_v23 = vld [vmem:[%s6907_s9 + $0xb40] sm:$0xff] }
 0x100   : > { %6260 = vmatprep.subr.bf16.mxu1 %v6259_v29  ;;  %v717_v24 = vld [vmem:[%s6907_s9 + $0xf40] sm:$0xff]  ;;  %v338_v29 = vld [vmem:[%s6907_s9 + $0x368] sm:$0xff] }
 0x101   : > { %5843 = vmatmul.mubr.msk.f32.vlgmr.msra.gmra.mrb[46].mxu0 %vm741_vm1, %v7266_v13  ;;  %v6289_v33 = vpack.c.bf16 %v717_v24, %v589_v23  ;;  %v6329_v23 = vpack.c.bf16 %v727_v17, %v599_v15  ;;  %v6331_v24 = vpack.c.bf16 %v474_v19, %v346_v18  ;;  %v733_v17 = vld [vmem:[%s6907_s9 + $0xfc0] sm:$0xff]  ;;  %v607_v18 = vld [vmem:[%s6907_s9 + $0xbd0] sm:$0xff] }
 0x102   : > { %5844 = vmatmul.mubr.msk.f32.vlgmr.msra.gmra.mrb[46].mxu1 %vm741_vm1, %v7266_v13  ;;  %6254 = vmatpush1.bf16.msra.mxu0 %v6253_v35  ;;  %v6299_v35 = vpack.c.bf16 %v466_v30, %v338_v29 }
 0x103   : > { %6262 = vmatpush1.bf16.msra.mxu1 %v6261_v36  ;;  %6256 = vmatprep.subr.bf16.mxu0 %v6255_v37  ;;  %v337_v36 = vld [vmem:[%s6907_s9 + $0x360] sm:$0xff] }
 0x104   : > { %6264 = vmatprep.subr.bf16.mxu1 %v6263_v41  ;;  %4217 = vmatprep.mubr.f32.mxu0 %v6786_v8  ;;  %v465_v37 = vld [vmem:[%s6907_s9 + $0x760] sm:$0xff]  ;;  %v594_v41 = vld [vmem:[%s6907_s9 + $0xb68] sm:$0xff] }
 0x105   : > { %4288 = vmatprep.mubr.f32.mxu1 %v6786_v8  ;;  %v6301_v45 = vpack.c.bf16 %v465_v37, %v337_v36  ;;  %v732_v36 = vld [vmem:[%s6907_s9 + $0xfb8] sm:$0xff] }
 0x106   : > { %6258 = vmatpush1.bf16.msra.mxu0 %v6257_v47  ;;  %v6303_v47 = vpack.c.bf16 %v722_v42, %v594_v41  ;;  %v601_v42 = vld [vmem:[%s6907_s9 + $0xba0] sm:$0xff] }
 0x107   : > { %6266 = vmatpush1.bf16.msra.mxu1 %v6265_v48  ;;  %6268 = vmatprep.subr.bf16.mxu0 %v6267_v49  ;;  %v593_v48 = vld [vmem:[%s6907_s9 + $0xb60] sm:$0xff]  ;;  %v6337_v55 = vpack.c.bf16 %v729_v43, %v601_v42  ;;  %v612_v43 = vld [vmem:[%s6907_s9 + $0xbf8] sm:$0xff] }
 0x108   : > { %6276 = vmatprep.subr.bf16.mxu1 %v6275_v53  ;;  %v721_v49 = vld [vmem:[%s6907_s9 + $0xf60] sm:$0xff]  ;;  %v342_v53 = vld [vmem:[%s6907_s9 + $0x388] sm:$0xff] }
 0x109   : > { %5845 = vmatmul.mubr.msk.f32.vlgmr.msra.gmra.mrb[48].mxu0 %vm741_vm1, %v7266_v13  ;;  %v6305_v57 = vpack.c.bf16 %v721_v49, %v593_v48  ;;  %v350_v48 = vld [vmem:[%s6907_s9 + $0x3c8] sm:$0xff] }
 0x10a   : > { %5846 = vmatmul.mubr.msk.f32.vlgmr.msra.gmra.mrb[48].mxu1 %vm741_vm1, %v7266_v13  ;;  %6270 = vmatpush1.bf16.msra.mxu0 %v6269_v59  ;;  %v6315_v59 = vpack.c.bf16 %v470_v54, %v342_v53  ;;  %v478_v49 = vld [vmem:[%s6907_s9 + $0x7c8] sm:$0xff]  ;;  %v480_v53 = vld [vmem:[%s6907_s9 + $0x7d8] sm:$0xff] }
 0x10b   : > { %6278 = vmatpush1.bf16.msra.mxu1 %v6277_v60  ;;  %6272 = vmatprep.subr.bf16.mxu0 %v6271_v61  ;;  %v341_v60 = vld [vmem:[%s6907_s9 + $0x380] sm:$0xff] }
 0x10c   : > { %6280 = vmatprep.subr.bf16.mxu1 %v6279_v0  ;;  %4359 = vmatprep.mubr.f32.mxu0 %v6786_v8  ;;  %v469_v61 = vld [vmem:[%s6907_s9 + $0x780] sm:$0xff]  ;;  %v471_v0 = vld [vmem:[%s6907_s9 + $0x790] sm:$0xff] }
 0x10d   : > { %4430 = vmatprep.mubr.f32.mxu1 %v6786_v8  ;;  %v6325_v10 = vpack.c.bf16 %v471_v0, %v343_v62  ;;  %v734_v0 = vld [vmem:[%s6907_s9 + $0xfc8] sm:$0xff] }
 0x10e   : > { %6274 = vmatpush1.bf16.msra.mxu0 %v6273_v6  ;;  %v728_v6 = vld [vmem:[%s6907_s9 + $0xf98] sm:$0xff] }
 0x10f   : > { %6282 = vmatpush1.bf16.msra.mxu1 %v6281_v7  ;;  %6284 = vmatprep.subr.bf16.mxu0 %v6283_v9  ;;  %v6317_v9 = vpack.c.bf16 %v469_v61, %v341_v60  ;;  %v6327_v16 = vpack.c.bf16 %v728_v6, %v600_v5  ;;  %v351_v60 = vld [vmem:[%s6907_s9 + $0x3d0] sm:$0xff]  ;;  %v608_v5 = vld [vmem:[%s6907_s9 + $0xbd8] sm:$0xff] }
 0x110   : > { %6292 = vmatprep.subr.bf16.mxu1 %v6291_v14  ;;  %v725_v14 = vld [vmem:[%s6907_s9 + $0xf80] sm:$0xff]  ;;  %v479_v61 = vld [vmem:[%s6907_s9 + $0x7d0] sm:$0xff]  ;;  %v736_v6 = vld [vmem:[%s6907_s9 + $0xfd8] sm:$0xff] }
 0x111   : > { %5847 = vmatmul.mubr.msk.f32.vlgmr.msra.gmra.mrb[50].mxu0 %vm741_vm1, %v7266_v13 }
 0x112   : > { %5848 = vmatmul.mubr.msk.f32.vlgmr.msra.gmra.mrb[50].mxu1 %vm741_vm1, %v7266_v13  ;;  %6286 = vmatpush1.bf16.msra.mxu0 %v6285_v20  ;;  %v348_v20 = vld [vmem:[%s6907_s9 + $0x3b8] sm:$0xff] }
 0x113   : > { %6294 = vmatpush1.bf16.msra.mxu1 %v6293_v21  ;;  %6288 = vmatprep.subr.bf16.mxu0 %v6287_v22  ;;  %v476_v21 = vld [vmem:[%s6907_s9 + $0x7b8] sm:$0xff]  ;;  %v6321_v22 = vpack.c.bf16 %v725_v14, %v597_v12  ;;  %v605_v12 = vld [vmem:[%s6907_s9 + $0xbc0] sm:$0xff] }
 0x114   : > { %6296 = vmatprep.subr.bf16.mxu1 %v6295_v26  ;;  %4501 = vmatprep.mubr.f32.mxu0 %v6786_v8  ;;  %v473_v26 = vld [vmem:[%s6907_s9 + $0x7a0] sm:$0xff]  ;;  %v6339_v30 = vpack.c.bf16 %v476_v21, %v348_v20  ;;  %v6359_v20 = vpack.c.bf16 %v736_v6, %v608_v5  ;;  %v735_v21 = vld [vmem:[%s6907_s9 + $0xfd0] sm:$0xff] }
 0x115   : > { %4572 = vmatprep.mubr.f32.mxu1 %v6786_v8  ;;  %v6333_v38 = vpack.c.bf16 %v473_v26, %v345_v25  ;;  %v356_v25 = vld [vmem:[%s6907_s9 + $0x3f8] sm:$0xff] }
 0x116   : > { %6290 = vmatpush1.bf16.msra.mxu0 %v6289_v33  ;;  %v484_v26 = vld [vmem:[%s6907_s9 + $0x7f8] sm:$0xff] }
 0x117   : > { %6298 = vmatpush1.bf16.msra.mxu1 %v6297_v34  ;;  %6300 = vmatprep.subr.bf16.mxu0 %v6299_v35  ;;  %v604_v35 = vld [vmem:[%s6907_s9 + $0xbb8] sm:$0xff] }
 0x118   : > { %6308 = vmatprep.subr.bf16.mxu1 %v6307_v39 }
 0x119   : > { %5849 = vmatmul.mubr.msk.f32.vlgmr.msra.gmra.mrb[52].mxu0 %vm741_vm1, %v7266_v13 }
 0x11a   : > { %5850 = vmatmul.mubr.msk.f32.vlgmr.msra.gmra.mrb[52].mxu1 %vm741_vm1, %v7266_v13  ;;  %6302 = vmatpush1.bf16.msra.mxu0 %v6301_v45 }
 0x11b   : > { %6310 = vmatpush1.bf16.msra.mxu1 %v6309_v46  ;;  %6304 = vmatprep.subr.bf16.mxu0 %v6303_v47  ;;  %v6343_v46 = vpack.c.bf16 %v732_v36, %v604_v35  ;;  %v731_v47 = vld [vmem:[%s6907_s9 + $0xfb0] sm:$0xff]  ;;  %v6371_v35 = vpack.c.bf16 %v484_v26, %v356_v25 }
 0x11c   : > { %v811_v27 = vpop.f32.mrb[0].mxu0  ;;  %6312 = vmatprep.subr.bf16.mxu1 %v6311_v51  ;;  %4643 = vmatprep.mubr.f32.mxu0 %v6786_v8  ;;  %v7587_v51 = vld [vmem:[%s7670_s0] sm:$0xff] }
 0x11d   : > { %v882_v3 = vpop.f32.mrb[0].mxu1  ;;  %v813_v4 = vpop.f32.mrb[1].mxu0  ;;  %4714 = vmatprep.mubr.f32.mxu1 %v6786_v8  ;;  %v5290_v39 = vmul.f32 1.442695, %v811_v27  ;;  %v6355_v27 = vpack.c.bf16 %v480_v53, %v352_v52  ;;  %v483_v36 = vld [vmem:[%s6907_s9 + $0x7f0] sm:$0xff] }
 0x11e   : > { %v884_v7 = vpop.f32.mrb[1].mxu1  ;;  %6306 = vmatpush1.bf16.msra.mxu0 %v6305_v57  ;;  %v5294_v45 = vmul.f32 1.442695, %v882_v3  ;;  %v5292_v50 = vmul.f32 1.442695, %v813_v4  ;;  %v477_v57 = vld [vmem:[%s6907_s9 + $0x7c0] sm:$0xff] }
 0x11f   : > { %6314 = vmatpush1.bf16.msra.mxu1 %v6313_v58  ;;  %6316 = vmatprep.subr.bf16.mxu0 %v6315_v59  ;;  %v5296_v54 = vmul.f32 1.442695, %v884_v7  ;;  %6440 = vpow2.f32 %v5290_v39  ;;  %v6345_v58 = vpack.c.bf16 %v731_v47, %v603_v44  ;;  %v6347_v59 = vpack.c.bf16 %v478_v49, %v350_v48  ;;  %v740_v44 = vld [vmem:[%s6907_s9 + $0xff8] sm:$0xff] }
 0x120   : > { %6324 = vmatprep.subr.bf16.mxu1 %v6323_v63  ;;  %6442 = vpow2.f32 %v5294_v45  ;;  %v606_v63 = vld [vmem:[%s6907_s9 + $0xbc8] sm:$0xff]  ;;  %v6349_v4 = vpack.c.bf16 %v477_v57, %v349_v56  ;;  %v737_v56 = vld [vmem:[%s6907_s9 + $0xfe0] sm:$0xff] }
 0x121   : > { %5851 = vmatmul.mubr.msk.f32.vlgmr.msra.gmra.mrb[54].mxu0 %vm741_vm1, %v7266_v13  ;;  %6444 = vpow2.f32 %v5292_v50 }
 0x122   : > { %5852 = vmatmul.mubr.msk.f32.vlgmr.msra.gmra.mrb[54].mxu1 %vm741_vm1, %v7266_v13  ;;  %6318 = vmatpush1.bf16.msra.mxu0 %v6317_v9  ;;  %v602_v13 = vld [vmem:[%s6907_s9 + $0xba8] sm:$0xff]  ;;  %6446 = vpow2.f32 %v5296_v54 }
 0x123   : > { %6326 = vmatpush1.bf16.msra.mxu1 %v6325_v10  ;;  %6320 = vmatprep.subr.bf16.mxu0 %v6319_v11  ;;  %v6335_v41 = vpack.c.bf16 %v730_v32, %v602_v13  ;;  %v6357_v11 = vpack.c.bf16 %v479_v61, %v351_v60  ;;  %v353_v13 = vld [vmem:[%s6907_s9 + $0x3e0] sm:$0xff]  ;;  %v739_v60 = vld [vmem:[%s6907_s9 + $0xff0] sm:$0xff] }
 0x124   : > { %v7563_v29 = vpop.f32.mrb[2].mxu0  ;;  %6328 = vmatprep.subr.bf16.mxu1 %v6327_v16  ;;  %4785 = vmatprep.mubr.f32.mxu0 %v6786_v8  ;;  %v6351_v16 = vpack.c.bf16 %v734_v0, %v606_v63  ;;  %v481_v32 = vld [vmem:[%s6907_s9 + $0x7e0] sm:$0xff] }
 0x125   : > { %v7569_v33 = vpop.f32.mrb[2].mxu1  ;;  %v7571_v34 = vpop.f32.mrb[3].mxu0  ;;  %4856 = vmatprep.mubr.f32.mxu1 %v6786_v8  ;;  %v5298_v14 = vmul.f32 1.442695, %v7563_v29  ;;  %v6353_v29 = vpack.c.bf16 %v733_v17, %v605_v12  ;;  %v6365_v49 = vpack.c.bf16 %v481_v32, %v353_v13 }
 0x126   : > { %v7576_v37 = vpop.f32.mrb[3].mxu1  ;;  %6322 = vmatpush1.bf16.msra.mxu0 %v6321_v22  ;;  %v5302_v19 = vmul.f32 1.442695, %v7569_v33  ;;  %v354_v22 = vld [vmem:[%s6907_s9 + $0x3e8] sm:$0xff]  ;;  %v355_v33 = vld [vmem:[%s6907_s9 + $0x3f0] sm:$0xff] }
 0x127   : > { %6330 = vmatpush1.bf16.msra.mxu1 %v6329_v23  ;;  %6332 = vmatprep.subr.bf16.mxu0 %v6331_v24  ;;  %v482_v23 = vld [vmem:[%s6907_s9 + $0x7e8] sm:$0xff]  ;;  %v5300_v24 = vmul.f32 1.442695, %v7571_v34  ;;  %v5304_v28 = vmul.f32 1.442695, %v7576_v37  ;;  %v6373_v53 = vpack.c.bf16 %v483_v36, %v355_v33 }
 0x128   : > { %6340 = vmatprep.subr.bf16.mxu1 %v6339_v30  ;;  %v6361_v30 = vpack.c.bf16 %v735_v21, %v607_v18  ;;  %v6363_v31 = vpack.c.bf16 %v482_v23, %v354_v22  ;;  %v610_v37 = vld [vmem:[%s6907_s9 + $0xbe8] sm:$0xff] }
 0x129   : > { %5853 = vmatmul.mubr.msk.f32.vlgmr.msra.gmra.mrb[56].mxu0 %vm741_vm1, %v7587_v51  ;;  %v6441_v39 = vpop.eup %6440 }
 0x12a   : > { %5854 = vmatmul.mubr.msk.f32.vlgmr.msra.gmra.mrb[56].mxu1 %vm741_vm1, %v7587_v51  ;;  %6334 = vmatpush1.bf16.msra.mxu0 %v6333_v38  ;;  %v738_v38 = vld [vmem:[%s6907_s9 + $0xfe8] sm:$0xff]  ;;  %v6443_v45 = vpop.eup %6442 }
 0x12b   : > { %6342 = vmatpush1.bf16.msra.mxu1 %v6341_v40  ;;  %6336 = vmatprep.subr.bf16.mxu0 %v6335_v41  ;;  %v6445_v50 = vpop.eup %6444  ;;  %v6367_v54 = vpack.c.bf16 %v738_v38, %v610_v37 }
 0x12c   : > { %v1095_v62 = vpop.f32.mrb[4].mxu0  ;;  %6344 = vmatprep.subr.bf16.mxu1 %v6343_v46  ;;  %4927 = vmatprep.mubr.f32.mxu0 %v6786_v8  ;;  %v6447_v57 = vpop.eup %6446 }
 0x12d   : > { %v5306_v1 = vmul.f32 1.442695, %v1095_v62  ;;  %v1166_v2 = vpop.f32.mrb[4].mxu1  ;;  %v1097_v3 = vpop.f32.mrb[5].mxu0  ;;  %4998 = vmatprep.mubr.f32.mxu1 %v6786_v8 }
 0x12e   : > { %v5312_v7 = vmul.f32 1.442695, %v1166_v2  ;;  %v5309_v9 = vmul.f32 1.442695, %v1097_v3  ;;  %v1168_v10 = vpop.f32.mrb[5].mxu1  ;;  %6338 = vmatpush1.bf16.msra.mxu0 %v6337_v55  ;;  %v609_v55 = vld [vmem:[%s6907_s9 + $0xbe0] sm:$0xff] }
 0x12f   : > { %6448 = vpow2.f32 %v5306_v1  ;;  %v5315_v15 = vmul.f32 1.442695, %v1168_v10  ;;  %6346 = vmatpush1.bf16.msra.mxu1 %v6345_v58  ;;  %6348 = vmatprep.subr.bf16.mxu0 %v6347_v59  ;;  %v6375_v58 = vpack.c.bf16 %v740_v44, %v612_v43  ;;  %v611_v59 = vld [vmem:[%s6907_s9 + $0xbf0] sm:$0xff]  ;;  %v6369_v63 = vpack.c.bf16 %v737_v56, %v609_v55 }
 0x130   : > { %6450 = vpow2.f32 %v5312_v7  ;;  %6356 = vmatprep.subr.bf16.mxu1 %v6355_v27  ;;  %v6377_v2 = vpack.c.bf16 %v739_v60, %v611_v59 }
 0x131   : > { %6452 = vpow2.f32 %v5309_v9  ;;  %5855 = vmatmul.mubr.msk.f32.vlgmr.msra.gmra.mrb[58].mxu0 %vm741_vm1, %v7587_v51 }
 0x132   : > { %6454 = vpow2.f32 %v5315_v15  ;;  %5856 = vmatmul.mubr.msk.f32.vlgmr.msra.gmra.mrb[58].mxu1 %vm741_vm1, %v7587_v51  ;;  %6350 = vmatpush1.bf16.msra.mxu0 %v6349_v4 }
 0x133   : > { %6456 = vpow2.f32 %v5298_v14  ;;  %6358 = vmatpush1.bf16.msra.mxu1 %v6357_v11  ;;  %6352 = vmatprep.subr.bf16.mxu0 %v6351_v16 }
 0x134   : > { %6458 = vpow2.f32 %v5302_v19  ;;  %v1237_v34 = vpop.f32.mrb[6].mxu0  ;;  %6360 = vmatprep.subr.bf16.mxu1 %v6359_v20  ;;  %5069 = vmatprep.mubr.f32.mxu0 %v6786_v8 }
 0x135   : > { %6460 = vpow2.f32 %v5300_v24  ;;  %v5318_v40 = vmul.f32 1.442695, %v1237_v34  ;;  %v1308_v41 = vpop.f32.mrb[6].mxu1  ;;  %v1239_v42 = vpop.f32.mrb[7].mxu0  ;;  %5140 = vmatprep.mubr.f32.mxu1 %v6786_v8 }
 0x136   : > { %6462 = vpow2.f32 %v5304_v28  ;;  %v5324_v46 = vmul.f32 1.442695, %v1308_v41  ;;  %v5321_v47 = vmul.f32 1.442695, %v1239_v42  ;;  %v1310_v48 = vpop.f32.mrb[7].mxu1  ;;  %6354 = vmatpush1.bf16.msra.mxu0 %v6353_v29 }
 0x137   : > { %6464 = vpow2.f32 %v5318_v40  ;;  %v5327_v52 = vmul.f32 1.442695, %v1310_v48  ;;  %6362 = vmatpush1.bf16.msra.mxu1 %v6361_v30  ;;  %6364 = vmatprep.subr.bf16.mxu0 %v6363_v31 }
 0x138   : > { %6466 = vpow2.f32 %v5324_v46  ;;  %6372 = vmatprep.subr.bf16.mxu1 %v6371_v35 }
 0x139   : > { %v6449_v61 = vpop.eup %6448  ;;  %6468 = vpow2.f32 %v5321_v47  ;;  %5857 = vmatmul.mubr.msk.f32.vlgmr.msra.gmra.mrb[60].mxu0 %vm741_vm1, %v7587_v51 }
 0x13a   : > { %v6451_v62 = vpop.eup %6450  ;;  %v5308_v27 = vadd.f32 %v6449_v61, %v6441_v39  ;;  %6470 = vpow2.f32 %v5327_v52  ;;  %5858 = vmatmul.mubr.msk.f32.vlgmr.msra.gmra.mrb[60].mxu1 %vm741_vm1, %v7587_v51  ;;  %6366 = vmatpush1.bf16.msra.mxu0 %v6365_v49 }
 0x13b   : > { %v6453_v0 = vpop.eup %6452  ;;  %v5314_v1 = vadd.f32 %v6451_v62, %v6443_v45  ;;  %6374 = vmatpush1.bf16.msra.mxu1 %v6373_v53  ;;  %6368 = vmatprep.subr.bf16.mxu0 %v6367_v54 }
 0x13c   : > { %v6455_v3 = vpop.eup %6454  ;;  %v5311_v4 = vadd.f32 %v6453_v0, %v6445_v50  ;;  %v1379_v5 = vpop.f32.mrb[8].mxu0  ;;  %6376 = vmatprep.subr.bf16.mxu1 %v6375_v58  ;;  %5211 = vmatprep.mubr.f32.mxu0 %v6786_v8 }
 0x13d   : > { %v6457_v6 = vpop.eup %6456  ;;  %v5317_v7 = vadd.f32 %v6455_v3, %v6447_v57  ;;  %v5330_v9 = vmul.f32 1.442695, %v1379_v5  ;;  %v1450_v10 = vpop.f32.mrb[8].mxu1  ;;  %5282 = vmatprep.mubr.f32.mxu1 %v6786_v8 }
 0x13e   : > { %v1381_v11 = vpop.f32.mrb[9].mxu0  ;;  %v6459_v12 = vpop.eup %6458  ;;  %v5336_v14 = vmul.f32 1.442695, %v1450_v10  ;;  %6370 = vmatpush1.bf16.msra.mxu0 %v6369_v63 }
 0x13f   : > { %v5333_v15 = vmul.f32 1.442695, %v1381_v11  ;;  %v1452_v16 = vpop.f32.mrb[9].mxu1  ;;  %v6461_v17 = vpop.eup %6460  ;;  %6472 = vpow2.f32 %v5330_v9  ;;  %6378 = vmatpush1.bf16.msra.mxu1 %v6377_v2 }
 0x140   : > { %v5339_v18 = vmul.f32 1.442695, %v1452_v16  ;;  %v6463_v19 = vpop.eup %6462  ;;  %6474 = vpow2.f32 %v5336_v14 }
 0x141   : > { %v6465_v20 = vpop.eup %6464  ;;  %6476 = vpow2.f32 %v5333_v15  ;;  %5859 = vmatmul.mubr.msk.f32.vlgmr.msra.gmra.mrb[62].mxu0 %vm741_vm1, %v7587_v51 }
 0x142   : > { %v6467_v21 = vpop.eup %6466  ;;  %v5320_v22 = vadd.f32 %v6465_v20, %v6457_v6  ;;  %6478 = vpow2.f32 %v5339_v18  ;;  %5860 = vmatmul.mubr.msk.f32.vlgmr.msra.gmra.mrb[62].mxu1 %vm741_vm1, %v7587_v51 }
 0x143   : > { %v6469_v8 = vpop.eup %6468  ;;  %v5326_v23 = vadd.f32 %v6467_v21, %v6459_v12 }
 0x144   : > { %v6471_v24 = vpop.eup %6470  ;;  %v5323_v25 = vadd.f32 %v6469_v8, %v6461_v17  ;;  %v1521_v26 = vpop.f32.mrb[10].mxu0 }
 0x145   : > { %v5329_v28 = vadd.f32 %v6471_v24, %v6463_v19  ;;  %v5342_v29 = vmul.f32 1.442695, %v1521_v26  ;;  %v1592_v30 = vpop.f32.mrb[10].mxu1  ;;  %v1523_v31 = vpop.f32.mrb[11].mxu0 }
 0x146   : > { %v5348_v13 = vmul.f32 1.442695, %v1592_v30  ;;  %v5345_v32 = vmul.f32 1.442695, %v1523_v31  ;;  %v1594_v33 = vpop.f32.mrb[11].mxu1 }
 0x147   : > { %6480 = vpow2.f32 %v5342_v29  ;;  %v5351_v34 = vmul.f32 1.442695, %v1594_v33 }
 0x148   : > { %6482 = vpow2.f32 %v5348_v13 }
 0x149   : > { %v6473_v35 = vpop.eup %6472  ;;  %6484 = vpow2.f32 %v5345_v32 }
 0x14a   : > { %v6475_v36 = vpop.eup %6474  ;;  %v5332_v37 = vadd.f32 %v6473_v35, %v5308_v27  ;;  %6486 = vpow2.f32 %v5351_v34 }
 0x14b   : > { %v6477_v51 = vpop.eup %6476  ;;  %v5338_v38 = vadd.f32 %v6475_v36, %v5314_v1 }
 0x14c   : > { %v6479_v39 = vpop.eup %6478  ;;  %v5335_v40 = vadd.f32 %v6477_v51, %v5311_v4  ;;  %v1663_v41 = vpop.f32.mrb[12].mxu0 }
 0x14d   : > { %v5341_v42 = vadd.f32 %v6479_v39, %v5317_v7  ;;  %v5354_v43 = vmul.f32 1.442695, %v1663_v41  ;;  %v1734_v44 = vpop.f32.mrb[12].mxu1  ;;  %v1665_v45 = vpop.f32.mrb[13].mxu0 }
 0x14e   : > { %v5360_v46 = vmul.f32 1.442695, %v1734_v44  ;;  %v5357_v47 = vmul.f32 1.442695, %v1665_v45  ;;  %v1736_v48 = vpop.f32.mrb[13].mxu1 }
 0x14f   : > { %6488 = vpow2.f32 %v5354_v43  ;;  %v5363_v49 = vmul.f32 1.442695, %v1736_v48 }
 0x150   : > { %6490 = vpow2.f32 %v5360_v46 }
 0x151   : > { %v6481_v50 = vpop.eup %6480  ;;  %6492 = vpow2.f32 %v5357_v47 }
 0x152   : > { %v6483_v52 = vpop.eup %6482  ;;  %v5344_v53 = vadd.f32 %v6481_v50, %v5320_v22  ;;  %6494 = vpow2.f32 %v5363_v49 }
 0x153   : > { %v6485_v54 = vpop.eup %6484  ;;  %v5350_v55 = vadd.f32 %v6483_v52, %v5326_v23 }
 0x154   : > { %v6487_v56 = vpop.eup %6486  ;;  %v5347_v57 = vadd.f32 %v6485_v54, %v5323_v25  ;;  %v1805_v58 = vpop.f32.mrb[14].mxu0 }
 0x155   : > { %v5353_v59 = vadd.f32 %v6487_v56, %v5329_v28  ;;  %v5366_v60 = vmul.f32 1.442695, %v1805_v58  ;;  %v1876_v61 = vpop.f32.mrb[14].mxu1  ;;  %v1807_v62 = vpop.f32.mrb[15].mxu0 }
 0x156   : > { %v5372_v27 = vmul.f32 1.442695, %v1876_v61  ;;  %v5369_v63 = vmul.f32 1.442695, %v1807_v62  ;;  %v1878_v0 = vpop.f32.mrb[15].mxu1 }
 0x157   : > { %6496 = vpow2.f32 %v5366_v60  ;;  %v5375_v1 = vmul.f32 1.442695, %v1878_v0 }
 0x158   : > { %6498 = vpow2.f32 %v5372_v27 }
 0x159   : > { %v6489_v2 = vpop.eup %6488  ;;  %6500 = vpow2.f32 %v5369_v63 }
 0x15a   : > { %v6491_v3 = vpop.eup %6490  ;;  %v5356_v4 = vadd.f32 %v6489_v2, %v5332_v37  ;;  %6502 = vpow2.f32 %v5375_v1 }
 0x15b   : > { %v6493_v5 = vpop.eup %6492  ;;  %v5362_v6 = vadd.f32 %v6491_v3, %v5338_v38 }
 0x15c   : > { %v6495_v7 = vpop.eup %6494  ;;  %v5359_v9 = vadd.f32 %v6493_v5, %v5335_v40  ;;  %v1947_v10 = vpop.f32.mrb[16].mxu0 }
 0x15d   : > { %v5365_v11 = vadd.f32 %v6495_v7, %v5341_v42  ;;  %v5378_v12 = vmul.f32 1.442695, %v1947_v10  ;;  %v2018_v14 = vpop.f32.mrb[16].mxu1  ;;  %v1949_v15 = vpop.f32.mrb[17].mxu0 }
 0x15e   : > { %v5384_v16 = vmul.f32 1.442695, %v2018_v14  ;;  %v5381_v17 = vmul.f32 1.442695, %v1949_v15  ;;  %v2020_v18 = vpop.f32.mrb[17].mxu1 }
 0x15f   : > { %6504 = vpow2.f32 %v5378_v12  ;;  %v5387_v19 = vmul.f32 1.442695, %v2020_v18 }
 0x160   : > { %6506 = vpow2.f32 %v5384_v16 }
 0x161   : > { %v6497_v20 = vpop.eup %6496  ;;  %6508 = vpow2.f32 %v5381_v17 }
 0x162   : > { %v6499_v21 = vpop.eup %6498  ;;  %v5368_v22 = vadd.f32 %v6497_v20, %v5344_v53  ;;  %6510 = vpow2.f32 %v5387_v19 }
 0x163   : > { %v6501_v8 = vpop.eup %6500  ;;  %v5374_v23 = vadd.f32 %v6499_v21, %v5350_v55 }
 0x164   : > { %v6503_v24 = vpop.eup %6502  ;;  %v5371_v25 = vadd.f32 %v6501_v8, %v5347_v57  ;;  %v2089_v26 = vpop.f32.mrb[18].mxu0 }
 0x165   : > { %v5377_v28 = vadd.f32 %v6503_v24, %v5353_v59  ;;  %v5390_v29 = vmul.f32 1.442695, %v2089_v26  ;;  %v2160_v30 = vpop.f32.mrb[18].mxu1  ;;  %v2091_v31 = vpop.f32.mrb[19].mxu0 }
 0x166   : > { %v5396_v13 = vmul.f32 1.442695, %v2160_v30  ;;  %v5393_v32 = vmul.f32 1.442695, %v2091_v31  ;;  %v2162_v33 = vpop.f32.mrb[19].mxu1 }
 0x167   : > { %6512 = vpow2.f32 %v5390_v29  ;;  %v5399_v34 = vmul.f32 1.442695, %v2162_v33 }
 0x168   : > { %6514 = vpow2.f32 %v5396_v13 }
 0x169   : > { %v6505_v35 = vpop.eup %6504  ;;  %6516 = vpow2.f32 %v5393_v32 }
 0x16a   : > { %v6507_v36 = vpop.eup %6506  ;;  %v5380_v37 = vadd.f32 %v6505_v35, %v5356_v4  ;;  %6518 = vpow2.f32 %v5399_v34 }
 0x16b   : > { %v6509_v51 = vpop.eup %6508  ;;  %v5386_v38 = vadd.f32 %v6507_v36, %v5362_v6 }
 0x16c   : > { %v6511_v39 = vpop.eup %6510  ;;  %v5383_v40 = vadd.f32 %v6509_v51, %v5359_v9  ;;  %v2231_v41 = vpop.f32.mrb[20].mxu0 }
 0x16d   : > { %v5389_v42 = vadd.f32 %v6511_v39, %v5365_v11  ;;  %v5402_v43 = vmul.f32 1.442695, %v2231_v41  ;;  %v2302_v44 = vpop.f32.mrb[20].mxu1  ;;  %v2233_v45 = vpop.f32.mrb[21].mxu0 }
 0x16e   : > { %v5408_v46 = vmul.f32 1.442695, %v2302_v44  ;;  %v5405_v47 = vmul.f32 1.442695, %v2233_v45  ;;  %v2304_v48 = vpop.f32.mrb[21].mxu1 }
 0x16f   : > { %6520 = vpow2.f32 %v5402_v43  ;;  %v5411_v49 = vmul.f32 1.442695, %v2304_v48 }
 0x170   : > { %6522 = vpow2.f32 %v5408_v46 }
 0x171   : > { %v6513_v50 = vpop.eup %6512  ;;  %6524 = vpow2.f32 %v5405_v47 }
 0x172   : > { %v6515_v52 = vpop.eup %6514  ;;  %v5392_v53 = vadd.f32 %v6513_v50, %v5368_v22  ;;  %6526 = vpow2.f32 %v5411_v49 }
 0x173   : > { %v6517_v54 = vpop.eup %6516  ;;  %v5398_v55 = vadd.f32 %v6515_v52, %v5374_v23 }
 0x174   : > { %v6519_v56 = vpop.eup %6518  ;;  %v5395_v57 = vadd.f32 %v6517_v54, %v5371_v25  ;;  %v2373_v58 = vpop.f32.mrb[22].mxu0 }
 0x175   : > { %v5401_v59 = vadd.f32 %v6519_v56, %v5377_v28  ;;  %v5414_v60 = vmul.f32 1.442695, %v2373_v58  ;;  %v2444_v61 = vpop.f32.mrb[22].mxu1  ;;  %v2375_v62 = vpop.f32.mrb[23].mxu0 }
 0x176   : > { %v5420_v27 = vmul.f32 1.442695, %v2444_v61  ;;  %v5417_v63 = vmul.f32 1.442695, %v2375_v62  ;;  %v2446_v0 = vpop.f32.mrb[23].mxu1 }
 0x177   : > { %6528 = vpow2.f32 %v5414_v60  ;;  %v5423_v1 = vmul.f32 1.442695, %v2446_v0 }
 0x178   : > { %6530 = vpow2.f32 %v5420_v27 }
 0x179   : > { %v6521_v2 = vpop.eup %6520  ;;  %6532 = vpow2.f32 %v5417_v63 }
 0x17a   : > { %v6523_v3 = vpop.eup %6522  ;;  %v5404_v4 = vadd.f32 %v6521_v2, %v5380_v37  ;;  %6534 = vpow2.f32 %v5423_v1 }
 0x17b   : > { %v6525_v5 = vpop.eup %6524  ;;  %v5410_v6 = vadd.f32 %v6523_v3, %v5386_v38 }
 0x17c   : > { %v6527_v7 = vpop.eup %6526  ;;  %v5407_v9 = vadd.f32 %v6525_v5, %v5383_v40  ;;  %v2515_v10 = vpop.f32.mrb[24].mxu0 }
 0x17d   : > { %v5413_v11 = vadd.f32 %v6527_v7, %v5389_v42  ;;  %v5426_v12 = vmul.f32 1.442695, %v2515_v10  ;;  %v2586_v14 = vpop.f32.mrb[24].mxu1  ;;  %v2517_v15 = vpop.f32.mrb[25].mxu0 }
 0x17e   : > { %v5432_v16 = vmul.f32 1.442695, %v2586_v14  ;;  %v5429_v17 = vmul.f32 1.442695, %v2517_v15  ;;  %v2588_v18 = vpop.f32.mrb[25].mxu1 }
 0x17f   : > { %6536 = vpow2.f32 %v5426_v12  ;;  %v5435_v19 = vmul.f32 1.442695, %v2588_v18 }
 0x180   : > { %6538 = vpow2.f32 %v5432_v16 }
 0x181   : > { %v6529_v20 = vpop.eup %6528  ;;  %6540 = vpow2.f32 %v5429_v17 }
 0x182   : > { %v6531_v21 = vpop.eup %6530  ;;  %v5416_v22 = vadd.f32 %v6529_v20, %v5392_v53  ;;  %6542 = vpow2.f32 %v5435_v19 }
 0x183   : > { %v6533_v8 = vpop.eup %6532  ;;  %v5422_v23 = vadd.f32 %v6531_v21, %v5398_v55 }
 0x184   : > { %v6535_v24 = vpop.eup %6534  ;;  %v5419_v25 = vadd.f32 %v6533_v8, %v5395_v57  ;;  %v2657_v26 = vpop.f32.mrb[26].mxu0 }
 0x185   : > { %v5425_v28 = vadd.f32 %v6535_v24, %v5401_v59  ;;  %v5438_v29 = vmul.f32 1.442695, %v2657_v26  ;;  %v2728_v30 = vpop.f32.mrb[26].mxu1  ;;  %v2659_v31 = vpop.f32.mrb[27].mxu0 }
 0x186   : > { %v5444_v13 = vmul.f32 1.442695, %v2728_v30  ;;  %v5441_v32 = vmul.f32 1.442695, %v2659_v31  ;;  %v2730_v33 = vpop.f32.mrb[27].mxu1 }
 0x187   : > { %6544 = vpow2.f32 %v5438_v29  ;;  %v5447_v34 = vmul.f32 1.442695, %v2730_v33 }
 0x188   : > { %6546 = vpow2.f32 %v5444_v13 }
 0x189   : > { %v6537_v35 = vpop.eup %6536  ;;  %6548 = vpow2.f32 %v5441_v32 }
 0x18a   : > { %v6539_v36 = vpop.eup %6538  ;;  %v5428_v37 = vadd.f32 %v6537_v35, %v5404_v4  ;;  %6550 = vpow2.f32 %v5447_v34 }
 0x18b   : > { %v6541_v51 = vpop.eup %6540  ;;  %v5434_v38 = vadd.f32 %v6539_v36, %v5410_v6 }
 0x18c   : > { %v6543_v39 = vpop.eup %6542  ;;  %v5431_v40 = vadd.f32 %v6541_v51, %v5407_v9  ;;  %v2799_v41 = vpop.f32.mrb[28].mxu0 }
 0x18d   : > { %v5437_v42 = vadd.f32 %v6543_v39, %v5413_v11  ;;  %v5450_v43 = vmul.f32 1.442695, %v2799_v41  ;;  %v2870_v44 = vpop.f32.mrb[28].mxu1  ;;  %v2801_v45 = vpop.f32.mrb[29].mxu0 }
 0x18e   : > { %v5456_v46 = vmul.f32 1.442695, %v2870_v44  ;;  %v5453_v47 = vmul.f32 1.442695, %v2801_v45  ;;  %v2872_v48 = vpop.f32.mrb[29].mxu1 }
 0x18f   : > { %6552 = vpow2.f32 %v5450_v43  ;;  %v5459_v49 = vmul.f32 1.442695, %v2872_v48 }
 0x190   : > { %6554 = vpow2.f32 %v5456_v46 }
 0x191   : > { %v6545_v50 = vpop.eup %6544  ;;  %6556 = vpow2.f32 %v5453_v47 }
 0x192   : > { %v6547_v52 = vpop.eup %6546  ;;  %v5440_v53 = vadd.f32 %v6545_v50, %v5416_v22  ;;  %6558 = vpow2.f32 %v5459_v49 }
 0x193   : > { %v6549_v54 = vpop.eup %6548  ;;  %v5446_v55 = vadd.f32 %v6547_v52, %v5422_v23 }
 0x194   : > { %v6551_v56 = vpop.eup %6550  ;;  %v5443_v57 = vadd.f32 %v6549_v54, %v5419_v25  ;;  %v2941_v58 = vpop.f32.mrb[30].mxu0 }
 0x195   : > { %v5449_v59 = vadd.f32 %v6551_v56, %v5425_v28  ;;  %v5462_v60 = vmul.f32 1.442695, %v2941_v58  ;;  %v3012_v61 = vpop.f32.mrb[30].mxu1  ;;  %v2943_v62 = vpop.f32.mrb[31].mxu0 }
 0x196   : > { %v5468_v27 = vmul.f32 1.442695, %v3012_v61  ;;  %v5465_v63 = vmul.f32 1.442695, %v2943_v62  ;;  %v3014_v0 = vpop.f32.mrb[31].mxu1 }
 0x197   : > { %6560 = vpow2.f32 %v5462_v60  ;;  %v5471_v1 = vmul.f32 1.442695, %v3014_v0 }
 0x198   : > { %6562 = vpow2.f32 %v5468_v27 }
 0x199   : > { %v6553_v2 = vpop.eup %6552  ;;  %6564 = vpow2.f32 %v5465_v63 }
 0x19a   : > { %v6555_v3 = vpop.eup %6554  ;;  %v5452_v4 = vadd.f32 %v6553_v2, %v5428_v37  ;;  %6566 = vpow2.f32 %v5471_v1 }
 0x19b   : > { %v6557_v5 = vpop.eup %6556  ;;  %v5458_v6 = vadd.f32 %v6555_v3, %v5434_v38 }
 0x19c   : > { %v6559_v7 = vpop.eup %6558  ;;  %v5455_v9 = vadd.f32 %v6557_v5, %v5431_v40  ;;  %v3083_v10 = vpop.f32.mrb[32].mxu0 }
 0x19d   : > { %v5461_v11 = vadd.f32 %v6559_v7, %v5437_v42  ;;  %v5474_v12 = vmul.f32 1.442695, %v3083_v10  ;;  %v3154_v14 = vpop.f32.mrb[32].mxu1  ;;  %v3085_v15 = vpop.f32.mrb[33].mxu0 }
 0x19e   : > { %v5480_v16 = vmul.f32 1.442695, %v3154_v14  ;;  %v5477_v17 = vmul.f32 1.442695, %v3085_v15  ;;  %v3156_v18 = vpop.f32.mrb[33].mxu1 }
 0x19f   : > { %6568 = vpow2.f32 %v5474_v12  ;;  %v5483_v19 = vmul.f32 1.442695, %v3156_v18 }
 0x1a0   : > { %6570 = vpow2.f32 %v5480_v16 }
 0x1a1   : > { %v6561_v20 = vpop.eup %6560  ;;  %6572 = vpow2.f32 %v5477_v17 }
 0x1a2   : > { %v6563_v21 = vpop.eup %6562  ;;  %v5464_v22 = vadd.f32 %v6561_v20, %v5440_v53  ;;  %6574 = vpow2.f32 %v5483_v19 }
 0x1a3   : > { %v6565_v8 = vpop.eup %6564  ;;  %v5470_v23 = vadd.f32 %v6563_v21, %v5446_v55 }
 0x1a4   : > { %v6567_v24 = vpop.eup %6566  ;;  %v5467_v25 = vadd.f32 %v6565_v8, %v5443_v57  ;;  %v3225_v26 = vpop.f32.mrb[34].mxu0 }
 0x1a5   : > { %v5473_v28 = vadd.f32 %v6567_v24, %v5449_v59  ;;  %v5486_v29 = vmul.f32 1.442695, %v3225_v26  ;;  %v3296_v30 = vpop.f32.mrb[34].mxu1  ;;  %v3227_v31 = vpop.f32.mrb[35].mxu0 }
 0x1a6   : > { %v5492_v13 = vmul.f32 1.442695, %v3296_v30  ;;  %v5489_v32 = vmul.f32 1.442695, %v3227_v31  ;;  %v3298_v33 = vpop.f32.mrb[35].mxu1 }
 0x1a7   : > { %6576 = vpow2.f32 %v5486_v29  ;;  %v5495_v34 = vmul.f32 1.442695, %v3298_v33 }
 0x1a8   : > { %6578 = vpow2.f32 %v5492_v13 }
 0x1a9   : > { %v6569_v35 = vpop.eup %6568  ;;  %6580 = vpow2.f32 %v5489_v32 }
 0x1aa   : > { %v6571_v36 = vpop.eup %6570  ;;  %v5476_v37 = vadd.f32 %v6569_v35, %v5452_v4  ;;  %6582 = vpow2.f32 %v5495_v34 }
 0x1ab   : > { %v6573_v51 = vpop.eup %6572  ;;  %v5482_v38 = vadd.f32 %v6571_v36, %v5458_v6 }
 0x1ac   : > { %v6575_v39 = vpop.eup %6574  ;;  %v5479_v40 = vadd.f32 %v6573_v51, %v5455_v9  ;;  %v3367_v41 = vpop.f32.mrb[36].mxu0 }
 0x1ad   : > { %v5485_v42 = vadd.f32 %v6575_v39, %v5461_v11  ;;  %v5498_v43 = vmul.f32 1.442695, %v3367_v41  ;;  %v3438_v44 = vpop.f32.mrb[36].mxu1  ;;  %v3369_v45 = vpop.f32.mrb[37].mxu0 }
 0x1ae   : > { %v5504_v46 = vmul.f32 1.442695, %v3438_v44  ;;  %v5501_v47 = vmul.f32 1.442695, %v3369_v45  ;;  %v3440_v48 = vpop.f32.mrb[37].mxu1 }
 0x1af   : > { %6584 = vpow2.f32 %v5498_v43  ;;  %v5507_v49 = vmul.f32 1.442695, %v3440_v48 }
 0x1b0   : > { %6586 = vpow2.f32 %v5504_v46 }
 0x1b1   : > { %v6577_v50 = vpop.eup %6576  ;;  %6588 = vpow2.f32 %v5501_v47 }
 0x1b2   : > { %v6579_v52 = vpop.eup %6578  ;;  %v5488_v53 = vadd.f32 %v6577_v50, %v5464_v22  ;;  %6590 = vpow2.f32 %v5507_v49 }
 0x1b3   : > { %v6581_v54 = vpop.eup %6580  ;;  %v5494_v55 = vadd.f32 %v6579_v52, %v5470_v23 }
 0x1b4   : > { %v6583_v56 = vpop.eup %6582  ;;  %v5491_v57 = vadd.f32 %v6581_v54, %v5467_v25  ;;  %v3509_v58 = vpop.f32.mrb[38].mxu0 }
 0x1b5   : > { %v5497_v59 = vadd.f32 %v6583_v56, %v5473_v28  ;;  %v5510_v60 = vmul.f32 1.442695, %v3509_v58  ;;  %v3580_v61 = vpop.f32.mrb[38].mxu1  ;;  %v3511_v62 = vpop.f32.mrb[39].mxu0 }
 0x1b6   : > { %v5516_v27 = vmul.f32 1.442695, %v3580_v61  ;;  %v5513_v63 = vmul.f32 1.442695, %v3511_v62  ;;  %v3582_v0 = vpop.f32.mrb[39].mxu1 }
 0x1b7   : > { %6592 = vpow2.f32 %v5510_v60  ;;  %v5519_v1 = vmul.f32 1.442695, %v3582_v0 }
 0x1b8   : > { %6594 = vpow2.f32 %v5516_v27 }
 0x1b9   : > { %v6585_v2 = vpop.eup %6584  ;;  %6596 = vpow2.f32 %v5513_v63 }
 0x1ba   : > { %v6587_v3 = vpop.eup %6586  ;;  %v5500_v4 = vadd.f32 %v6585_v2, %v5476_v37  ;;  %6598 = vpow2.f32 %v5519_v1 }
 0x1bb   : > { %v6589_v5 = vpop.eup %6588  ;;  %v5506_v6 = vadd.f32 %v6587_v3, %v5482_v38 }
 0x1bc   : > { %v6591_v7 = vpop.eup %6590  ;;  %v5503_v9 = vadd.f32 %v6589_v5, %v5479_v40  ;;  %v3651_v10 = vpop.f32.mrb[40].mxu0 }
 0x1bd   : > { %v5509_v11 = vadd.f32 %v6591_v7, %v5485_v42  ;;  %v5522_v12 = vmul.f32 1.442695, %v3651_v10  ;;  %v3722_v14 = vpop.f32.mrb[40].mxu1  ;;  %v3653_v15 = vpop.f32.mrb[41].mxu0 }
 0x1be   : > { %v5528_v16 = vmul.f32 1.442695, %v3722_v14  ;;  %v5525_v17 = vmul.f32 1.442695, %v3653_v15  ;;  %v3724_v18 = vpop.f32.mrb[41].mxu1 }
 0x1bf   : > { %6600 = vpow2.f32 %v5522_v12  ;;  %v5531_v19 = vmul.f32 1.442695, %v3724_v18 }
 0x1c0   : > { %6602 = vpow2.f32 %v5528_v16 }
 0x1c1   : > { %v6593_v20 = vpop.eup %6592  ;;  %6604 = vpow2.f32 %v5525_v17 }
 0x1c2   : > { %v6595_v21 = vpop.eup %6594  ;;  %v5512_v22 = vadd.f32 %v6593_v20, %v5488_v53  ;;  %6606 = vpow2.f32 %v5531_v19 }
 0x1c3   : > { %v6597_v8 = vpop.eup %6596  ;;  %v5518_v23 = vadd.f32 %v6595_v21, %v5494_v55 }
 0x1c4   : > { %v6599_v24 = vpop.eup %6598  ;;  %v5515_v25 = vadd.f32 %v6597_v8, %v5491_v57  ;;  %v3793_v26 = vpop.f32.mrb[42].mxu0 }
 0x1c5   : > { %v5521_v28 = vadd.f32 %v6599_v24, %v5497_v59  ;;  %v5534_v29 = vmul.f32 1.442695, %v3793_v26  ;;  %v3864_v30 = vpop.f32.mrb[42].mxu1  ;;  %v3795_v31 = vpop.f32.mrb[43].mxu0 }
 0x1c6   : > { %v5540_v13 = vmul.f32 1.442695, %v3864_v30  ;;  %v5537_v32 = vmul.f32 1.442695, %v3795_v31  ;;  %v3866_v33 = vpop.f32.mrb[43].mxu1 }
 0x1c7   : > { %6608 = vpow2.f32 %v5534_v29  ;;  %v5543_v34 = vmul.f32 1.442695, %v3866_v33 }
 0x1c8   : > { %6610 = vpow2.f32 %v5540_v13 }
 0x1c9   : > { %v6601_v35 = vpop.eup %6600  ;;  %6612 = vpow2.f32 %v5537_v32 }
 0x1ca   : > { %v6603_v36 = vpop.eup %6602  ;;  %v5524_v37 = vadd.f32 %v6601_v35, %v5500_v4  ;;  %6614 = vpow2.f32 %v5543_v34 }
 0x1cb   : > { %v6605_v51 = vpop.eup %6604  ;;  %v5530_v38 = vadd.f32 %v6603_v36, %v5506_v6 }
 0x1cc   : > { %v6607_v39 = vpop.eup %6606  ;;  %v5527_v40 = vadd.f32 %v6605_v51, %v5503_v9  ;;  %v3935_v41 = vpop.f32.mrb[44].mxu0 }
 0x1cd   : > { %v5533_v42 = vadd.f32 %v6607_v39, %v5509_v11  ;;  %v5546_v43 = vmul.f32 1.442695, %v3935_v41  ;;  %v4006_v44 = vpop.f32.mrb[44].mxu1  ;;  %v3937_v45 = vpop.f32.mrb[45].mxu0 }
 0x1ce   : > { %v5552_v46 = vmul.f32 1.442695, %v4006_v44  ;;  %v5549_v47 = vmul.f32 1.442695, %v3937_v45  ;;  %v4008_v48 = vpop.f32.mrb[45].mxu1 }
 0x1cf   : > { %6616 = vpow2.f32 %v5546_v43  ;;  %v5555_v49 = vmul.f32 1.442695, %v4008_v48 }
 0x1d0   : > { %6618 = vpow2.f32 %v5552_v46 }
 0x1d1   : > { %v6609_v50 = vpop.eup %6608  ;;  %6620 = vpow2.f32 %v5549_v47 }
 0x1d2   : > { %v6611_v52 = vpop.eup %6610  ;;  %v5536_v53 = vadd.f32 %v6609_v50, %v5512_v22  ;;  %6622 = vpow2.f32 %v5555_v49 }
 0x1d3   : > { %v6613_v54 = vpop.eup %6612  ;;  %v5542_v55 = vadd.f32 %v6611_v52, %v5518_v23 }
 0x1d4   : > { %v6615_v56 = vpop.eup %6614  ;;  %v5539_v57 = vadd.f32 %v6613_v54, %v5515_v25  ;;  %v4077_v58 = vpop.f32.mrb[46].mxu0 }
 0x1d5   : > { %v5545_v59 = vadd.f32 %v6615_v56, %v5521_v28  ;;  %v5558_v60 = vmul.f32 1.442695, %v4077_v58  ;;  %v4148_v61 = vpop.f32.mrb[46].mxu1  ;;  %v4079_v62 = vpop.f32.mrb[47].mxu0 }
 0x1d6   : > { %v5564_v27 = vmul.f32 1.442695, %v4148_v61  ;;  %v5561_v63 = vmul.f32 1.442695, %v4079_v62  ;;  %v4150_v0 = vpop.f32.mrb[47].mxu1 }
 0x1d7   : > { %6624 = vpow2.f32 %v5558_v60  ;;  %v5567_v1 = vmul.f32 1.442695, %v4150_v0 }
 0x1d8   : > { %6626 = vpow2.f32 %v5564_v27 }
 0x1d9   : > { %v6617_v2 = vpop.eup %6616  ;;  %6628 = vpow2.f32 %v5561_v63 }
 0x1da   : > { %v6619_v3 = vpop.eup %6618  ;;  %v5548_v4 = vadd.f32 %v6617_v2, %v5524_v37  ;;  %6630 = vpow2.f32 %v5567_v1 }
 0x1db   : > { %v6621_v5 = vpop.eup %6620  ;;  %v5554_v6 = vadd.f32 %v6619_v3, %v5530_v38 }
 0x1dc   : > { %v6623_v7 = vpop.eup %6622  ;;  %v5551_v9 = vadd.f32 %v6621_v5, %v5527_v40  ;;  %v4219_v10 = vpop.f32.mrb[48].mxu0 }
 0x1dd   : > { %v5557_v11 = vadd.f32 %v6623_v7, %v5533_v42  ;;  %v5570_v12 = vmul.f32 1.442695, %v4219_v10  ;;  %v4290_v14 = vpop.f32.mrb[48].mxu1  ;;  %v4221_v15 = vpop.f32.mrb[49].mxu0 }
 0x1de   : > { %v5576_v16 = vmul.f32 1.442695, %v4290_v14  ;;  %v5573_v17 = vmul.f32 1.442695, %v4221_v15  ;;  %v4292_v18 = vpop.f32.mrb[49].mxu1 }
 0x1df   : > { %6632 = vpow2.f32 %v5570_v12  ;;  %v5579_v19 = vmul.f32 1.442695, %v4292_v18 }
 0x1e0   : > { %6634 = vpow2.f32 %v5576_v16 }
 0x1e1   : > { %v6625_v20 = vpop.eup %6624  ;;  %6636 = vpow2.f32 %v5573_v17 }
 0x1e2   : > { %v6627_v21 = vpop.eup %6626  ;;  %v5560_v22 = vadd.f32 %v6625_v20, %v5536_v53  ;;  %6638 = vpow2.f32 %v5579_v19 }
 0x1e3   : > { %v6629_v8 = vpop.eup %6628  ;;  %v5566_v23 = vadd.f32 %v6627_v21, %v5542_v55 }
 0x1e4   : > { %v6631_v24 = vpop.eup %6630  ;;  %v5563_v25 = vadd.f32 %v6629_v8, %v5539_v57  ;;  %v4361_v26 = vpop.f32.mrb[50].mxu0 }
 0x1e5   : > { %v5569_v28 = vadd.f32 %v6631_v24, %v5545_v59  ;;  %v5582_v29 = vmul.f32 1.442695, %v4361_v26  ;;  %v4432_v30 = vpop.f32.mrb[50].mxu1  ;;  %v4363_v31 = vpop.f32.mrb[51].mxu0 }
 0x1e6   : > { %v5588_v13 = vmul.f32 1.442695, %v4432_v30  ;;  %v5585_v32 = vmul.f32 1.442695, %v4363_v31  ;;  %v4434_v33 = vpop.f32.mrb[51].mxu1 }
 0x1e7   : > { %6640 = vpow2.f32 %v5582_v29  ;;  %v5591_v34 = vmul.f32 1.442695, %v4434_v33 }
 0x1e8   : > { %6642 = vpow2.f32 %v5588_v13 }
 0x1e9   : > { %v6633_v35 = vpop.eup %6632  ;;  %6644 = vpow2.f32 %v5585_v32 }
 0x1ea   : > { %v6635_v36 = vpop.eup %6634  ;;  %v5572_v37 = vadd.f32 %v6633_v35, %v5548_v4  ;;  %6646 = vpow2.f32 %v5591_v34 }
 0x1eb   : > { %v6637_v51 = vpop.eup %6636  ;;  %v5578_v38 = vadd.f32 %v6635_v36, %v5554_v6 }
 0x1ec   : > { %v6639_v39 = vpop.eup %6638  ;;  %v5575_v40 = vadd.f32 %v6637_v51, %v5551_v9  ;;  %v4503_v41 = vpop.f32.mrb[52].mxu0 }
 0x1ed   : > { %v5581_v42 = vadd.f32 %v6639_v39, %v5557_v11  ;;  %v5594_v43 = vmul.f32 1.442695, %v4503_v41  ;;  %v4574_v44 = vpop.f32.mrb[52].mxu1  ;;  %v4505_v45 = vpop.f32.mrb[53].mxu0 }
 0x1ee   : > { %v5600_v46 = vmul.f32 1.442695, %v4574_v44  ;;  %v5597_v47 = vmul.f32 1.442695, %v4505_v45  ;;  %v4576_v48 = vpop.f32.mrb[53].mxu1 }
 0x1ef   : > { %6648 = vpow2.f32 %v5594_v43  ;;  %v5603_v49 = vmul.f32 1.442695, %v4576_v48 }
 0x1f0   : > { %6650 = vpow2.f32 %v5600_v46 }
 0x1f1   : > { %v6641_v50 = vpop.eup %6640  ;;  %6652 = vpow2.f32 %v5597_v47 }
 0x1f2   : > { %v6643_v52 = vpop.eup %6642  ;;  %v5584_v53 = vadd.f32 %v6641_v50, %v5560_v22  ;;  %6654 = vpow2.f32 %v5603_v49 }
 0x1f3   : > { %v6645_v54 = vpop.eup %6644  ;;  %v5590_v55 = vadd.f32 %v6643_v52, %v5566_v23 }
 0x1f4   : > { %v6647_v56 = vpop.eup %6646  ;;  %v5587_v57 = vadd.f32 %v6645_v54, %v5563_v25  ;;  %v4645_v58 = vpop.f32.mrb[54].mxu0 }
 0x1f5   : > { %v5593_v59 = vadd.f32 %v6647_v56, %v5569_v28  ;;  %v5606_v60 = vmul.f32 1.442695, %v4645_v58  ;;  %v4716_v61 = vpop.f32.mrb[54].mxu1  ;;  %v4647_v62 = vpop.f32.mrb[55].mxu0 }
 0x1f6   : > { %v5612_v27 = vmul.f32 1.442695, %v4716_v61  ;;  %v5609_v63 = vmul.f32 1.442695, %v4647_v62  ;;  %v4718_v0 = vpop.f32.mrb[55].mxu1 }
 0x1f7   : > { %6656 = vpow2.f32 %v5606_v60  ;;  %v5615_v1 = vmul.f32 1.442695, %v4718_v0 }
 0x1f8   : > { %6658 = vpow2.f32 %v5612_v27 }
 0x1f9   : > { %v6649_v2 = vpop.eup %6648  ;;  %6660 = vpow2.f32 %v5609_v63 }
 0x1fa   : > { %v6651_v3 = vpop.eup %6650  ;;  %v5596_v4 = vadd.f32 %v6649_v2, %v5572_v37  ;;  %6662 = vpow2.f32 %v5615_v1 }
 0x1fb   : > { %v6653_v5 = vpop.eup %6652  ;;  %v5602_v6 = vadd.f32 %v6651_v3, %v5578_v38 }
 0x1fc   : > { %v6655_v7 = vpop.eup %6654  ;;  %v5599_v9 = vadd.f32 %v6653_v5, %v5575_v40  ;;  %v4787_v10 = vpop.f32.mrb[56].mxu0 }
 0x1fd   : > { %v5605_v11 = vadd.f32 %v6655_v7, %v5581_v42  ;;  %v5618_v12 = vmul.f32 1.442695, %v4787_v10  ;;  %v4858_v14 = vpop.f32.mrb[56].mxu1  ;;  %v4789_v15 = vpop.f32.mrb[57].mxu0 }
 0x1fe   : > { %v5624_v16 = vmul.f32 1.442695, %v4858_v14  ;;  %v5621_v17 = vmul.f32 1.442695, %v4789_v15  ;;  %v4860_v18 = vpop.f32.mrb[57].mxu1 }
 0x1ff   : > { %6664 = vpow2.f32 %v5618_v12  ;;  %v5627_v19 = vmul.f32 1.442695, %v4860_v18 }
 0x200   : > { %6666 = vpow2.f32 %v5624_v16 }
 0x201   : > { %v6657_v20 = vpop.eup %6656  ;;  %6668 = vpow2.f32 %v5621_v17 }
 0x202   : > { %v6659_v21 = vpop.eup %6658  ;;  %v5608_v22 = vadd.f32 %v6657_v20, %v5584_v53  ;;  %6670 = vpow2.f32 %v5627_v19 }
 0x203   : > { %v6661_v8 = vpop.eup %6660  ;;  %v5614_v23 = vadd.f32 %v6659_v21, %v5590_v55 }
 0x204   : > { %v6663_v24 = vpop.eup %6662  ;;  %v5611_v25 = vadd.f32 %v6661_v8, %v5587_v57  ;;  %v4929_v26 = vpop.f32.mrb[58].mxu0 }
 0x205   : > { %v5617_v28 = vadd.f32 %v6663_v24, %v5593_v59  ;;  %v5630_v29 = vmul.f32 1.442695, %v4929_v26  ;;  %v5000_v30 = vpop.f32.mrb[58].mxu1  ;;  %v4931_v31 = vpop.f32.mrb[59].mxu0 }
 0x206   : > { %v5636_v13 = vmul.f32 1.442695, %v5000_v30  ;;  %v5633_v32 = vmul.f32 1.442695, %v4931_v31  ;;  %v5002_v33 = vpop.f32.mrb[59].mxu1  ;;  %v6787_v30 = vmov (!%p5861_p7), 0  }
 0x207   : > { %6672 = vpow2.f32 %v5630_v29  ;;  %v5639_v34 = vmul.f32 1.442695, %v5002_v33  ;;  %v5681_v29 = vld [vmem:[#allocation3] sm:$0xff] (!%p5861_p7)  ;;  %6698 = vset.pattern.permute.xlu0 (!%p5861_p7), %v6787_v30 }
 0x208   : > { %6674 = vpow2.f32 %v5636_v13  ;;  %5684 = vperm.xlu0 (!%p5861_p7), %6698, %v5681_v29  }
 0x209   : > { %v6665_v35 = vpop.eup %6664  ;;  %6676 = vpow2.f32 %v5633_v32 }
 0x20a   : > { %v6667_v36 = vpop.eup %6666  ;;  %v5620_v37 = vadd.f32 %v6665_v35, %v5596_v4  ;;  %6678 = vpow2.f32 %v5639_v34 }
 0x20b   : > { %v6669_v51 = vpop.eup %6668  ;;  %v5626_v38 = vadd.f32 %v6667_v36, %v5602_v6 }
 0x20c   : > { %v6671_v39 = vpop.eup %6670  ;;  %v5623_v40 = vadd.f32 %v6669_v51, %v5599_v9  ;;  %v5071_v41 = vpop.f32.mrb[60].mxu0 }
 0x20d   : > { %v5629_v42 = vadd.f32 %v6671_v39, %v5605_v11  ;;  %v5642_v43 = vmul.f32 1.442695, %v5071_v41  ;;  %v5142_v44 = vpop.f32.mrb[60].mxu1  ;;  %v5073_v45 = vpop.f32.mrb[61].mxu0 }
 0x20e   : > { %v5648_v46 = vmul.f32 1.442695, %v5142_v44  ;;  %v5645_v47 = vmul.f32 1.442695, %v5073_v45  ;;  %v5144_v48 = vpop.f32.mrb[61].mxu1 }
 0x20f   : > { %6680 = vpow2.f32 %v5642_v43  ;;  %v5651_v49 = vmul.f32 1.442695, %v5144_v48 }
 0x210   : > { %6682 = vpow2.f32 %v5648_v46 }
 0x211   : > { %v6673_v50 = vpop.eup %6672  ;;  %6684 = vpow2.f32 %v5645_v47 }
 0x212   : > { %v6675_v52 = vpop.eup %6674  ;;  %v5632_v53 = vadd.f32 %v6673_v50, %v5608_v22  ;;  %6686 = vpow2.f32 %v5651_v49 }
 0x213   : > { %v6677_v54 = vpop.eup %6676  ;;  %v5638_v55 = vadd.f32 %v6675_v52, %v5614_v23 }
 0x214   : > { %v6679_v56 = vpop.eup %6678  ;;  %v5635_v57 = vadd.f32 %v6677_v54, %v5611_v25  ;;  %v5213_v58 = vpop.f32.mrb[62].mxu0  ;;  %v5289_v25 = vld [vmem:[#allocation2] sm:$0xff] }
 0x215   : > { %v5641_v59 = vadd.f32 %v6679_v56, %v5617_v28  ;;  %v5654_v60 = vmul.f32 1.442695, %v5213_v58  ;;  %v5284_v61 = vpop.f32.mrb[62].mxu1  ;;  %v5215_v62 = vpop.f32.mrb[63].mxu0 }
 0x216   : > { %v5660_v27 = vmul.f32 1.442695, %v5284_v61  ;;  %v5657_v63 = vmul.f32 1.442695, %v5215_v62  ;;  %v5286_v0 = vpop.f32.mrb[63].mxu1 }
 0x217   : > { %6688 = vpow2.f32 %v5654_v60  ;;  %v5663_v1 = vmul.f32 1.442695, %v5286_v0 }
 0x218   : > { %6690 = vpow2.f32 %v5660_v27 }
 0x219   : > { %v6681_v2 = vpop.eup %6680  ;;  %6692 = vpow2.f32 %v5657_v63 }
 0x21a   : > { %v6683_v3 = vpop.eup %6682  ;;  %v5644_v4 = vadd.f32 %v6681_v2, %v5620_v37  ;;  %6694 = vpow2.f32 %v5663_v1 }
 0x21b   : > { %v6685_v5 = vpop.eup %6684  ;;  %v5650_v6 = vadd.f32 %v6683_v3, %v5626_v38 }
 0x21c   : > { %v6687_v7 = vpop.eup %6686  ;;  %v5647_v9 = vadd.f32 %v6685_v5, %v5623_v40 }
 0x21d   : > { %v5653_v10 = vadd.f32 %v6687_v7, %v5629_v42 }
 0x21e   : > { %v5666_v11 = vadd.f32 %v5647_v9, %v5644_v4 }
 0x21f   : > { %v5667_v12 = vadd.f32 %v5653_v10, %v5650_v6 }
 0x221   : > { %v6689_v14 = vpop.eup %6688  ;;  %v5670_v15 = vadd.f32 %v5667_v12, %v5666_v11 }
 0x222   : > { %v6691_v16 = vpop.eup %6690  ;;  %v5656_v17 = vadd.f32 %v6689_v14, %v5632_v53 }
 0x223   : > { %v6693_v18 = vpop.eup %6692  ;;  %v5662_v19 = vadd.f32 %v6691_v16, %v5638_v55 }
 0x224   : > { %v6695_v20 = vpop.eup %6694  ;;  %v5659_v21 = vadd.f32 %v6693_v18, %v5635_v57 }
 0x225   : > { %v5665_v22 = vadd.f32 %v6695_v20, %v5641_v59 }
 0x226   : > { %v5668_v8 = vadd.f32 %v5659_v21, %v5656_v17 }
 0x227   : > { %v5669_v23 = vadd.f32 %v5665_v22, %v5662_v19 }
 0x229   : > { %v5671_v24 = vadd.f32 %v5669_v23, %v5668_v8  ;;  %5678 = sbr.rel (%p5861_p7) target bundleno = 649 (0x289), region = 40 }
 0x22b   : > { %v5672_v26 = vadd.f32 %v5671_v24, %v5670_v15 }
 0x22d   : > { %v5673_v28 = vadd.f32 %v5672_v26, %v5289_v25 }
 0x22f   : > { %5674 = vst [vmem:[#allocation2] sm:$0xff] %v5673_v28 }
 0x236   : > { %v5679_v31 = vld [vmem:[#allocation2] sm:$0xff] }
 0x237   : > { %5680 = vst [vmem:[%s7672_s2] sm:$0xff] %v5679_v31 }
 0x287   : > { %v5685_v13 = vpop.permute.xlu0 %5684 }
 0x288   : > { %5687 = vst [vmem:[%s7673_s3] sm:$0xff] %v5685_v13 }
 0x289 PF: > { %s17_s17 = sadd.s32 1, %s6779_s17   ;;  %s7678_s12 = smov %s6763_s13 }
 0x28a   : > { %p14_p9 = scmp.ge.s32.totalorder %s17_s17, 4   ;;  %s7679_s13 = smov %s6767_s14 }
 0x28b   : > { %s7680_s14 = smov %s6857_s24  ;;  %s7681_s15 = smov %s6775_s16 }
 0x28c   : > { %s7682_s16 = smov %s7684_s19  ;;  %16 = sbr.rel (!%p14_p9) target bundleno = 4 (0x4), region = 88 }
 0x293   :  { %5721 = vsyncpa [#allocation5], 1 }
 0x294   :  { %5723 = vsyncpa [#allocation5 + $0x1], 1 }

</bundles_post_ra>
